<compile_context>
chip_gen: v7x
topology: tpu7x:2x2x1
jax: 0.10.0
libtpu: 0.0.40
codegen_flags: <defaults>
</compile_context>

<pallas_src>
import functools

import jax
import jax.numpy as jnp
from jax.experimental import pallas as pl
from jax.experimental.pallas import tpu as pltpu


def _upsample_conv_kernel(x_ref, w_ref, b_ref, o_ref, acc_ref):
    # x_ref  : (1, 1, TH+2, W+2, Cin)  zero-padded row tile (halo of 2 rows), compute dtype
    # w_ref  : (4, 4, Cin, Cout)       polyphase weights [2*py+px, 2*ry+rx], compute dtype
    # b_ref  : (1, Cout)               bias, f32
    # o_ref  : (1, TH, 2, W, 2*Cout)   output; [0,i,py,j,px*Cout+c] == y[2i+py, 2j+px, c]
    # acc_ref: (TH*W, Cout)            f32 VMEM scratch accumulator
    _, TH, _, W, _ = o_ref.shape
    Cin = x_ref.shape[4]
    Cout = acc_ref.shape[1]

    # 4 output phases (py, px); each is a 2x2 conv over the original image,
    # i.e. 4 shifted (TH*W, Cin) x (Cin, Cout) matmuls on the MXU.
    for py in range(2):
        for px in range(2):
            acc_ref[...] = jnp.zeros_like(acc_ref)
            for ry in range(2):
                for rx in range(2):
                    # Ref-view window load (shifted patch), no value re-slicing.
                    patch = x_ref[0, 0,
                                  py + ry: py + ry + TH,
                                  px + rx: px + rx + W, :]
                    acc_ref[...] += jnp.dot(
                        patch.reshape(TH * W, Cin),
                        w_ref[2 * py + px, 2 * ry + rx],
                        preferred_element_type=jnp.float32,
                    )
            out = acc_ref[...] + b_ref[...]          # f32 bias add (broadcast)
            # Lane-contiguous store of this phase's (TH, W, Cout) slab.
            o_ref[0, :, py, :, px * Cout:(px + 1) * Cout] = (
                out.reshape(TH, W, Cout).astype(o_ref.dtype))


def _pick_row_tile(H):
    """Largest row tile from a small preference list that divides H and leaves
    >=2 tiles (so the pipeline / megacore have work to overlap)."""
    for th in (64, 32, 16, 8):
        if H % th == 0 and H // th >= 2:
            return th
    return H


@functools.partial(jax.jit, static_argnames=("row_tile", "compute_dtype"))
def upsample_forward(x_nchw, w_oihw, bias, *, row_tile=None,
                     compute_dtype=jnp.bfloat16):
    """Forward pass of Upsample(channels, use_conv=True, dims=2).

    x_nchw : (N, C, H, W)   -- PyTorch NCHW convention
    w_oihw : (C, C, 3, 3)   -- PyTorch Conv2d weight
    bias   : (C,)
    returns (N, C, 2H, 2W)
    """
    N, C, H, W = x_nchw.shape
    H2, W2 = 2 * H, 2 * W
    TH = row_tile if row_tile is not None else _pick_row_tile(H)
    assert H % TH == 0
    nT = H // TH

    # ---- glue (plain JAX, all at ORIGINAL resolution) ----
    x = jnp.transpose(x_nchw, (0, 2, 3, 1))                    # NHWC
    # The 3x3 SAME padding of the *upsampled* image maps back to a 1-pixel
    # zero border on the original image under the polyphase split.
    x_pad = jnp.pad(x, ((0, 0), (1, 1), (1, 1), (0, 0))).astype(compute_dtype)
    # Overlapping row tiles with a 2-row halo, so the kernel grid needs only
    # plain Blocked BlockSpecs (no overlapping-index tricks).
    row_idx = jnp.arange(nT)[:, None] * TH + jnp.arange(TH + 2)[None, :]
    x_blk = x_pad[:, row_idx]                                  # (N, nT, TH+2, W+2, C)

    # Polyphase weights: each output phase (py, px) is a 2x2 conv over the
    # original image; 3x3 taps hitting the same source row/col are pre-summed.
    w_hwio = jnp.transpose(w_oihw, (2, 3, 1, 0)).astype(jnp.float32)  # (3,3,Cin,Cout)
    R = jnp.array([[[1., 0., 0.], [0., 1., 1.]],    # phase 0: taps -> {k0}, {k1+k2}
                   [[1., 1., 0.], [0., 0., 1.]]],   # phase 1: taps -> {k0+k1}, {k2}
                  jnp.float32)                      # (2 phases, 2 taps, 3 kernel rows/cols)
    w_eff = jnp.einsum('pak,qbl,klio->pqabio', R, R, w_hwio)   # (2,2,2,2,Cin,Cout)
    w_eff = w_eff.reshape(4, 4, C, C).astype(compute_dtype)
    b2 = bias.reshape(1, C).astype(jnp.float32)

    out = pl.pallas_call(
        _upsample_conv_kernel,
        # (N, H, 2, W, 2*C) reshapes for free to (N, 2H, 2W, C): phase results
        # are stored lane-contiguously and interleaving costs no transpose.
        out_shape=jax.ShapeDtypeStruct((N, H, 2, W, 2 * C), x_nchw.dtype),
        grid_spec=pltpu.PrefetchScalarGridSpec(
            num_scalar_prefetch=0,
            grid=(N, nT),
            in_specs=[
                pl.BlockSpec((1, 1, TH + 2, W + 2, C),
                             lambda n, t: (n, t, 0, 0, 0)),
                pl.BlockSpec((4, 4, C, C), lambda n, t: (0, 0, 0, 0)),
                pl.BlockSpec((1, C), lambda n, t: (0, 0)),
            ],
            out_specs=pl.BlockSpec((1, TH, 2, W, 2 * C),
                                   lambda n, t: (n, t, 0, 0, 0)),
            scratch_shapes=[pltpu.VMEM((TH * W, C), jnp.float32)],
        ),
        compiler_params=pltpu.CompilerParams(
            # Both grid axes are fully independent -> shardable across the two
            # TensorCores on v7x; harmless on v5e/v6e.
            dimension_semantics=("parallel", "parallel"),
            # Raise the scoped-VMEM budget above the 16/32 MiB default so large
            # row tiles fit; kept <= 3/4 of v7x's 64 MiB physical VMEM.
            vmem_limit_bytes=48 * 1024 * 1024,
        ),
    )(x_blk, w_eff, b2)

    out_nhwc = out.reshape(N, H2, W2, C)            # free reshape (phase interleave)
    return jnp.transpose(out_nhwc, (0, 3, 1, 2))    # back to NCHW (module contract)


def _reference_forward(x_nchw, w_oihw, bias):
    """Pure-JAX reference (nearest 2x upsample + SAME 3x3 conv), NCHW, f32."""
    x = jnp.transpose(x_nchw, (0, 2, 3, 1))
    x_up = jnp.repeat(jnp.repeat(x, 2, axis=1), 2, axis=2)
    w_hwio = jnp.transpose(w_oihw, (2, 3, 1, 0))
    y = jax.lax.conv_general_dilated(
        x_up, w_hwio,
        window_strides=(1, 1), padding="SAME",
        dimension_numbers=("NHWC", "HWIO", "NHWC"),
    ) + bias[None, None, None, :]
    return jnp.transpose(y, (0, 3, 1, 2))


if __name__ == "__main__":
    # Small, deterministic synthetic setup consistent with the module.
    N, C, H, W = 2, 4, 16, 16
    key = jax.random.PRNGKey(0)
    kx, kw, kb = jax.random.split(key, 3)

    x = jax.random.normal(kx, (N, C, H, W), dtype=jnp.float32)

    # Deterministic parameter init matching PyTorch Conv2d default ranges
    # (uniform(-1/sqrt(fan_in), 1/sqrt(fan_in)), fan_in = C * 3 * 3).
    fan_in = C * 3 * 3
    bound = 1.0 / (fan_in ** 0.5)
    w = jax.random.uniform(kw, (C, C, 3, 3), jnp.float32, -bound, bound)
    b = jax.random.uniform(kb, (C,), jnp.float32, -bound, bound)

    y_ref = jax.block_until_ready(_reference_forward(x, w, b))

    # 1) f32 compute path: tight check of the polyphase algorithm itself.
    y32 = jax.block_until_ready(
        upsample_forward(x, w, b, compute_dtype=jnp.float32))
    assert y32.shape == (N, C, 2 * H, 2 * W), y32.shape
    err32 = float(jnp.max(jnp.abs(y32 - y_ref)))
    assert err32 < 1e-4, f"f32 path max abs err {err32}"

    # 2) Default bf16-MXU path: loosened tolerance (bf16 operands, f32 accum).
    ybf = jax.block_until_ready(upsample_forward(x, w, b))
    assert ybf.shape == (N, C, 2 * H, 2 * W), ybf.shape
    errbf = float(jnp.max(jnp.abs(ybf - y_ref)))
    assert errbf < 1e-1, f"bf16 path max abs err {errbf}"

    print("KERNEL_OK")
</pallas_src>

<mosaic_0001>
module attributes {stable_mosaic.version = 11 : i64} {
  func.func @_upsample_conv_kernel(%arg0: i32, %arg1: i32, %arg2: memref<1x1x10x18x4xf32, #tpu.memory_space<vmem>>, %arg3: memref<4x4x4x4xf32, #tpu.memory_space<vmem>>, %arg4: memref<1x4xf32, #tpu.memory_space<vmem>>, %arg5: memref<1x8x2x16x8xf32, #tpu.memory_space<vmem>>, %arg6: memref<128x4xf32, #tpu.memory_space<vmem>>) attributes {dimension_semantics = [#tpu.dimension_semantics<parallel>, #tpu.dimension_semantics<parallel>], iteration_bounds = array<i64: 2, 2>, scalar_prefetch = 0 : i64, scratch_operands = 1 : i64, tpu.core_type = #tpu.core_type<tc>, window_params = [{transform_indices = @transform_0, window_bounds = array<i64: 1, 1, 10, 18, 4>}, {pipeline_mode = #tpu.pipeline_mode<synchronous>, transform_indices = @transform_1, window_bounds = array<i64: 4, 4, 4, 4>}, {pipeline_mode = #tpu.pipeline_mode<synchronous>, transform_indices = @transform_2, window_bounds = array<i64: 1, 4>}, {transform_indices = @transform_3, window_bounds = array<i64: 1, 8, 2, 16, 8>}]} {
    %cst = arith.constant 0.000000e+00 : f32
    %0 = vector.broadcast %cst : f32 to vector<128x4xf32>
    %c0 = arith.constant 0 : index
    %c0_0 = arith.constant 0 : index
    %1 = vector.load %arg6[%c0, %c0_0] : memref<128x4xf32, #tpu.memory_space<vmem>>, vector<128x4xf32>
    tpu.vector_store %arg6[%c0, %c0_0], %0 {strides = array<i32>} : memref<128x4xf32, #tpu.memory_space<vmem>>, vector<128x4xf32>,
    %c0_1 = arith.constant 0 : index
    %c0_2 = arith.constant 0 : index
    %c0_3 = arith.constant 0 : index
    %c0_4 = arith.constant 0 : index
    %c0_5 = arith.constant 0 : index
    %2 = vector.load %arg2[%c0_1, %c0_2, %c0_3, %c0_4, %c0_5] : memref<1x1x10x18x4xf32, #tpu.memory_space<vmem>>, vector<1x1x8x16x4xf32>
    %3 = vector.shape_cast %2 : vector<1x1x8x16x4xf32> to vector<8x16x4xf32>
    %c0_6 = arith.constant 0 : index
    %c0_7 = arith.constant 0 : index
    %4 = vector.load %arg6[%c0_6, %c0_7] : memref<128x4xf32, #tpu.memory_space<vmem>>, vector<128x4xf32>
    %5 = vector.shape_cast %3 : vector<8x16x4xf32> to vector<128x4xf32>
    %c0_8 = arith.constant 0 : index
    %c0_9 = arith.constant 0 : index
    %c0_10 = arith.constant 0 : index
    %c0_11 = arith.constant 0 : index
    %6 = vector.load %arg3[%c0_8, %c0_9, %c0_10, %c0_11] : memref<4x4x4x4xf32, #tpu.memory_space<vmem>>, vector<1x1x4x4xf32>
    %7 = vector.shape_cast %6 : vector<1x1x4x4xf32> to vector<4x4xf32>
    %cst_12 = arith.constant dense<0.000000e+00> : vector<128x4xf32>
    %8 = tpu.matmul %5, %7, %cst_12 {dimension_numbers = #tpu.dot_dimension_numbers<[1], [0], [0], [1], [0, 0, 1, 1], [], []>} : vector<128x4xf32>, vector<4x4xf32>, vector<128x4xf32> -> vector<128x4xf32>
    %9 = arith.addf %4, %8 : vector<128x4xf32>
    %c0_13 = arith.constant 0 : index
    %c0_14 = arith.constant 0 : index
    %10 = vector.load %arg6[%c0_13, %c0_14] : memref<128x4xf32, #tpu.memory_space<vmem>>, vector<128x4xf32>
    tpu.vector_store %arg6[%c0_13, %c0_14], %9 {strides = array<i32>} : memref<128x4xf32, #tpu.memory_space<vmem>>, vector<128x4xf32>,
    %c0_15 = arith.constant 0 : index
    %c0_16 = arith.constant 0 : index
    %c0_17 = arith.constant 0 : index
    %c1 = arith.constant 1 : index
    %c0_18 = arith.constant 0 : index
    %11 = vector.load %arg2[%c0_15, %c0_16, %c0_17, %c1, %c0_18] : memref<1x1x10x18x4xf32, #tpu.memory_space<vmem>>, vector<1x1x8x16x4xf32>
    %12 = vector.shape_cast %11 : vector<1x1x8x16x4xf32> to vector<8x16x4xf32>
    %c0_19 = arith.constant 0 : index
    %c0_20 = arith.constant 0 : index
    %13 = vector.load %arg6[%c0_19, %c0_20] : memref<128x4xf32, #tpu.memory_space<vmem>>, vector<128x4xf32>
    %14 = vector.shape_cast %12 : vector<8x16x4xf32> to vector<128x4xf32>
    %c0_21 = arith.constant 0 : index
    %c1_22 = arith.constant 1 : index
    %c0_23 = arith.constant 0 : index
    %c0_24 = arith.constant 0 : index
    %15 = vector.load %arg3[%c0_21, %c1_22, %c0_23, %c0_24] : memref<4x4x4x4xf32, #tpu.memory_space<vmem>>, vector<1x1x4x4xf32>
    %16 = vector.shape_cast %15 : vector<1x1x4x4xf32> to vector<4x4xf32>
    %cst_25 = arith.constant dense<0.000000e+00> : vector<128x4xf32>
    %17 = tpu.matmul %14, %16, %cst_25 {dimension_numbers = #tpu.dot_dimension_numbers<[1], [0], [0], [1], [0, 0, 1, 1], [], []>} : vector<128x4xf32>, vector<4x4xf32>, vector<128x4xf32> -> vector<128x4xf32>
    %18 = arith.addf %13, %17 : vector<128x4xf32>
    %c0_26 = arith.constant 0 : index
    %c0_27 = arith.constant 0 : index
    %19 = vector.load %arg6[%c0_26, %c0_27] : memref<128x4xf32, #tpu.memory_space<vmem>>, vector<128x4xf32>
    tpu.vector_store %arg6[%c0_26, %c0_27], %18 {strides = array<i32>} : memref<128x4xf32, #tpu.memory_space<vmem>>, vector<128x4xf32>,
    %c0_28 = arith.constant 0 : index
    %c0_29 = arith.constant 0 : index
    %c1_30 = arith.constant 1 : index
    %c0_31 = arith.constant 0 : index
    %c0_32 = arith.constant 0 : index
    %20 = vector.load %arg2[%c0_28, %c0_29, %c1_30, %c0_31, %c0_32] : memref<1x1x10x18x4xf32, #tpu.memory_space<vmem>>, vector<1x1x8x16x4xf32>
    %21 = vector.shape_cast %20 : vector<1x1x8x16x4xf32> to vector<8x16x4xf32>
    %c0_33 = arith.constant 0 : index
    %c0_34 = arith.constant 0 : index
    %22 = vector.load %arg6[%c0_33, %c0_34] : memref<128x4xf32, #tpu.memory_space<vmem>>, vector<128x4xf32>
    %23 = vector.shape_cast %21 : vector<8x16x4xf32> to vector<128x4xf32>
    %c0_35 = arith.constant 0 : index
    %c2 = arith.constant 2 : index
    %c0_36 = arith.constant 0 : index
    %c0_37 = arith.constant 0 : index
    %24 = vector.load %arg3[%c0_35, %c2, %c0_36, %c0_37] : memref<4x4x4x4xf32, #tpu.memory_space<vmem>>, vector<1x1x4x4xf32>
    %25 = vector.shape_cast %24 : vector<1x1x4x4xf32> to vector<4x4xf32>
    %cst_38 = arith.constant dense<0.000000e+00> : vector<128x4xf32>
    %26 = tpu.matmul %23, %25, %cst_38 {dimension_numbers = #tpu.dot_dimension_numbers<[1], [0], [0], [1], [0, 0, 1, 1], [], []>} : vector<128x4xf32>, vector<4x4xf32>, vector<128x4xf32> -> vector<128x4xf32>
    %27 = arith.addf %22, %26 : vector<128x4xf32>
    %c0_39 = arith.constant 0 : index
    %c0_40 = arith.constant 0 : index
    %28 = vector.load %arg6[%c0_39, %c0_40] : memref<128x4xf32, #tpu.memory_space<vmem>>, vector<128x4xf32>
    tpu.vector_store %arg6[%c0_39, %c0_40], %27 {strides = array<i32>} : memref<128x4xf32, #tpu.memory_space<vmem>>, vector<128x4xf32>,
    %c0_41 = arith.constant 0 : index
    %c0_42 = arith.constant 0 : index
    %c1_43 = arith.constant 1 : index
    %c1_44 = arith.constant 1 : index
    %c0_45 = arith.constant 0 : index
    %29 = vector.load %arg2[%c0_41, %c0_42, %c1_43, %c1_44, %c0_45] : memref<1x1x10x18x4xf32, #tpu.memory_space<vmem>>, vector<1x1x8x16x4xf32>
    %30 = vector.shape_cast %29 : vector<1x1x8x16x4xf32> to vector<8x16x4xf32>
    %c0_46 = arith.constant 0 : index
    %c0_47 = arith.constant 0 : index
    %31 = vector.load %arg6[%c0_46, %c0_47] : memref<128x4xf32, #tpu.memory_space<vmem>>, vector<128x4xf32>
    %32 = vector.shape_cast %30 : vector<8x16x4xf32> to vector<128x4xf32>
    %c0_48 = arith.constant 0 : index
    %c3 = arith.constant 3 : index
    %c0_49 = arith.constant 0 : index
    %c0_50 = arith.constant 0 : index
    %33 = vector.load %arg3[%c0_48, %c3, %c0_49, %c0_50] : memref<4x4x4x4xf32, #tpu.memory_space<vmem>>, vector<1x1x4x4xf32>
    %34 = vector.shape_cast %33 : vector<1x1x4x4xf32> to vector<4x4xf32>
    %cst_51 = arith.constant dense<0.000000e+00> : vector<128x4xf32>
    %35 = tpu.matmul %32, %34, %cst_51 {dimension_numbers = #tpu.dot_dimension_numbers<[1], [0], [0], [1], [0, 0, 1, 1], [], []>} : vector<128x4xf32>, vector<4x4xf32>, vector<128x4xf32> -> vector<128x4xf32>
    %36 = arith.addf %31, %35 : vector<128x4xf32>
    %c0_52 = arith.constant 0 : index
    %c0_53 = arith.constant 0 : index
    %37 = vector.load %arg6[%c0_52, %c0_53] : memref<128x4xf32, #tpu.memory_space<vmem>>, vector<128x4xf32>
    tpu.vector_store %arg6[%c0_52, %c0_53], %36 {strides = array<i32>} : memref<128x4xf32, #tpu.memory_space<vmem>>, vector<128x4xf32>,
    %c0_54 = arith.constant 0 : index
    %c0_55 = arith.constant 0 : index
    %38 = vector.load %arg6[%c0_54, %c0_55] : memref<128x4xf32, #tpu.memory_space<vmem>>, vector<128x4xf32>
    %c0_56 = arith.constant 0 : index
    %c0_57 = arith.constant 0 : index
    %39 = vector.load %arg4[%c0_56, %c0_57] : memref<1x4xf32, #tpu.memory_space<vmem>>, vector<1x4xf32>
    %40 = vector.broadcast %39 : vector<1x4xf32> to vector<128x4xf32>
    %41 = arith.addf %38, %40 : vector<128x4xf32>
    %42 = vector.shape_cast %41 : vector<128x4xf32> to vector<8x16x4xf32>
    %c0_58 = arith.constant 0 : index
    %c0_59 = arith.constant 0 : index
    %c0_60 = arith.constant 0 : index
    %c0_61 = arith.constant 0 : index
    %c0_62 = arith.constant 0 : index
    %43 = vector.load %arg5[%c0_58, %c0_59, %c0_60, %c0_61, %c0_62] : memref<1x8x2x16x8xf32, #tpu.memory_space<vmem>>, vector<1x8x1x16x4xf32>
    %44 = vector.shape_cast %43 : vector<1x8x1x16x4xf32> to vector<8x16x4xf32>
    %45 = vector.shape_cast %42 : vector<8x16x4xf32> to vector<1x8x1x16x4xf32>
    tpu.vector_store %arg5[%c0_58, %c0_59, %c0_60, %c0_61, %c0_62], %45 {strides = array<i32>} : memref<1x8x2x16x8xf32, #tpu.memory_space<vmem>>, vector<1x8x1x16x4xf32>,
    %cst_63 = arith.constant 0.000000e+00 : f32
    %46 = vector.broadcast %cst_63 : f32 to vector<128x4xf32>
    %c0_64 = arith.constant 0 : index
    %c0_65 = arith.constant 0 : index
    %47 = vector.load %arg6[%c0_64, %c0_65] : memref<128x4xf32, #tpu.memory_space<vmem>>, vector<128x4xf32>
    tpu.vector_store %arg6[%c0_64, %c0_65], %46 {strides = array<i32>} : memref<128x4xf32, #tpu.memory_space<vmem>>, vector<128x4xf32>,
    %c0_66 = arith.constant 0 : index
    %c0_67 = arith.constant 0 : index
    %c0_68 = arith.constant 0 : index
    %c1_69 = arith.constant 1 : index
    %c0_70 = arith.constant 0 : index
    %48 = vector.load %arg2[%c0_66, %c0_67, %c0_68, %c1_69, %c0_70] : memref<1x1x10x18x4xf32, #tpu.memory_space<vmem>>, vector<1x1x8x16x4xf32>
    %49 = vector.shape_cast %48 : vector<1x1x8x16x4xf32> to vector<8x16x4xf32>
    %c0_71 = arith.constant 0 : index
    %c0_72 = arith.constant 0 : index
    %50 = vector.load %arg6[%c0_71, %c0_72] : memref<128x4xf32, #tpu.memory_space<vmem>>, vector<128x4xf32>
    %51 = vector.shape_cast %49 : vector<8x16x4xf32> to vector<128x4xf32>
    %c1_73 = arith.constant 1 : index
    %c0_74 = arith.constant 0 : index
    %c0_75 = arith.constant 0 : index
    %c0_76 = arith.constant 0 : index
    %52 = vector.load %arg3[%c1_73, %c0_74, %c0_75, %c0_76] : memref<4x4x4x4xf32, #tpu.memory_space<vmem>>, vector<1x1x4x4xf32>
    %53 = vector.shape_cast %52 : vector<1x1x4x4xf32> to vector<4x4xf32>
    %cst_77 = arith.constant dense<0.000000e+00> : vector<128x4xf32>
    %54 = tpu.matmul %51, %53, %cst_77 {dimension_numbers = #tpu.dot_dimension_numbers<[1], [0], [0], [1], [0, 0, 1, 1], [], []>} : vector<128x4xf32>, vector<4x4xf32>, vector<128x4xf32> -> vector<128x4xf32>
    %55 = arith.addf %50, %54 : vector<128x4xf32>
    %c0_78 = arith.constant 0 : index
    %c0_79 = arith.constant 0 : index
    %56 = vector.load %arg6[%c0_78, %c0_79] : memref<128x4xf32, #tpu.memory_space<vmem>>, vector<128x4xf32>
    tpu.vector_store %arg6[%c0_78, %c0_79], %55 {strides = array<i32>} : memref<128x4xf32, #tpu.memory_space<vmem>>, vector<128x4xf32>,
    %c0_80 = arith.constant 0 : index
    %c0_81 = arith.constant 0 : index
    %c0_82 = arith.constant 0 : index
    %c2_83 = arith.constant 2 : index
    %c0_84 = arith.constant 0 : index
    %57 = vector.load %arg2[%c0_80, %c0_81, %c0_82, %c2_83, %c0_84] : memref<1x1x10x18x4xf32, #tpu.memory_space<vmem>>, vector<1x1x8x16x4xf32>
    %58 = vector.shape_cast %57 : vector<1x1x8x16x4xf32> to vector<8x16x4xf32>
    %c0_85 = arith.constant 0 : index
    %c0_86 = arith.constant 0 : index
    %59 = vector.load %arg6[%c0_85, %c0_86] : memref<128x4xf32, #tpu.memory_space<vmem>>, vector<128x4xf32>
    %60 = vector.shape_cast %58 : vector<8x16x4xf32> to vector<128x4xf32>
    %c1_87 = arith.constant 1 : index
    %c1_88 = arith.constant 1 : index
    %c0_89 = arith.constant 0 : index
    %c0_90 = arith.constant 0 : index
    %61 = vector.load %arg3[%c1_87, %c1_88, %c0_89, %c0_90] : memref<4x4x4x4xf32, #tpu.memory_space<vmem>>, vector<1x1x4x4xf32>
    %62 = vector.shape_cast %61 : vector<1x1x4x4xf32> to vector<4x4xf32>
    %cst_91 = arith.constant dense<0.000000e+00> : vector<128x4xf32>
    %63 = tpu.matmul %60, %62, %cst_91 {dimension_numbers = #tpu.dot_dimension_numbers<[1], [0], [0], [1], [0, 0, 1, 1], [], []>} : vector<128x4xf32>, vector<4x4xf32>, vector<128x4xf32> -> vector<128x4xf32>
    %64 = arith.addf %59, %63 : vector<128x4xf32>
    %c0_92 = arith.constant 0 : index
    %c0_93 = arith.constant 0 : index
    %65 = vector.load %arg6[%c0_92, %c0_93] : memref<128x4xf32, #tpu.memory_space<vmem>>, vector<128x4xf32>
    tpu.vector_store %arg6[%c0_92, %c0_93], %64 {strides = array<i32>} : memref<128x4xf32, #tpu.memory_space<vmem>>, vector<128x4xf32>,
    %c0_94 = arith.constant 0 : index
    %c0_95 = arith.constant 0 : index
    %c1_96 = arith.constant 1 : index
    %c1_97 = arith.constant 1 : index
    %c0_98 = arith.constant 0 : index
    %66 = vector.load %arg2[%c0_94, %c0_95, %c1_96, %c1_97, %c0_98] : memref<1x1x10x18x4xf32, #tpu.memory_space<vmem>>, vector<1x1x8x16x4xf32>
    %67 = vector.shape_cast %66 : vector<1x1x8x16x4xf32> to vector<8x16x4xf32>
    %c0_99 = arith.constant 0 : index
    %c0_100 = arith.constant 0 : index
    %68 = vector.load %arg6[%c0_99, %c0_100] : memref<128x4xf32, #tpu.memory_space<vmem>>, vector<128x4xf32>
    %69 = vector.shape_cast %67 : vector<8x16x4xf32> to vector<128x4xf32>
    %c1_101 = arith.constant 1 : index
    %c2_102 = arith.constant 2 : index
    %c0_103 = arith.constant 0 : index
    %c0_104 = arith.constant 0 : index
    %70 = vector.load %arg3[%c1_101, %c2_102, %c0_103, %c0_104] : memref<4x4x4x4xf32, #tpu.memory_space<vmem>>, vector<1x1x4x4xf32>
    %71 = vector.shape_cast %70 : vector<1x1x4x4xf32> to vector<4x4xf32>
    %cst_105 = arith.constant dense<0.000000e+00> : vector<128x4xf32>
    %72 = tpu.matmul %69, %71, %cst_105 {dimension_numbers = #tpu.dot_dimension_numbers<[1], [0], [0], [1], [0, 0, 1, 1], [], []>} : vector<128x4xf32>, vector<4x4xf32>, vector<128x4xf32> -> vector<128x4xf32>
    %73 = arith.addf %68, %72 : vector<128x4xf32>
    %c0_106 = arith.constant 0 : index
    %c0_107 = arith.constant 0 : index
    %74 = vector.load %arg6[%c0_106, %c0_107] : memref<128x4xf32, #tpu.memory_space<vmem>>, vector<128x4xf32>
    tpu.vector_store %arg6[%c0_106, %c0_107], %73 {strides = array<i32>} : memref<128x4xf32, #tpu.memory_space<vmem>>, vector<128x4xf32>,
    %c0_108 = arith.constant 0 : index
    %c0_109 = arith.constant 0 : index
    %c1_110 = arith.constant 1 : index
    %c2_111 = arith.constant 2 : index
    %c0_112 = arith.constant 0 : index
    %75 = vector.load %arg2[%c0_108, %c0_109, %c1_110, %c2_111, %c0_112] : memref<1x1x10x18x4xf32, #tpu.memory_space<vmem>>, vector<1x1x8x16x4xf32>
    %76 = vector.shape_cast %75 : vector<1x1x8x16x4xf32> to vector<8x16x4xf32>
    %c0_113 = arith.constant 0 : index
    %c0_114 = arith.constant 0 : index
    %77 = vector.load %arg6[%c0_113, %c0_114] : memref<128x4xf32, #tpu.memory_space<vmem>>, vector<128x4xf32>
    %78 = vector.shape_cast %76 : vector<8x16x4xf32> to vector<128x4xf32>
    %c1_115 = arith.constant 1 : index
    %c3_116 = arith.constant 3 : index
    %c0_117 = arith.constant 0 : index
    %c0_118 = arith.constant 0 : index
    %79 = vector.load %arg3[%c1_115, %c3_116, %c0_117, %c0_118] : memref<4x4x4x4xf32, #tpu.memory_space<vmem>>, vector<1x1x4x4xf32>
    %80 = vector.shape_cast %79 : vector<1x1x4x4xf32> to vector<4x4xf32>
    %cst_119 = arith.constant dense<0.000000e+00> : vector<128x4xf32>
    %81 = tpu.matmul %78, %80, %cst_119 {dimension_numbers = #tpu.dot_dimension_numbers<[1], [0], [0], [1], [0, 0, 1, 1], [], []>} : vector<128x4xf32>, vector<4x4xf32>, vector<128x4xf32> -> vector<128x4xf32>
    %82 = arith.addf %77, %81 : vector<128x4xf32>
    %c0_120 = arith.constant 0 : index
    %c0_121 = arith.constant 0 : index
    %83 = vector.load %arg6[%c0_120, %c0_121] : memref<128x4xf32, #tpu.memory_space<vmem>>, vector<128x4xf32>
    tpu.vector_store %arg6[%c0_120, %c0_121], %82 {strides = array<i32>} : memref<128x4xf32, #tpu.memory_space<vmem>>, vector<128x4xf32>,
    %c0_122 = arith.constant 0 : index
    %c0_123 = arith.constant 0 : index
    %84 = vector.load %arg6[%c0_122, %c0_123] : memref<128x4xf32, #tpu.memory_space<vmem>>, vector<128x4xf32>
    %c0_124 = arith.constant 0 : index
    %c0_125 = arith.constant 0 : index
    %85 = vector.load %arg4[%c0_124, %c0_125] : memref<1x4xf32, #tpu.memory_space<vmem>>, vector<1x4xf32>
    %86 = vector.broadcast %85 : vector<1x4xf32> to vector<128x4xf32>
    %87 = arith.addf %84, %86 : vector<128x4xf32>
    %88 = vector.shape_cast %87 : vector<128x4xf32> to vector<8x16x4xf32>
    %c0_126 = arith.constant 0 : index
    %c0_127 = arith.constant 0 : index
    %c0_128 = arith.constant 0 : index
    %c0_129 = arith.constant 0 : index
    %c4 = arith.constant 4 : index
    %89 = vector.load %arg5[%c0_126, %c0_127, %c0_128, %c0_129, %c4] : memref<1x8x2x16x8xf32, #tpu.memory_space<vmem>>, vector<1x8x1x16x4xf32>
    %90 = vector.shape_cast %89 : vector<1x8x1x16x4xf32> to vector<8x16x4xf32>
    %91 = vector.shape_cast %88 : vector<8x16x4xf32> to vector<1x8x1x16x4xf32>
    tpu.vector_store %arg5[%c0_126, %c0_127, %c0_128, %c0_129, %c4], %91 {strides = array<i32>} : memref<1x8x2x16x8xf32, #tpu.memory_space<vmem>>, vector<1x8x1x16x4xf32>,
    %cst_130 = arith.constant 0.000000e+00 : f32
    %92 = vector.broadcast %cst_130 : f32 to vector<128x4xf32>
    %c0_131 = arith.constant 0 : index
    %c0_132 = arith.constant 0 : index
    %93 = vector.load %arg6[%c0_131, %c0_132] : memref<128x4xf32, #tpu.memory_space<vmem>>, vector<128x4xf32>
    tpu.vector_store %arg6[%c0_131, %c0_132], %92 {strides = array<i32>} : memref<128x4xf32, #tpu.memory_space<vmem>>, vector<128x4xf32>,
    %c0_133 = arith.constant 0 : index
    %c0_134 = arith.constant 0 : index
    %c1_135 = arith.constant 1 : index
    %c0_136 = arith.constant 0 : index
    %c0_137 = arith.constant 0 : index
    %94 = vector.load %arg2[%c0_133, %c0_134, %c1_135, %c0_136, %c0_137] : memref<1x1x10x18x4xf32, #tpu.memory_space<vmem>>, vector<1x1x8x16x4xf32>
    %95 = vector.shape_cast %94 : vector<1x1x8x16x4xf32> to vector<8x16x4xf32>
    %c0_138 = arith.constant 0 : index
    %c0_139 = arith.constant 0 : index
    %96 = vector.load %arg6[%c0_138, %c0_139] : memref<128x4xf32, #tpu.memory_space<vmem>>, vector<128x4xf32>
    %97 = vector.shape_cast %95 : vector<8x16x4xf32> to vector<128x4xf32>
    %c2_140 = arith.constant 2 : index
    %c0_141 = arith.constant 0 : index
    %c0_142 = arith.constant 0 : index
    %c0_143 = arith.constant 0 : index
    %98 = vector.load %arg3[%c2_140, %c0_141, %c0_142, %c0_143] : memref<4x4x4x4xf32, #tpu.memory_space<vmem>>, vector<1x1x4x4xf32>
    %99 = vector.shape_cast %98 : vector<1x1x4x4xf32> to vector<4x4xf32>
    %cst_144 = arith.constant dense<0.000000e+00> : vector<128x4xf32>
    %100 = tpu.matmul %97, %99, %cst_144 {dimension_numbers = #tpu.dot_dimension_numbers<[1], [0], [0], [1], [0, 0, 1, 1], [], []>} : vector<128x4xf32>, vector<4x4xf32>, vector<128x4xf32> -> vector<128x4xf32>
    %101 = arith.addf %96, %100 : vector<128x4xf32>
    %c0_145 = arith.constant 0 : index
    %c0_146 = arith.constant 0 : index
    %102 = vector.load %arg6[%c0_145, %c0_146] : memref<128x4xf32, #tpu.memory_space<vmem>>, vector<128x4xf32>
    tpu.vector_store %arg6[%c0_145, %c0_146], %101 {strides = array<i32>} : memref<128x4xf32, #tpu.memory_space<vmem>>, vector<128x4xf32>,
    %c0_147 = arith.constant 0 : index
    %c0_148 = arith.constant 0 : index
    %c1_149 = arith.constant 1 : index
    %c1_150 = arith.constant 1 : index
    %c0_151 = arith.constant 0 : index
    %103 = vector.load %arg2[%c0_147, %c0_148, %c1_149, %c1_150, %c0_151] : memref<1x1x10x18x4xf32, #tpu.memory_space<vmem>>, vector<1x1x8x16x4xf32>
    %104 = vector.shape_cast %103 : vector<1x1x8x16x4xf32> to vector<8x16x4xf32>
    %c0_152 = arith.constant 0 : index
    %c0_153 = arith.constant 0 : index
    %105 = vector.load %arg6[%c0_152, %c0_153] : memref<128x4xf32, #tpu.memory_space<vmem>>, vector<128x4xf32>
    %106 = vector.shape_cast %104 : vector<8x16x4xf32> to vector<128x4xf32>
    %c2_154 = arith.constant 2 : index
    %c1_155 = arith.constant 1 : index
    %c0_156 = arith.constant 0 : index
    %c0_157 = arith.constant 0 : index
    %107 = vector.load %arg3[%c2_154, %c1_155, %c0_156, %c0_157] : memref<4x4x4x4xf32, #tpu.memory_space<vmem>>, vector<1x1x4x4xf32>
    %108 = vector.shape_cast %107 : vector<1x1x4x4xf32> to vector<4x4xf32>
    %cst_158 = arith.constant dense<0.000000e+00> : vector<128x4xf32>
    %109 = tpu.matmul %106, %108, %cst_158 {dimension_numbers = #tpu.dot_dimension_numbers<[1], [0], [0], [1], [0, 0, 1, 1], [], []>} : vector<128x4xf32>, vector<4x4xf32>, vector<128x4xf32> -> vector<128x4xf32>
    %110 = arith.addf %105, %109 : vector<128x4xf32>
    %c0_159 = arith.constant 0 : index
    %c0_160 = arith.constant 0 : index
    %111 = vector.load %arg6[%c0_159, %c0_160] : memref<128x4xf32, #tpu.memory_space<vmem>>, vector<128x4xf32>
    tpu.vector_store %arg6[%c0_159, %c0_160], %110 {strides = array<i32>} : memref<128x4xf32, #tpu.memory_space<vmem>>, vector<128x4xf32>,
    %c0_161 = arith.constant 0 : index
    %c0_162 = arith.constant 0 : index
    %c2_163 = arith.constant 2 : index
    %c0_164 = arith.constant 0 : index
    %c0_165 = arith.constant 0 : index
    %112 = vector.load %arg2[%c0_161, %c0_162, %c2_163, %c0_164, %c0_165] : memref<1x1x10x18x4xf32, #tpu.memory_space<vmem>>, vector<1x1x8x16x4xf32>
    %113 = vector.shape_cast %112 : vector<1x1x8x16x4xf32> to vector<8x16x4xf32>
    %c0_166 = arith.constant 0 : index
    %c0_167 = arith.constant 0 : index
    %114 = vector.load %arg6[%c0_166, %c0_167] : memref<128x4xf32, #tpu.memory_space<vmem>>, vector<128x4xf32>
    %115 = vector.shape_cast %113 : vector<8x16x4xf32> to vector<128x4xf32>
    %c2_168 = arith.constant 2 : index
    %c2_169 = arith.constant 2 : index
    %c0_170 = arith.constant 0 : index
    %c0_171 = arith.constant 0 : index
    %116 = vector.load %arg3[%c2_168, %c2_169, %c0_170, %c0_171] : memref<4x4x4x4xf32, #tpu.memory_space<vmem>>, vector<1x1x4x4xf32>
    %117 = vector.shape_cast %116 : vector<1x1x4x4xf32> to vector<4x4xf32>
    %cst_172 = arith.constant dense<0.000000e+00> : vector<128x4xf32>
    %118 = tpu.matmul %115, %117, %cst_172 {dimension_numbers = #tpu.dot_dimension_numbers<[1], [0], [0], [1], [0, 0, 1, 1], [], []>} : vector<128x4xf32>, vector<4x4xf32>, vector<128x4xf32> -> vector<128x4xf32>
    %119 = arith.addf %114, %118 : vector<128x4xf32>
    %c0_173 = arith.constant 0 : index
    %c0_174 = arith.constant 0 : index
    %120 = vector.load %arg6[%c0_173, %c0_174] : memref<128x4xf32, #tpu.memory_space<vmem>>, vector<128x4xf32>
    tpu.vector_store %arg6[%c0_173, %c0_174], %119 {strides = array<i32>} : memref<128x4xf32, #tpu.memory_space<vmem>>, vector<128x4xf32>,
    %c0_175 = arith.constant 0 : index
    %c0_176 = arith.constant 0 : index
    %c2_177 = arith.constant 2 : index
    %c1_178 = arith.constant 1 : index
    %c0_179 = arith.constant 0 : index
    %121 = vector.load %arg2[%c0_175, %c0_176, %c2_177, %c1_178, %c0_179] : memref<1x1x10x18x4xf32, #tpu.memory_space<vmem>>, vector<1x1x8x16x4xf32>
    %122 = vector.shape_cast %121 : vector<1x1x8x16x4xf32> to vector<8x16x4xf32>
    %c0_180 = arith.constant 0 : index
    %c0_181 = arith.constant 0 : index
    %123 = vector.load %arg6[%c0_180, %c0_181] : memref<128x4xf32, #tpu.memory_space<vmem>>, vector<128x4xf32>
    %124 = vector.shape_cast %122 : vector<8x16x4xf32> to vector<128x4xf32>
    %c2_182 = arith.constant 2 : index
    %c3_183 = arith.constant 3 : index
    %c0_184 = arith.constant 0 : index
    %c0_185 = arith.constant 0 : index
    %125 = vector.load %arg3[%c2_182, %c3_183, %c0_184, %c0_185] : memref<4x4x4x4xf32, #tpu.memory_space<vmem>>, vector<1x1x4x4xf32>
    %126 = vector.shape_cast %125 : vector<1x1x4x4xf32> to vector<4x4xf32>
    %cst_186 = arith.constant dense<0.000000e+00> : vector<128x4xf32>
    %127 = tpu.matmul %124, %126, %cst_186 {dimension_numbers = #tpu.dot_dimension_numbers<[1], [0], [0], [1], [0, 0, 1, 1], [], []>} : vector<128x4xf32>, vector<4x4xf32>, vector<128x4xf32> -> vector<128x4xf32>
    %128 = arith.addf %123, %127 : vector<128x4xf32>
    %c0_187 = arith.constant 0 : index
    %c0_188 = arith.constant 0 : index
    %129 = vector.load %arg6[%c0_187, %c0_188] : memref<128x4xf32, #tpu.memory_space<vmem>>, vector<128x4xf32>
    tpu.vector_store %arg6[%c0_187, %c0_188], %128 {strides = array<i32>} : memref<128x4xf32, #tpu.memory_space<vmem>>, vector<128x4xf32>,
    %c0_189 = arith.constant 0 : index
    %c0_190 = arith.constant 0 : index
    %130 = vector.load %arg6[%c0_189, %c0_190] : memref<128x4xf32, #tpu.memory_space<vmem>>, vector<128x4xf32>
    %c0_191 = arith.constant 0 : index
    %c0_192 = arith.constant 0 : index
    %131 = vector.load %arg4[%c0_191, %c0_192] : memref<1x4xf32, #tpu.memory_space<vmem>>, vector<1x4xf32>
    %132 = vector.broadcast %131 : vector<1x4xf32> to vector<128x4xf32>
    %133 = arith.addf %130, %132 : vector<128x4xf32>
    %134 = vector.shape_cast %133 : vector<128x4xf32> to vector<8x16x4xf32>
    %c0_193 = arith.constant 0 : index
    %c0_194 = arith.constant 0 : index
    %c1_195 = arith.constant 1 : index
    %c0_196 = arith.constant 0 : index
    %c0_197 = arith.constant 0 : index
    %135 = vector.load %arg5[%c0_193, %c0_194, %c1_195, %c0_196, %c0_197] : memref<1x8x2x16x8xf32, #tpu.memory_space<vmem>>, vector<1x8x1x16x4xf32>
    %136 = vector.shape_cast %135 : vector<1x8x1x16x4xf32> to vector<8x16x4xf32>
    %137 = vector.shape_cast %134 : vector<8x16x4xf32> to vector<1x8x1x16x4xf32>
    tpu.vector_store %arg5[%c0_193, %c0_194, %c1_195, %c0_196, %c0_197], %137 {strides = array<i32>} : memref<1x8x2x16x8xf32, #tpu.memory_space<vmem>>, vector<1x8x1x16x4xf32>,
    %cst_198 = arith.constant 0.000000e+00 : f32
    %138 = vector.broadcast %cst_198 : f32 to vector<128x4xf32>
    %c0_199 = arith.constant 0 : index
    %c0_200 = arith.constant 0 : index
    %139 = vector.load %arg6[%c0_199, %c0_200] : memref<128x4xf32, #tpu.memory_space<vmem>>, vector<128x4xf32>
    tpu.vector_store %arg6[%c0_199, %c0_200], %138 {strides = array<i32>} : memref<128x4xf32, #tpu.memory_space<vmem>>, vector<128x4xf32>,
    %c0_201 = arith.constant 0 : index
    %c0_202 = arith.constant 0 : index
    %c1_203 = arith.constant 1 : index
    %c1_204 = arith.constant 1 : index
    %c0_205 = arith.constant 0 : index
    %140 = vector.load %arg2[%c0_201, %c0_202, %c1_203, %c1_204, %c0_205] : memref<1x1x10x18x4xf32, #tpu.memory_space<vmem>>, vector<1x1x8x16x4xf32>
    %141 = vector.shape_cast %140 : vector<1x1x8x16x4xf32> to vector<8x16x4xf32>
    %c0_206 = arith.constant 0 : index
    %c0_207 = arith.constant 0 : index
    %142 = vector.load %arg6[%c0_206, %c0_207] : memref<128x4xf32, #tpu.memory_space<vmem>>, vector<128x4xf32>
    %143 = vector.shape_cast %141 : vector<8x16x4xf32> to vector<128x4xf32>
    %c3_208 = arith.constant 3 : index
    %c0_209 = arith.constant 0 : index
    %c0_210 = arith.constant 0 : index
    %c0_211 = arith.constant 0 : index
    %144 = vector.load %arg3[%c3_208, %c0_209, %c0_210, %c0_211] : memref<4x4x4x4xf32, #tpu.memory_space<vmem>>, vector<1x1x4x4xf32>
    %145 = vector.shape_cast %144 : vector<1x1x4x4xf32> to vector<4x4xf32>
    %cst_212 = arith.constant dense<0.000000e+00> : vector<128x4xf32>
    %146 = tpu.matmul %143, %145, %cst_212 {dimension_numbers = #tpu.dot_dimension_numbers<[1], [0], [0], [1], [0, 0, 1, 1], [], []>} : vector<128x4xf32>, vector<4x4xf32>, vector<128x4xf32> -> vector<128x4xf32>
    %147 = arith.addf %142, %146 : vector<128x4xf32>
    %c0_213 = arith.constant 0 : index
    %c0_214 = arith.constant 0 : index
    %148 = vector.load %arg6[%c0_213, %c0_214] : memref<128x4xf32, #tpu.memory_space<vmem>>, vector<128x4xf32>
    tpu.vector_store %arg6[%c0_213, %c0_214], %147 {strides = array<i32>} : memref<128x4xf32, #tpu.memory_space<vmem>>, vector<128x4xf32>,
    %c0_215 = arith.constant 0 : index
    %c0_216 = arith.constant 0 : index
    %c1_217 = arith.constant 1 : index
    %c2_218 = arith.constant 2 : index
    %c0_219 = arith.constant 0 : index
    %149 = vector.load %arg2[%c0_215, %c0_216, %c1_217, %c2_218, %c0_219] : memref<1x1x10x18x4xf32, #tpu.memory_space<vmem>>, vector<1x1x8x16x4xf32>
    %150 = vector.shape_cast %149 : vector<1x1x8x16x4xf32> to vector<8x16x4xf32>
    %c0_220 = arith.constant 0 : index
    %c0_221 = arith.constant 0 : index
    %151 = vector.load %arg6[%c0_220, %c0_221] : memref<128x4xf32, #tpu.memory_space<vmem>>, vector<128x4xf32>
    %152 = vector.shape_cast %150 : vector<8x16x4xf32> to vector<128x4xf32>
    %c3_222 = arith.constant 3 : index
    %c1_223 = arith.constant 1 : index
    %c0_224 = arith.constant 0 : index
    %c0_225 = arith.constant 0 : index
    %153 = vector.load %arg3[%c3_222, %c1_223, %c0_224, %c0_225] : memref<4x4x4x4xf32, #tpu.memory_space<vmem>>, vector<1x1x4x4xf32>
    %154 = vector.shape_cast %153 : vector<1x1x4x4xf32> to vector<4x4xf32>
    %cst_226 = arith.constant dense<0.000000e+00> : vector<128x4xf32>
    %155 = tpu.matmul %152, %154, %cst_226 {dimension_numbers = #tpu.dot_dimension_numbers<[1], [0], [0], [1], [0, 0, 1, 1], [], []>} : vector<128x4xf32>, vector<4x4xf32>, vector<128x4xf32> -> vector<128x4xf32>
    %156 = arith.addf %151, %155 : vector<128x4xf32>
    %c0_227 = arith.constant 0 : index
    %c0_228 = arith.constant 0 : index
    %157 = vector.load %arg6[%c0_227, %c0_228] : memref<128x4xf32, #tpu.memory_space<vmem>>, vector<128x4xf32>
    tpu.vector_store %arg6[%c0_227, %c0_228], %156 {strides = array<i32>} : memref<128x4xf32, #tpu.memory_space<vmem>>, vector<128x4xf32>,
    %c0_229 = arith.constant 0 : index
    %c0_230 = arith.constant 0 : index
    %c2_231 = arith.constant 2 : index
    %c1_232 = arith.constant 1 : index
    %c0_233 = arith.constant 0 : index
    %158 = vector.load %arg2[%c0_229, %c0_230, %c2_231, %c1_232, %c0_233] : memref<1x1x10x18x4xf32, #tpu.memory_space<vmem>>, vector<1x1x8x16x4xf32>
    %159 = vector.shape_cast %158 : vector<1x1x8x16x4xf32> to vector<8x16x4xf32>
    %c0_234 = arith.constant 0 : index
    %c0_235 = arith.constant 0 : index
    %160 = vector.load %arg6[%c0_234, %c0_235] : memref<128x4xf32, #tpu.memory_space<vmem>>, vector<128x4xf32>
    %161 = vector.shape_cast %159 : vector<8x16x4xf32> to vector<128x4xf32>
    %c3_236 = arith.constant 3 : index
    %c2_237 = arith.constant 2 : index
    %c0_238 = arith.constant 0 : index
    %c0_239 = arith.constant 0 : index
    %162 = vector.load %arg3[%c3_236, %c2_237, %c0_238, %c0_239] : memref<4x4x4x4xf32, #tpu.memory_space<vmem>>, vector<1x1x4x4xf32>
    %163 = vector.shape_cast %162 : vector<1x1x4x4xf32> to vector<4x4xf32>
    %cst_240 = arith.constant dense<0.000000e+00> : vector<128x4xf32>
    %164 = tpu.matmul %161, %163, %cst_240 {dimension_numbers = #tpu.dot_dimension_numbers<[1], [0], [0], [1], [0, 0, 1, 1], [], []>} : vector<128x4xf32>, vector<4x4xf32>, vector<128x4xf32> -> vector<128x4xf32>
    %165 = arith.addf %160, %164 : vector<128x4xf32>
    %c0_241 = arith.constant 0 : index
    %c0_242 = arith.constant 0 : index
    %166 = vector.load %arg6[%c0_241, %c0_242] : memref<128x4xf32, #tpu.memory_space<vmem>>, vector<128x4xf32>
    tpu.vector_store %arg6[%c0_241, %c0_242], %165 {strides = array<i32>} : memref<128x4xf32, #tpu.memory_space<vmem>>, vector<128x4xf32>,
    %c0_243 = arith.constant 0 : index
    %c0_244 = arith.constant 0 : index
    %c2_245 = arith.constant 2 : index
    %c2_246 = arith.constant 2 : index
    %c0_247 = arith.constant 0 : index
    %167 = vector.load %arg2[%c0_243, %c0_244, %c2_245, %c2_246, %c0_247] : memref<1x1x10x18x4xf32, #tpu.memory_space<vmem>>, vector<1x1x8x16x4xf32>
    %168 = vector.shape_cast %167 : vector<1x1x8x16x4xf32> to vector<8x16x4xf32>
    %c0_248 = arith.constant 0 : index
    %c0_249 = arith.constant 0 : index
    %169 = vector.load %arg6[%c0_248, %c0_249] : memref<128x4xf32, #tpu.memory_space<vmem>>, vector<128x4xf32>
    %170 = vector.shape_cast %168 : vector<8x16x4xf32> to vector<128x4xf32>
    %c3_250 = arith.constant 3 : index
    %c3_251 = arith.constant 3 : index
    %c0_252 = arith.constant 0 : index
    %c0_253 = arith.constant 0 : index
    %171 = vector.load %arg3[%c3_250, %c3_251, %c0_252, %c0_253] : memref<4x4x4x4xf32, #tpu.memory_space<vmem>>, vector<1x1x4x4xf32>
    %172 = vector.shape_cast %171 : vector<1x1x4x4xf32> to vector<4x4xf32>
    %cst_254 = arith.constant dense<0.000000e+00> : vector<128x4xf32>
    %173 = tpu.matmul %170, %172, %cst_254 {dimension_numbers = #tpu.dot_dimension_numbers<[1], [0], [0], [1], [0, 0, 1, 1], [], []>} : vector<128x4xf32>, vector<4x4xf32>, vector<128x4xf32> -> vector<128x4xf32>
    %174 = arith.addf %169, %173 : vector<128x4xf32>
    %c0_255 = arith.constant 0 : index
    %c0_256 = arith.constant 0 : index
    %175 = vector.load %arg6[%c0_255, %c0_256] : memref<128x4xf32, #tpu.memory_space<vmem>>, vector<128x4xf32>
    tpu.vector_store %arg6[%c0_255, %c0_256], %174 {strides = array<i32>} : memref<128x4xf32, #tpu.memory_space<vmem>>, vector<128x4xf32>,
    %c0_257 = arith.constant 0 : index
    %c0_258 = arith.constant 0 : index
    %176 = vector.load %arg6[%c0_257, %c0_258] : memref<128x4xf32, #tpu.memory_space<vmem>>, vector<128x4xf32>
    %c0_259 = arith.constant 0 : index
    %c0_260 = arith.constant 0 : index
    %177 = vector.load %arg4[%c0_259, %c0_260] : memref<1x4xf32, #tpu.memory_space<vmem>>, vector<1x4xf32>
    %178 = vector.broadcast %177 : vector<1x4xf32> to vector<128x4xf32>
    %179 = arith.addf %176, %178 : vector<128x4xf32>
    %180 = vector.shape_cast %179 : vector<128x4xf32> to vector<8x16x4xf32>
    %c0_261 = arith.constant 0 : index
    %c0_262 = arith.constant 0 : index
    %c1_263 = arith.constant 1 : index
    %c0_264 = arith.constant 0 : index
    %c4_265 = arith.constant 4 : index
    %181 = vector.load %arg5[%c0_261, %c0_262, %c1_263, %c0_264, %c4_265] : memref<1x8x2x16x8xf32, #tpu.memory_space<vmem>>, vector<1x8x1x16x4xf32>
    %182 = vector.shape_cast %181 : vector<1x8x1x16x4xf32> to vector<8x16x4xf32>
    %183 = vector.shape_cast %180 : vector<8x16x4xf32> to vector<1x8x1x16x4xf32>
    tpu.vector_store %arg5[%c0_261, %c0_262, %c1_263, %c0_264, %c4_265], %183 {strides = array<i32>} : memref<1x8x2x16x8xf32, #tpu.memory_space<vmem>>, vector<1x8x1x16x4xf32>,
    return
  }
  func.func @transform_0(%arg0: i32, %arg1: i32) -> (i32, i32, i32, i32, i32) {
    %c0_i32 = arith.constant 0 : i32
    %c0_i32_0 = arith.constant 0 : i32
    %c0_i32_1 = arith.constant 0 : i32
    %c0_i32_2 = arith.constant 0 : i32
    return %arg0, %arg1, %c0_i32, %c0_i32_0, %c0_i32_1 : i32, i32, i32, i32, i32
  }
  func.func @transform_1(%arg0: i32, %arg1: i32) -> (i32, i32, i32, i32) {
    %c0_i32 = arith.constant 0 : i32
    %c0_i32_0 = arith.constant 0 : i32
    %c0_i32_1 = arith.constant 0 : i32
    %c0_i32_2 = arith.constant 0 : i32
    %c0_i32_3 = arith.constant 0 : i32
    return %c0_i32, %c0_i32_0, %c0_i32_1, %c0_i32_2 : i32, i32, i32, i32
  }
  func.func @transform_2(%arg0: i32, %arg1: i32) -> (i32, i32) {
    %c0_i32 = arith.constant 0 : i32
    %c0_i32_0 = arith.constant 0 : i32
    %c0_i32_1 = arith.constant 0 : i32
    return %c0_i32, %c0_i32_0 : i32, i32
  }
  func.func @transform_3(%arg0: i32, %arg1: i32) -> (i32, i32, i32, i32, i32) {
    %c0_i32 = arith.constant 0 : i32
    %c0_i32_0 = arith.constant 0 : i32
    %c0_i32_1 = arith.constant 0 : i32
    %c0_i32_2 = arith.constant 0 : i32
    return %arg0, %arg1, %c0_i32, %c0_i32_0, %c0_i32_1 : i32, i32, i32, i32, i32
  }
}

</mosaic_0001>

<bundles_post_ra>
// kernel: upsample_forward.1
= control target key start
LH: loop header
LB: loop body
LE: loop exit
PB: predicated region body
PF: predicated region fallthrough
CT: control target
= control target key end

     0   :  { %s6240_s12 = smov 0   ;;  %s6242_s13 = smov 0   ;;  %s7707_s0 = inlined_call_operand.vmem [shape: f32[2,2,10,18,4], index: 0, kind: input, shape index: {}]   ;;  %s7708_s1 = inlined_call_operand.vmem [shape: f32[4,4,4,4], index: 1, kind: input, shape index: {}]   ;;  %s7709_s2 = inlined_call_operand.vmem [shape: f32[1,4], index: 2, kind: input, shape index: {}]   ;;  %s7710_s3 = inlined_call_operand.vmem [shape: f32[2,16,2,16,8], index: 3, kind: output, shape index: {}]  }
   0x1   :  { %s6244_s14 = smov 0   ;;  %s6246_s15 = smov 0  }
   0x2   :  { %s6248_s16 = smov 0  }
   0x3 LB: > { %s22_s17 = sadd.s32 1, %s6208_s14  ;;  %s25_s18 = sadd.s32 1, %s6212_s15  ;;  %s6216_s16 = sphi %s6248_s16, %s13_s16   ;;  %s6212_s15 = sphi %s6246_s15, %s7715_s15   ;;  %s6208_s14 = sphi %s6244_s14, %s7714_s14   ;;  %s6204_s13 = sphi %s6242_s13, %s7713_s13   ;;  %s6200_s12 = sphi %s6240_s12, %s7712_s12  }
   0x4   : > { %p23_p0 = scmp.ge.s32.totalorder %s22_s17, 2  ;;  %p4922_p1 = scmp.ge.s32.totalorder %s6216_s16, 1 }
   0x5   : > { %p157_p2 = scmp.lt.s32.totalorder %s6216_s16, 5 }
   0x6   : > { %s7717_s17 = smov (%p23_p0, %s22_s17), 0  ;;  %s7719_s18 = smov (!%p23_p0, %s25_s18), %s6212_s15 }
   0x7   : > { %p158_p3 = pnand %p4922_p1, %p157_p2  ;;  %p27_p4 = scmp.ge.s32.totalorder %s7719_s18, 2 }
   0x8   : > { %v259_v0 = vld [vmem:[%s7708_s1] sm:$0xf] (!%p158_p3)  ;;  %vm308_vm0 = vcmask (!%p158_p3), 1043456   ;;  %p190_p5 = scmp.lt.s32.totalorder (!%p158_p3), %s6204_s13, 1  ;;  %p192_p6 = scmp.lt.s32.totalorder (!%p158_p3), %s6200_s12, 1  ;;  %vm210_vm1 = vcmask (!%p158_p3), 31744  }
   0x9   : > { %s7721_s18 = smov (%p27_p4, %s7719_s18), 0  ;;  %161 = sbr.rel (%p158_p3) target bundleno = 631 (0x277), region = 32 }
   0xa   : > { %5717 = vmatprep.subr.msk.mxu0 (!%p158_p3), %vm308_vm0, %v259_v0  ;;  %v4979_v1 = vld [vmem:[%s7708_s1 + $0x8] sm:$0xf] (!%p158_p3)  ;;  %v4945_v2 = vld [vmem:[%s7708_s1 + $0x4] sm:$0xf] (!%p158_p3)  ;;  %v5013_v3 = vld [vmem:[%s7708_s1 + $0xc] sm:$0xf] (!%p158_p3) }
   0xb   : > { %5718 = vmatpush3.msk.msra.mxu0 (!%p158_p3), %vm308_vm0, %v259_v0  ;;  %5743 = vmatprep.subr.msk.mxu1 (!%p158_p3), %vm308_vm0, %v4945_v2  ;;  %v6309_v7 = vld [vmem:[%s7708_s1 + $0x10] sm:$0xf] (!%p158_p3)  ;;  %v6339_v13 = vld [vmem:[%s7708_s1 + $0x14] sm:$0xf] (!%p158_p3)  ;;  %v5084_v38 = vld [vmem:[%s7708_s1 + $0x18] sm:$0xf] (!%p158_p3) }
   0xc   : > { %5769 = vmatprep.subr.msk.mxu0 (!%p158_p3), %vm308_vm0, %v4979_v1  ;;  %5744 = vmatpush3.msk.msra.mxu1 (!%p158_p3), %vm308_vm0, %v4945_v2  ;;  %v5118_v39 = vld [vmem:[%s7708_s1 + $0x1c] sm:$0xf] (!%p158_p3)  ;;  %v6564_v45 = vld [vmem:[%s7708_s1 + $0x20] sm:$0xf] (!%p158_p3)  ;;  %v6582_v48 = vld [vmem:[%s7708_s1 + $0x24] sm:$0xf] (!%p158_p3) }
   0xd   : > { %5795 = vmatprep.subr.msk.mxu1 (!%p158_p3), %vm308_vm0, %v5013_v3  ;;  %v6218_v54 = vmov (!%p158_p3), 0.0   ;;  %v5221_v63 = vld [vmem:[%s7708_s1 + $0x28] sm:$0xf] (!%p158_p3)  ;;  %v5255_v0 = vld [vmem:[%s7708_s1 + $0x2c] sm:$0xf] (!%p158_p3)  ;;  %s4924_s20 = sshll.u32 (!%p158_p3), %s6200_s12, 3 }
   0xe   : > { %212 = vst.msk [vmem:[#allocation2 + $0x8] sm:$0xff] (!%p158_p3), %vm210_vm1, %v6218_v54  ;;  %211 = vst.msk [vmem:[#allocation2] sm:$0xff] (!%p158_p3), %vm210_vm1, %v6218_v54  ;;  %p7095_p7 = scmp.lt.s32.totalorder (!%p158_p3), %s4924_s20, 15  ;;  %vm2498_vm2 = vcmask (!%p158_p3), 64544  }
   0xf   : > { %213 = vst.msk [vmem:[#allocation2 + $0x10] sm:$0xff] (!%p158_p3), %vm210_vm1, %v6218_v54  ;;  %214 = vst.msk [vmem:[#allocation2 + $0x18] sm:$0xff] (!%p158_p3), %vm210_vm1, %v6218_v54 }
  0x10   : > { %s7723_s13 = smov (!%p190_p5, %s6204_s13), 1  ;;  %215 = vst.msk [vmem:[#allocation2 + $0x20] sm:$0xff] %vm210_vm1, %v6218_v54  ;;  %216 = vst.msk [vmem:[#allocation2 + $0x28] sm:$0xff] %vm210_vm1, %v6218_v54  ;;  %s7725_s20 = smov (!%p7095_p7, %s4924_s20), 15 }
  0x11   : > { %s193_s27 = scalar_select %p192_p6, %s6200_s12, 1  ;;  %217 = vst.msk [vmem:[#allocation2 + $0x30] sm:$0xff] %vm210_vm1, %v6218_v54  ;;  %218 = vst.msk [vmem:[#allocation2 + $0x38] sm:$0xff] %vm210_vm1, %v6218_v54 }
  0x12   : > { %s6134_s28 = smul.u32 60, %s7723_s13  ;;  %219 = vst.msk [vmem:[#allocation2 + $0x40] sm:$0xff] %vm210_vm1, %v6218_v54  ;;  %220 = vst.msk [vmem:[#allocation2 + $0x48] sm:$0xff] %vm210_vm1, %v6218_v54  ;;  %s4925_s12 = sshll.u32 %s7725_s20, 2 }
  0x13   : > { %s6133_s29 = smul.u32 30, %s193_s27  ;;  %221 = vst.msk [vmem:[#allocation2 + $0x50] sm:$0xff] %vm210_vm1, %v6218_v54  ;;  %222 = vst.msk [vmem:[#allocation2 + $0x58] sm:$0xff] %vm210_vm1, %v6218_v54  ;;  %s4926_s22 = sshll.u32 %s7723_s13, 6 }
  0x14   : > { %223 = vst.msk [vmem:[#allocation2 + $0x60] sm:$0xff] %vm210_vm1, %v6218_v54  ;;  %224 = vst.msk [vmem:[#allocation2 + $0x68] sm:$0xff] %vm210_vm1, %v6218_v54 }
  0x15   : > { %s196_s30 = sadd.s32 %s6134_s28, %s6133_s29  ;;  %225 = vst.msk [vmem:[#allocation2 + $0x70] sm:$0xff] %vm210_vm1, %v6218_v54  ;;  %226 = vst.msk [vmem:[#allocation2 + $0x78] sm:$0xff] %vm210_vm1, %v6218_v54 }
  0x16   : > { %s4923_s4 = sshll.u32 %s196_s30, 3  ;;  %s6219_s30 = smov 4  }
  0x17   : > { %s6298_s7 = scalar_lea.vmem %s7707_s0, %s4923_s4 }
  0x18   : > { %v227_v4 = vld [vmem:[%s6298_s7] sm:$0xff]  ;;  %v228_v5 = vld [vmem:[%s6298_s7 + $0x8] sm:$0xff]  ;;  %v6303_v6 = vld [vmem:[%s6298_s7 + $0x18] sm:$0xff] }
  0x19   : > { %5719 = vmatprep.mubr.msk.f32.mxu0 %vm210_vm1, %v227_v4  ;;  %v6313_v8 = vld [vmem:[%s6298_s7 + $0x1] sm:$0xff]  ;;  %v6316_v9 = vld [vmem:[%s6298_s7 + $0x9] sm:$0xff]  ;;  %v6330_v12 = vld [vmem:[%s6298_s7 + $0x19] sm:$0xff] }
  0x1a   : > { %5720 = vmatmul.mubr.msk.f32.vlgmr.msra.gmra.mrb[0].mxu0 %vm210_vm1, %v228_v5  ;;  %v6322_v10 = vld [vmem:[%s6298_s7 + $0x20] sm:$0xff]  ;;  %v6325_v11 = vld [vmem:[%s6298_s7 + $0x30] sm:$0xff]  ;;  %5745 = vmatprep.mubr.msk.f32.mxu1 %vm210_vm1, %v6313_v8  ;;  %v6350_v15 = vld [vmem:[%s6298_s7 + $0x38] sm:$0xff] }
  0x1b   : > { %5770 = vmatpush3.msk.msra.mxu0 %vm308_vm0, %v4979_v1  ;;  %5722 = vmatprep.mubr.msk.f32.mxu0 %vm210_vm1, %v6303_v6  ;;  %v6345_v14 = vld [vmem:[%s6298_s7 + $0x21] sm:$0xff]  ;;  %v6355_v16 = vld [vmem:[%s6298_s7 + $0x31] sm:$0xff]  ;;  %v6369_v18 = vld [vmem:[%s6298_s7 + $0x39] sm:$0xff] }
  0x1c   : > { %5821 = vmatprep.subr.msk.mxu0 %vm308_vm0, %v6309_v7  ;;  %5746 = vmatmul.mubr.msk.f32.vlgmr.msra.gmra.mrb[0].mxu1 %vm210_vm1, %v6316_v9  ;;  %v6358_v17 = vld [vmem:[%s6298_s7 + $0x48] sm:$0xff]  ;;  %v6374_v19 = vld [vmem:[%s6298_s7 + $0x50] sm:$0xff]  ;;  %v6380_v21 = vld [vmem:[%s6298_s7 + $0x60] sm:$0xff] }
  0x1d   : > { %5796 = vmatpush3.msk.msra.mxu1 %vm308_vm0, %v5013_v3  ;;  %5748 = vmatprep.mubr.msk.f32.mxu1 %vm210_vm1, %v6330_v12  ;;  %v6377_v20 = vld [vmem:[%s6298_s7 + $0x49] sm:$0xff]  ;;  %v6389_v22 = vld [vmem:[%s6298_s7 + $0x51] sm:$0xff]  ;;  %v6397_v24 = vld [vmem:[%s6298_s7 + $0x61] sm:$0xff] }
  0x1e   : > { %5723 = vmatmul.mubr.msk.f32.gmra.mrb[2].mxu0 %vm210_vm1, %v6322_v10  ;;  %5847 = vmatprep.subr.msk.mxu1 %vm308_vm0, %v6339_v13  ;;  %v6394_v23 = vld [vmem:[%s6298_s7 + $0x68] sm:$0xff]  ;;  %v6400_v25 = vld [vmem:[%s6298_s7 + $0x78] sm:$0xff]  ;;  %v6414_v27 = vld [vmem:[%s6298_s7 + $0x80] sm:$0xff] }
  0x1f   : > { %5725 = vmatprep.mubr.msk.f32.mxu0 %vm210_vm1, %v6325_v11  ;;  %v6409_v26 = vld [vmem:[%s6298_s7 + $0x69] sm:$0xff]  ;;  %v6417_v28 = vld [vmem:[%s6298_s7 + $0x79] sm:$0xff]  ;;  %v6429_v30 = vld [vmem:[%s6298_s7 + $0x81] sm:$0xff] }
  0x20   : > { %5749 = vmatmul.mubr.msk.f32.gmra.mrb[2].mxu1 %vm210_vm1, %v6345_v14  ;;  %v6420_v29 = vld [vmem:[%s6298_s7 + $0x90] sm:$0xff]  ;;  %v6434_v31 = vld [vmem:[%s6298_s7 + $0x98] sm:$0xff]  ;;  %v6440_v33 = vld [vmem:[%s6298_s7 + $0xa8] sm:$0xff] }
  0x21   : > { %5751 = vmatprep.mubr.msk.f32.mxu1 %vm210_vm1, %v6355_v16  ;;  %v6437_v32 = vld [vmem:[%s6298_s7 + $0x91] sm:$0xff]  ;;  %v6449_v34 = vld [vmem:[%s6298_s7 + $0x99] sm:$0xff]  ;;  %v6457_v36 = vld [vmem:[%s6298_s7 + $0xa9] sm:$0xff] }
  0x22   : > { %5726 = vmatmul.mubr.msk.f32.gmra.mrb[4].mxu0 %vm210_vm1, %v6350_v15  ;;  %v6454_v35 = vld [vmem:[%s6298_s7 + $0xb0] sm:$0xff]  ;;  %v6531_v40 = vld [vmem:[%s6298_s7 + $0xc0] sm:$0xff]  ;;  %v6542_v41 = vld [vmem:[%s6298_s7 + $0xc8] sm:$0xff] }
  0x23   : > { %5728 = vmatprep.mubr.msk.f32.mxu0 %vm210_vm1, %v6358_v17  ;;  %v6466_v37 = vld [vmem:[%s6298_s7 + $0xb1] sm:$0xff]  ;;  %v6545_v42 = vld [vmem:[%s6298_s7 + $0xc1] sm:$0xff]  ;;  %v6554_v43 = vld [vmem:[%s6298_s7 + $0xc9] sm:$0xff] }
  0x24   : > { %5752 = vmatmul.mubr.msk.f32.gmra.mrb[4].mxu1 %vm210_vm1, %v6369_v18  ;;  %v1609_v44 = vld [vmem:[%s6298_s7 + $0x2] sm:$0xff]  ;;  %v1610_v46 = vld [vmem:[%s6298_s7 + $0xa] sm:$0xff]  ;;  %v6574_v47 = vld [vmem:[%s6298_s7 + $0x1a] sm:$0xff] }
  0x25   : > { %5754 = vmatprep.mubr.msk.f32.mxu1 %vm210_vm1, %v6377_v20  ;;  %v6588_v49 = vld [vmem:[%s6298_s7 + $0x22] sm:$0xff]  ;;  %v6595_v50 = vld [vmem:[%s6298_s7 + $0x32] sm:$0xff]  ;;  %v6606_v51 = vld [vmem:[%s6298_s7 + $0x3a] sm:$0xff] }
  0x26   : > { %5729 = vmatmul.mubr.msk.f32.gmra.mrb[6].mxu0 %vm210_vm1, %v6374_v19  ;;  %v6611_v52 = vld [vmem:[%s6298_s7 + $0x4a] sm:$0xff]  ;;  %v6620_v53 = vld [vmem:[%s6298_s7 + $0x52] sm:$0xff]  ;;  %v6657_v55 = vld [vmem:[%s6298_s7 + $0x62] sm:$0xff] }
  0x27   : > { %5731 = vmatprep.mubr.msk.f32.mxu0 %vm210_vm1, %v6380_v21  ;;  %v6666_v56 = vld [vmem:[%s6298_s7 + $0x6a] sm:$0xff]  ;;  %v6671_v57 = vld [vmem:[%s6298_s7 + $0x7a] sm:$0xff]  ;;  %v6680_v58 = vld [vmem:[%s6298_s7 + $0x82] sm:$0xff] }
  0x28   : > { %5755 = vmatmul.mubr.msk.f32.gmra.mrb[6].mxu1 %vm210_vm1, %v6389_v22  ;;  %v6685_v59 = vld [vmem:[%s6298_s7 + $0x92] sm:$0xff]  ;;  %v6694_v60 = vld [vmem:[%s6298_s7 + $0x9a] sm:$0xff]  ;;  %v6699_v61 = vld [vmem:[%s6298_s7 + $0xaa] sm:$0xff] }
  0x29   : > { %5757 = vmatprep.mubr.msk.f32.mxu1 %vm210_vm1, %v6397_v24  ;;  %v6708_v62 = vld [vmem:[%s6298_s7 + $0xb2] sm:$0xff]  ;;  %v6781_v1 = vld [vmem:[%s6298_s7 + $0xc2] sm:$0xff]  ;;  %v6790_v2 = vld [vmem:[%s6298_s7 + $0xca] sm:$0xff] }
  0x2a   : > { %5732 = vmatmul.mubr.msk.f32.gmra.mrb[8].mxu0 %vm210_vm1, %v6394_v23  ;;  %v5306_v3 = vld [vmem:[%s7708_s1 + $0x30] sm:$0xf]  ;;  %v5340_v4 = vld [vmem:[%s7708_s1 + $0x34] sm:$0xf]  ;;  %v5374_v5 = vld [vmem:[%s7708_s1 + $0x38] sm:$0xf] }
  0x2b   : > { %5734 = vmatprep.mubr.msk.f32.mxu0 %vm210_vm1, %v6400_v25 }
  0x2c   : > { %5758 = vmatmul.mubr.msk.f32.gmra.mrb[8].mxu1 %vm210_vm1, %v6409_v26 }
  0x2d   : > { %5760 = vmatprep.mubr.msk.f32.mxu1 %vm210_vm1, %v6417_v28 }
  0x2e   : > { %5735 = vmatmul.mubr.msk.f32.gmra.mrb[10].mxu0 %vm210_vm1, %v6414_v27 }
  0x2f   : > { %5737 = vmatprep.mubr.msk.f32.mxu0 %vm210_vm1, %v6420_v29 }
  0x30   : > { %5761 = vmatmul.mubr.msk.f32.gmra.mrb[10].mxu1 %vm210_vm1, %v6429_v30 }
  0x31   : > { %5763 = vmatprep.mubr.msk.f32.mxu1 %vm210_vm1, %v6437_v32 }
  0x32   : > { %5738 = vmatmul.mubr.msk.f32.gmra.mrb[12].mxu0 %vm210_vm1, %v6434_v31 }
  0x33   : > { %5740 = vmatprep.mubr.msk.f32.mxu0 %vm210_vm1, %v6440_v33 }
  0x34   : > { %5764 = vmatmul.mubr.msk.f32.gmra.mrb[12].mxu1 %vm210_vm1, %v6449_v34 }
  0x35   : > { %5766 = vmatprep.mubr.msk.f32.mxu1 %vm210_vm1, %v6457_v36 }
  0x36   : > { %5741 = vmatmul.mubr.msk.f32.gmra.mrb[14].mxu0 %vm210_vm1, %v6454_v35 }
  0x37   : > { %5771 = vmatprep.mubr.msk.f32.mxu0 %vm210_vm1, %v6303_v6 }
  0x38   : > { %5767 = vmatmul.mubr.msk.f32.gmra.mrb[14].mxu1 %vm210_vm1, %v6466_v37 }
  0x39   : > { %5797 = vmatprep.mubr.msk.f32.mxu1 %vm210_vm1, %v6330_v12 }
  0x3a   : > { %5772 = vmatmul.mubr.msk.f32.vlgmr.msra.gmra.mrb[16].mxu0 %vm210_vm1, %v6322_v10 }
  0x3b   : > { %5822 = vmatpush3.msk.msra.mxu0 %vm308_vm0, %v6309_v7  ;;  %5774 = vmatprep.mubr.msk.f32.mxu0 %vm210_vm1, %v6325_v11  ;;  %v5219_v7 = vld [vmem:[%s6298_s7 + $0xd8] sm:$0xff] }
  0x3c   : > { %5873 = vmatprep.subr.msk.mxu0 %vm308_vm0, %v5084_v38  ;;  %5798 = vmatmul.mubr.msk.f32.vlgmr.msra.gmra.mrb[16].mxu1 %vm210_vm1, %v6345_v14 }
  0x3d   : > { %5848 = vmatpush3.msk.msra.mxu1 %vm308_vm0, %v6339_v13  ;;  %5800 = vmatprep.mubr.msk.f32.mxu1 %vm210_vm1, %v6355_v16 }
  0x3e   : > { %5775 = vmatmul.mubr.msk.f32.gmra.mrb[18].mxu0 %vm210_vm1, %v6350_v15  ;;  %5899 = vmatprep.subr.msk.mxu1 %vm308_vm0, %v5118_v39 }
  0x3f   : > { %5777 = vmatprep.mubr.msk.f32.mxu0 %vm210_vm1, %v6358_v17 }
  0x40   : > { %5801 = vmatmul.mubr.msk.f32.gmra.mrb[18].mxu1 %vm210_vm1, %v6369_v18 }
  0x41   : > { %5803 = vmatprep.mubr.msk.f32.mxu1 %vm210_vm1, %v6377_v20 }
  0x42   : > { %5778 = vmatmul.mubr.msk.f32.gmra.mrb[20].mxu0 %vm210_vm1, %v6374_v19 }
  0x43   : > { %5780 = vmatprep.mubr.msk.f32.mxu0 %vm210_vm1, %v6380_v21 }
  0x44   : > { %5804 = vmatmul.mubr.msk.f32.gmra.mrb[20].mxu1 %vm210_vm1, %v6389_v22 }
  0x45   : > { %5806 = vmatprep.mubr.msk.f32.mxu1 %vm210_vm1, %v6397_v24 }
  0x46   : > { %5781 = vmatmul.mubr.msk.f32.gmra.mrb[22].mxu0 %vm210_vm1, %v6394_v23 }
  0x47   : > { %5783 = vmatprep.mubr.msk.f32.mxu0 %vm210_vm1, %v6400_v25 }
  0x48   : > { %5807 = vmatmul.mubr.msk.f32.gmra.mrb[22].mxu1 %vm210_vm1, %v6409_v26 }
  0x49   : > { %5809 = vmatprep.mubr.msk.f32.mxu1 %vm210_vm1, %v6417_v28 }
  0x4a   : > { %5784 = vmatmul.mubr.msk.f32.gmra.mrb[24].mxu0 %vm210_vm1, %v6414_v27 }
  0x4b   : > { %5786 = vmatprep.mubr.msk.f32.mxu0 %vm210_vm1, %v6420_v29 }
  0x4c   : > { %5810 = vmatmul.mubr.msk.f32.gmra.mrb[24].mxu1 %vm210_vm1, %v6429_v30 }
  0x4d   : > { %5812 = vmatprep.mubr.msk.f32.mxu1 %vm210_vm1, %v6437_v32 }
  0x4e   : > { %5787 = vmatmul.mubr.msk.f32.gmra.mrb[26].mxu0 %vm210_vm1, %v6434_v31 }
  0x4f   : > { %5789 = vmatprep.mubr.msk.f32.mxu0 %vm210_vm1, %v6440_v33 }
  0x50   : > { %5813 = vmatmul.mubr.msk.f32.gmra.mrb[26].mxu1 %vm210_vm1, %v6449_v34 }
  0x51   : > { %5815 = vmatprep.mubr.msk.f32.mxu1 %vm210_vm1, %v6457_v36 }
  0x52   : > { %5790 = vmatmul.mubr.msk.f32.gmra.mrb[28].mxu0 %vm210_vm1, %v6454_v35 }
  0x53   : > { %5792 = vmatprep.mubr.msk.f32.mxu0 %vm210_vm1, %v6531_v40 }
  0x54   : > { %5816 = vmatmul.mubr.msk.f32.gmra.mrb[28].mxu1 %vm210_vm1, %v6466_v37 }
  0x55   : > { %5818 = vmatprep.mubr.msk.f32.mxu1 %vm210_vm1, %v6545_v42 }
  0x56   : > { %5793 = vmatmul.mubr.msk.f32.gmra.mrb[30].mxu0 %vm210_vm1, %v6542_v41 }
  0x57   : > { %5823 = vmatprep.mubr.msk.f32.mxu0 %vm210_vm1, %v6313_v8  ;;  %v5220_v8 = vld [vmem:[%s6298_s7 + $0xe0] sm:$0xff] }
  0x58   : > { %5819 = vmatmul.mubr.msk.f32.gmra.mrb[30].mxu1 %vm210_vm1, %v6554_v43 }
  0x59   : > { %5849 = vmatprep.mubr.msk.f32.mxu1 %vm210_vm1, %v1609_v44 }
  0x5a   : > { %5824 = vmatmul.mubr.msk.f32.vlgmr.msra.gmra.mrb[32].mxu0 %vm210_vm1, %v6316_v9  ;;  %v6936_v9 = vld [vmem:[%s6298_s7 + $0xd9] sm:$0xff] }
  0x5b   : > { %5874 = vmatpush3.msk.msra.mxu0 %vm308_vm0, %v5084_v38  ;;  %5826 = vmatprep.mubr.msk.f32.mxu0 %vm210_vm1, %v6330_v12 }
  0x5c   : > { %5925 = vmatprep.subr.msk.mxu0 %vm308_vm0, %v6564_v45  ;;  %5850 = vmatmul.mubr.msk.f32.vlgmr.msra.gmra.mrb[32].mxu1 %vm210_vm1, %v1610_v46 }
  0x5d   : > { %5900 = vmatpush3.msk.msra.mxu1 %vm308_vm0, %v5118_v39  ;;  %5852 = vmatprep.mubr.msk.f32.mxu1 %vm210_vm1, %v6574_v47  ;;  %v249_v39 = vld [vmem:[#allocation2 + $0x30] sm:$0xff] }
  0x5e   : > { %5827 = vmatmul.mubr.msk.f32.gmra.mrb[34].mxu0 %vm210_vm1, %v6345_v14  ;;  %5951 = vmatprep.subr.msk.mxu1 %vm308_vm0, %v6582_v48 }
  0x5f   : > { %5829 = vmatprep.mubr.msk.f32.mxu0 %vm210_vm1, %v6355_v16 }
  0x60   : > { %5853 = vmatmul.mubr.msk.f32.gmra.mrb[34].mxu1 %vm210_vm1, %v6588_v49 }
  0x61   : > { %5855 = vmatprep.mubr.msk.f32.mxu1 %vm210_vm1, %v6595_v50 }
  0x62   : > { %5830 = vmatmul.mubr.msk.f32.gmra.mrb[36].mxu0 %vm210_vm1, %v6369_v18 }
  0x63   : > { %5832 = vmatprep.mubr.msk.f32.mxu0 %vm210_vm1, %v6377_v20 }
  0x64   : > { %5856 = vmatmul.mubr.msk.f32.gmra.mrb[36].mxu1 %vm210_vm1, %v6606_v51 }
  0x65   : > { %5858 = vmatprep.mubr.msk.f32.mxu1 %vm210_vm1, %v6611_v52 }
  0x66   : > { %5833 = vmatmul.mubr.msk.f32.gmra.mrb[38].mxu0 %vm210_vm1, %v6389_v22 }
  0x67   : > { %5835 = vmatprep.mubr.msk.f32.mxu0 %vm210_vm1, %v6397_v24 }
  0x68   : > { %5859 = vmatmul.mubr.msk.f32.gmra.mrb[38].mxu1 %vm210_vm1, %v6620_v53 }
  0x69   : > { %5861 = vmatprep.mubr.msk.f32.mxu1 %vm210_vm1, %v6657_v55 }
  0x6a   : > { %5836 = vmatmul.mubr.msk.f32.gmra.mrb[40].mxu0 %vm210_vm1, %v6409_v26 }
  0x6b   : > { %5838 = vmatprep.mubr.msk.f32.mxu0 %vm210_vm1, %v6417_v28 }
  0x6c   : > { %5862 = vmatmul.mubr.msk.f32.gmra.mrb[40].mxu1 %vm210_vm1, %v6666_v56 }
  0x6d   : > { %5864 = vmatprep.mubr.msk.f32.mxu1 %vm210_vm1, %v6671_v57 }
  0x6e   : > { %5839 = vmatmul.mubr.msk.f32.gmra.mrb[42].mxu0 %vm210_vm1, %v6429_v30 }
  0x6f   : > { %5841 = vmatprep.mubr.msk.f32.mxu0 %vm210_vm1, %v6437_v32 }
  0x70   : > { %5865 = vmatmul.mubr.msk.f32.gmra.mrb[42].mxu1 %vm210_vm1, %v6680_v58 }
  0x71   : > { %5867 = vmatprep.mubr.msk.f32.mxu1 %vm210_vm1, %v6685_v59 }
  0x72   : > { %5842 = vmatmul.mubr.msk.f32.gmra.mrb[44].mxu0 %vm210_vm1, %v6449_v34 }
  0x73   : > { %5844 = vmatprep.mubr.msk.f32.mxu0 %vm210_vm1, %v6457_v36 }
  0x74   : > { %5868 = vmatmul.mubr.msk.f32.gmra.mrb[44].mxu1 %vm210_vm1, %v6694_v60 }
  0x75   : > { %5870 = vmatprep.mubr.msk.f32.mxu1 %vm210_vm1, %v6699_v61 }
  0x76   : > { %5845 = vmatmul.mubr.msk.f32.gmra.mrb[46].mxu0 %vm210_vm1, %v6466_v37 }
  0x77   : > { %5875 = vmatprep.mubr.msk.f32.mxu0 %vm210_vm1, %v6330_v12 }
  0x78   : > { %5871 = vmatmul.mubr.msk.f32.gmra.mrb[46].mxu1 %vm210_vm1, %v6708_v62 }
  0x79   : > { %5901 = vmatprep.mubr.msk.f32.mxu1 %vm210_vm1, %v6574_v47 }
  0x7a   : > { %5876 = vmatmul.mubr.msk.f32.vlgmr.msra.gmra.mrb[48].mxu0 %vm210_vm1, %v6345_v14 }
  0x7b   : > { %5926 = vmatpush3.msk.msra.mxu0 %vm308_vm0, %v6564_v45  ;;  %5878 = vmatprep.mubr.msk.f32.mxu0 %vm210_vm1, %v6355_v16 }
  0x7c   : > { %5977 = vmatprep.subr.msk.mxu0 %vm308_vm0, %v5221_v63  ;;  %5902 = vmatmul.mubr.msk.f32.vlgmr.msra.gmra.mrb[48].mxu1 %vm210_vm1, %v6588_v49 }
  0x7d   : > { %5952 = vmatpush3.msk.msra.mxu1 %vm308_vm0, %v6582_v48  ;;  %5904 = vmatprep.mubr.msk.f32.mxu1 %vm210_vm1, %v6595_v50  ;;  %v252_v48 = vld [vmem:[#allocation2 + $0x48] sm:$0xff] }
  0x7e   : > { %5879 = vmatmul.mubr.msk.f32.gmra.mrb[50].mxu0 %vm210_vm1, %v6369_v18  ;;  %6003 = vmatprep.subr.msk.mxu1 %vm308_vm0, %v5255_v0 }
  0x7f   : > { %5881 = vmatprep.mubr.msk.f32.mxu0 %vm210_vm1, %v6377_v20 }
  0x80   : > { %5905 = vmatmul.mubr.msk.f32.gmra.mrb[50].mxu1 %vm210_vm1, %v6606_v51 }
  0x81   : > { %5907 = vmatprep.mubr.msk.f32.mxu1 %vm210_vm1, %v6611_v52 }
  0x82   : > { %5882 = vmatmul.mubr.msk.f32.gmra.mrb[52].mxu0 %vm210_vm1, %v6389_v22 }
  0x83   : > { %5884 = vmatprep.mubr.msk.f32.mxu0 %vm210_vm1, %v6397_v24 }
  0x84   : > { %5908 = vmatmul.mubr.msk.f32.gmra.mrb[52].mxu1 %vm210_vm1, %v6620_v53 }
  0x85   : > { %5910 = vmatprep.mubr.msk.f32.mxu1 %vm210_vm1, %v6657_v55 }
  0x86   : > { %5885 = vmatmul.mubr.msk.f32.gmra.mrb[54].mxu0 %vm210_vm1, %v6409_v26 }
  0x87   : > { %5887 = vmatprep.mubr.msk.f32.mxu0 %vm210_vm1, %v6417_v28 }
  0x88   : > { %5911 = vmatmul.mubr.msk.f32.gmra.mrb[54].mxu1 %vm210_vm1, %v6666_v56 }
  0x89   : > { %5913 = vmatprep.mubr.msk.f32.mxu1 %vm210_vm1, %v6671_v57 }
  0x8a   : > { %5888 = vmatmul.mubr.msk.f32.gmra.mrb[56].mxu0 %vm210_vm1, %v6429_v30 }
  0x8b   : > { %5890 = vmatprep.mubr.msk.f32.mxu0 %vm210_vm1, %v6437_v32 }
  0x8c   : > { %5914 = vmatmul.mubr.msk.f32.gmra.mrb[56].mxu1 %vm210_vm1, %v6680_v58 }
  0x8d   : > { %5916 = vmatprep.mubr.msk.f32.mxu1 %vm210_vm1, %v6685_v59 }
  0x8e   : > { %5891 = vmatmul.mubr.msk.f32.gmra.mrb[58].mxu0 %vm210_vm1, %v6449_v34 }
  0x8f   : > { %5893 = vmatprep.mubr.msk.f32.mxu0 %vm210_vm1, %v6457_v36 }
  0x90   : > { %5917 = vmatmul.mubr.msk.f32.gmra.mrb[58].mxu1 %vm210_vm1, %v6694_v60 }
  0x91   : > { %5919 = vmatprep.mubr.msk.f32.mxu1 %vm210_vm1, %v6699_v61 }
  0x92   : > { %5894 = vmatmul.mubr.msk.f32.gmra.mrb[60].mxu0 %vm210_vm1, %v6466_v37 }
  0x93   : > { %5896 = vmatprep.mubr.msk.f32.mxu0 %vm210_vm1, %v6545_v42 }
  0x94   : > { %5920 = vmatmul.mubr.msk.f32.gmra.mrb[60].mxu1 %vm210_vm1, %v6708_v62 }
  0x95   : > { %5922 = vmatprep.mubr.msk.f32.mxu1 %vm210_vm1, %v6781_v1 }
  0x96   : > { %5897 = vmatmul.mubr.msk.f32.gmra.mrb[62].mxu0 %vm210_vm1, %v6554_v43 }
  0x97   : > { %5927 = vmatprep.mubr.msk.f32.mxu0 %vm210_vm1, %v6303_v6  ;;  %v5408_v6 = vld [vmem:[%s7708_s1 + $0x3c] sm:$0xf] }
  0x98   : > { %5923 = vmatmul.mubr.msk.f32.gmra.mrb[62].mxu1 %vm210_vm1, %v6790_v2 }
  0x99   : > { %5953 = vmatprep.mubr.msk.f32.mxu1 %vm210_vm1, %v6330_v12 }
  0x9a   : > { %5928 = vmatmul.mubr.msk.f32.vlgmr.msra.gmra.mrb[64].mxu0 %vm210_vm1, %v6322_v10  ;;  %v6944_v10 = vld [vmem:[%s6298_s7 + $0xe1] sm:$0xff] }
  0x9b   : > { %5978 = vmatpush3.msk.msra.mxu0 %vm308_vm0, %v5221_v63  ;;  %5930 = vmatprep.mubr.msk.f32.mxu0 %vm210_vm1, %v6325_v11 }
  0x9c   : > { %6029 = vmatprep.subr.msk.mxu0 %vm308_vm0, %v5306_v3  ;;  %5954 = vmatmul.mubr.msk.f32.vlgmr.msra.gmra.mrb[64].mxu1 %vm210_vm1, %v6345_v14 }
  0x9d   : > { %6004 = vmatpush3.msk.msra.mxu1 %vm308_vm0, %v5255_v0  ;;  %5956 = vmatprep.mubr.msk.f32.mxu1 %vm210_vm1, %v6355_v16 }
  0x9e   : > { %5931 = vmatmul.mubr.msk.f32.gmra.mrb[66].mxu0 %vm210_vm1, %v6350_v15  ;;  %6055 = vmatprep.subr.msk.mxu1 %vm308_vm0, %v5340_v4 }
  0x9f   : > { %5933 = vmatprep.mubr.msk.f32.mxu0 %vm210_vm1, %v6358_v17 }
  0xa0   : > { %5957 = vmatmul.mubr.msk.f32.gmra.mrb[66].mxu1 %vm210_vm1, %v6369_v18 }
  0xa1   : > { %5959 = vmatprep.mubr.msk.f32.mxu1 %vm210_vm1, %v6377_v20 }
  0xa2   : > { %5934 = vmatmul.mubr.msk.f32.gmra.mrb[68].mxu0 %vm210_vm1, %v6374_v19 }
  0xa3   : > { %5936 = vmatprep.mubr.msk.f32.mxu0 %vm210_vm1, %v6380_v21 }
  0xa4   : > { %5960 = vmatmul.mubr.msk.f32.gmra.mrb[68].mxu1 %vm210_vm1, %v6389_v22 }
  0xa5   : > { %5962 = vmatprep.mubr.msk.f32.mxu1 %vm210_vm1, %v6397_v24 }
  0xa6   : > { %5937 = vmatmul.mubr.msk.f32.gmra.mrb[70].mxu0 %vm210_vm1, %v6394_v23 }
  0xa7   : > { %5939 = vmatprep.mubr.msk.f32.mxu0 %vm210_vm1, %v6400_v25 }
  0xa8   : > { %5963 = vmatmul.mubr.msk.f32.gmra.mrb[70].mxu1 %vm210_vm1, %v6409_v26 }
  0xa9   : > { %5965 = vmatprep.mubr.msk.f32.mxu1 %vm210_vm1, %v6417_v28 }
  0xaa   : > { %5940 = vmatmul.mubr.msk.f32.gmra.mrb[72].mxu0 %vm210_vm1, %v6414_v27 }
  0xab   : > { %5942 = vmatprep.mubr.msk.f32.mxu0 %vm210_vm1, %v6420_v29 }
  0xac   : > { %5966 = vmatmul.mubr.msk.f32.gmra.mrb[72].mxu1 %vm210_vm1, %v6429_v30 }
  0xad   : > { %5968 = vmatprep.mubr.msk.f32.mxu1 %vm210_vm1, %v6437_v32 }
  0xae   : > { %5943 = vmatmul.mubr.msk.f32.gmra.mrb[74].mxu0 %vm210_vm1, %v6434_v31 }
  0xaf   : > { %5945 = vmatprep.mubr.msk.f32.mxu0 %vm210_vm1, %v6440_v33 }
  0xb0   : > { %5969 = vmatmul.mubr.msk.f32.gmra.mrb[74].mxu1 %vm210_vm1, %v6449_v34 }
  0xb1   : > { %5971 = vmatprep.mubr.msk.f32.mxu1 %vm210_vm1, %v6457_v36 }
  0xb2   : > { %5946 = vmatmul.mubr.msk.f32.gmra.mrb[76].mxu0 %vm210_vm1, %v6454_v35 }
  0xb3   : > { %5948 = vmatprep.mubr.msk.f32.mxu0 %vm210_vm1, %v6531_v40 }
  0xb4   : > { %5972 = vmatmul.mubr.msk.f32.gmra.mrb[76].mxu1 %vm210_vm1, %v6466_v37 }
  0xb5   : > { %5974 = vmatprep.mubr.msk.f32.mxu1 %vm210_vm1, %v6545_v42 }
  0xb6   : > { %5949 = vmatmul.mubr.msk.f32.gmra.mrb[78].mxu0 %vm210_vm1, %v6542_v41 }
  0xb7   : > { %5979 = vmatprep.mubr.msk.f32.mxu0 %vm210_vm1, %v6325_v11  ;;  %v244_v11 = vld [vmem:[#allocation2 + $0x8] sm:$0xff] }
  0xb8   : > { %5975 = vmatmul.mubr.msk.f32.gmra.mrb[78].mxu1 %vm210_vm1, %v6554_v43 }
  0xb9   : > { %6005 = vmatprep.mubr.msk.f32.mxu1 %vm210_vm1, %v6355_v16 }
  0xba   : > { %5980 = vmatmul.mubr.msk.f32.vlgmr.msra.gmra.mrb[80].mxu0 %vm210_vm1, %v6350_v15 }
  0xbb   : > { %6030 = vmatpush3.msk.msra.mxu0 %vm308_vm0, %v5306_v3  ;;  %5982 = vmatprep.mubr.msk.f32.mxu0 %vm210_vm1, %v6358_v17  ;;  %v251_v3 = vld [vmem:[#allocation2 + $0x40] sm:$0xff] }
  0xbc   : > { %6081 = vmatprep.subr.msk.mxu0 %vm308_vm0, %v5374_v5  ;;  %6006 = vmatmul.mubr.msk.f32.vlgmr.msra.gmra.mrb[80].mxu1 %vm210_vm1, %v6369_v18 }
  0xbd   : > { %6056 = vmatpush3.msk.msra.mxu1 %vm308_vm0, %v5340_v4  ;;  %6008 = vmatprep.mubr.msk.f32.mxu1 %vm210_vm1, %v6377_v20  ;;  %v5362_v4 = vld [vmem:[%s6298_s7 + $0x61] sm:$0xff] }
  0xbe   : > { %5983 = vmatmul.mubr.msk.f32.gmra.mrb[82].mxu0 %vm210_vm1, %v6374_v19  ;;  %6107 = vmatprep.subr.msk.mxu1 %vm308_vm0, %v5408_v6  ;;  %v246_v19 = vld [vmem:[#allocation2 + $0x18] sm:$0xff] }
  0xbf   : > { %5985 = vmatprep.mubr.msk.f32.mxu0 %vm210_vm1, %v6380_v21 }
  0xc0   : > { %6009 = vmatmul.mubr.msk.f32.gmra.mrb[82].mxu1 %vm210_vm1, %v6389_v22 }
  0xc1   : > { %6011 = vmatprep.mubr.msk.f32.mxu1 %vm210_vm1, %v6397_v24 }
  0xc2   : > { %5986 = vmatmul.mubr.msk.f32.gmra.mrb[84].mxu0 %vm210_vm1, %v6394_v23 }
  0xc3   : > { %5988 = vmatprep.mubr.msk.f32.mxu0 %vm210_vm1, %v6400_v25 }
  0xc4   : > { %6012 = vmatmul.mubr.msk.f32.gmra.mrb[84].mxu1 %vm210_vm1, %v6409_v26 }
  0xc5   : > { %6014 = vmatprep.mubr.msk.f32.mxu1 %vm210_vm1, %v6417_v28 }
  0xc6   : > { %5989 = vmatmul.mubr.msk.f32.gmra.mrb[86].mxu0 %vm210_vm1, %v6414_v27  ;;  %v248_v27 = vld [vmem:[#allocation2 + $0x28] sm:$0xff] }
  0xc7   : > { %5991 = vmatprep.mubr.msk.f32.mxu0 %vm210_vm1, %v6420_v29 }
  0xc8   : > { %6015 = vmatmul.mubr.msk.f32.gmra.mrb[86].mxu1 %vm210_vm1, %v6429_v30 }
  0xc9   : > { %6017 = vmatprep.mubr.msk.f32.mxu1 %vm210_vm1, %v6437_v32 }
  0xca   : > { %5992 = vmatmul.mubr.msk.f32.gmra.mrb[88].mxu0 %vm210_vm1, %v6434_v31 }
  0xcb   : > { %5994 = vmatprep.mubr.msk.f32.mxu0 %vm210_vm1, %v6440_v33 }
  0xcc   : > { %6018 = vmatmul.mubr.msk.f32.gmra.mrb[88].mxu1 %vm210_vm1, %v6449_v34 }
  0xcd   : > { %6020 = vmatprep.mubr.msk.f32.mxu1 %vm210_vm1, %v6457_v36 }
  0xce   : > { %5995 = vmatmul.mubr.msk.f32.gmra.mrb[90].mxu0 %vm210_vm1, %v6454_v35 }
  0xcf   : > { %5997 = vmatprep.mubr.msk.f32.mxu0 %vm210_vm1, %v6531_v40  ;;  %v5360_v40 = vld [vmem:[%s6298_s7 + $0x49] sm:$0xff] }
  0xd0   : > { %6021 = vmatmul.mubr.msk.f32.gmra.mrb[90].mxu1 %vm210_vm1, %v6466_v37 }
  0xd1   : > { %6023 = vmatprep.mubr.msk.f32.mxu1 %vm210_vm1, %v6545_v42 }
  0xd2   : > { %5998 = vmatmul.mubr.msk.f32.gmra.mrb[92].mxu0 %vm210_vm1, %v6542_v41 }
  0xd3   : > { %6000 = vmatprep.mubr.msk.f32.mxu0 %vm210_vm1, %v5219_v7 }
  0xd4   : > { %6024 = vmatmul.mubr.msk.f32.gmra.mrb[92].mxu1 %vm210_vm1, %v6554_v43 }
  0xd5   : > { %6026 = vmatprep.mubr.msk.f32.mxu1 %vm210_vm1, %v6936_v9 }
  0xd6   : > { %6001 = vmatmul.mubr.msk.f32.gmra.mrb[94].mxu0 %vm210_vm1, %v5220_v8 }
  0xd7   : > { %6031 = vmatprep.mubr.msk.f32.mxu0 %vm210_vm1, %v6330_v12  ;;  %v243_v12 = vld [vmem:[#allocation2] sm:$0xff] }
  0xd8   : > { %6027 = vmatmul.mubr.msk.f32.gmra.mrb[94].mxu1 %vm210_vm1, %v6944_v10 }
  0xd9   : > { %6057 = vmatprep.mubr.msk.f32.mxu1 %vm210_vm1, %v6574_v47 }
  0xda   : > { %6032 = vmatmul.mubr.msk.f32.vlgmr.msra.gmra.mrb[96].mxu0 %vm210_vm1, %v6345_v14 }
  0xdb   : > { %6082 = vmatpush3.msk.msra.mxu0 %vm308_vm0, %v5374_v5  ;;  %6034 = vmatprep.mubr.msk.f32.mxu0 %vm210_vm1, %v6355_v16 }
  0xdc   : > { %6058 = vmatmul.mubr.msk.f32.vlgmr.msra.gmra.mrb[96].mxu1 %vm210_vm1, %v6588_v49  ;;  %v5361_v49 = vld [vmem:[%s6298_s7 + $0x51] sm:$0xff] }
  0xdd   : > { %6108 = vmatpush3.msk.msra.mxu1 %vm308_vm0, %v5408_v6  ;;  %6060 = vmatprep.mubr.msk.f32.mxu1 %vm210_vm1, %v6595_v50 }
  0xde   : > { %6035 = vmatmul.mubr.msk.f32.gmra.mrb[98].mxu0 %vm210_vm1, %v6369_v18 }
  0xdf   : > { %6037 = vmatprep.mubr.msk.f32.mxu0 %vm210_vm1, %v6377_v20  ;;  %v245_v20 = vld [vmem:[#allocation2 + $0x10] sm:$0xff] }
  0xe0   : > { %6061 = vmatmul.mubr.msk.f32.gmra.mrb[98].mxu1 %vm210_vm1, %v6606_v51 }
  0xe1   : > { %6063 = vmatprep.mubr.msk.f32.mxu1 %vm210_vm1, %v6611_v52 }
  0xe2   : > { %6038 = vmatmul.mubr.msk.f32.gmra.mrb[100].mxu0 %vm210_vm1, %v6389_v22 }
  0xe3   : > { %6040 = vmatprep.mubr.msk.f32.mxu0 %vm210_vm1, %v6397_v24 }
  0xe4   : > { %6064 = vmatmul.mubr.msk.f32.gmra.mrb[100].mxu1 %vm210_vm1, %v6620_v53 }
  0xe5   : > { %6066 = vmatprep.mubr.msk.f32.mxu1 %vm210_vm1, %v6657_v55 }
  0xe6   : > { %6041 = vmatmul.mubr.msk.f32.gmra.mrb[102].mxu0 %vm210_vm1, %v6409_v26 }
  0xe7   : > { %6043 = vmatprep.mubr.msk.f32.mxu0 %vm210_vm1, %v6417_v28  ;;  %v247_v28 = vld [vmem:[#allocation2 + $0x20] sm:$0xff] }
  0xe8   : > { %6067 = vmatmul.mubr.msk.f32.gmra.mrb[102].mxu1 %vm210_vm1, %v6666_v56 }
  0xe9   : > { %6069 = vmatprep.mubr.msk.f32.mxu1 %vm210_vm1, %v6671_v57 }
  0xea   : > { %6044 = vmatmul.mubr.msk.f32.gmra.mrb[104].mxu0 %vm210_vm1, %v6429_v30 }
  0xeb   : > { %6046 = vmatprep.mubr.msk.f32.mxu0 %vm210_vm1, %v6437_v32 }
  0xec   : > { %6070 = vmatmul.mubr.msk.f32.gmra.mrb[104].mxu1 %vm210_vm1, %v6680_v58 }
  0xed   : > { %v5721_v13 = vpop.f32.mrb[0].mxu0  ;;  %6072 = vmatprep.mubr.msk.f32.mxu1 %vm210_vm1, %v6685_v59 }
  0xee   : > { %v458_v14 = vadd.f32 %v5721_v13, %v244_v11  ;;  %v378_v15 = vpop.f32.mrb[1].mxu0  ;;  %6047 = vmatmul.mubr.msk.f32.gmra.mrb[106].mxu0 %vm210_vm1, %v6449_v34  ;;  %v254_v13 = vld [vmem:[#allocation2 + $0x58] sm:$0xff] }
  0xef   : > { %v457_v17 = vadd.f32 %v378_v15, %v243_v12  ;;  %6049 = vmatprep.mubr.msk.f32.mxu0 %vm210_vm1, %v6457_v36  ;;  %v5747_v21 = vpop.f32.mrb[0].mxu1  ;;  %v250_v36 = vld [vmem:[#allocation2 + $0x38] sm:$0xff] }
  0xf0   : > { %474 = vst.msk [vmem:[#allocation2 + $0x8] sm:$0xff] %vm210_vm1, %v458_v14  ;;  %v640_v23 = vpop.f32.mrb[1].mxu1  ;;  %6073 = vmatmul.mubr.msk.f32.gmra.mrb[106].mxu1 %vm210_vm1, %v6694_v60  ;;  %v5363_v14 = vld [vmem:[%s6298_s7 + $0x69] sm:$0xff] }
  0xf1   : > { %473 = vst.msk [vmem:[#allocation2] sm:$0xff] %vm210_vm1, %v457_v17  ;;  %v5724_v22 = vpop.f32.mrb[2].mxu0  ;;  %6075 = vmatprep.mubr.msk.f32.mxu1 %vm210_vm1, %v6699_v61  ;;  %v253_v17 = vld [vmem:[#allocation2 + $0x50] sm:$0xff] }
  0xf2   : > { %v460_v24 = vadd.f32 %v5724_v22, %v246_v19  ;;  %v388_v25 = vpop.f32.mrb[3].mxu0  ;;  %6050 = vmatmul.mubr.msk.f32.gmra.mrb[108].mxu0 %vm210_vm1, %v6466_v37  ;;  %v5364_v19 = vld [vmem:[%s6298_s7 + $0x79] sm:$0xff] }
  0xf3   : > { %v459_v26 = vadd.f32 %v388_v25, %v245_v20  ;;  %6052 = vmatprep.mubr.msk.f32.mxu0 %vm210_vm1, %v6545_v42  ;;  %v5750_v29 = vpop.f32.mrb[2].mxu1 }
  0xf4   : > { %476 = vst.msk [vmem:[#allocation2 + $0x18] sm:$0xff] %vm210_vm1, %v460_v24  ;;  %v650_v31 = vpop.f32.mrb[3].mxu1  ;;  %6076 = vmatmul.mubr.msk.f32.gmra.mrb[108].mxu1 %vm210_vm1, %v6708_v62 }
  0xf5   : > { %475 = vst.msk [vmem:[#allocation2 + $0x10] sm:$0xff] %vm210_vm1, %v459_v26  ;;  %v5727_v30 = vpop.f32.mrb[4].mxu0  ;;  %6078 = vmatprep.mubr.msk.f32.mxu1 %vm210_vm1, %v6781_v1 }
  0xf6   : > { %v462_v32 = vadd.f32 %v5727_v30, %v248_v27  ;;  %v398_v33 = vpop.f32.mrb[5].mxu0  ;;  %6053 = vmatmul.mubr.msk.f32.gmra.mrb[110].mxu0 %vm210_vm1, %v6554_v43  ;;  %v256_v27 = vld [vmem:[#allocation2 + $0x68] sm:$0xff]  ;;  %v255_v30 = vld [vmem:[#allocation2 + $0x60] sm:$0xff] }
  0xf7   : > { %v461_v34 = vadd.f32 %v398_v33, %v247_v28  ;;  %v506_v35 = vld [vmem:[#allocation2 + $0x8] sm:$0xff]  ;;  %6083 = vmatprep.mubr.msk.f32.mxu0 %vm210_vm1, %v6355_v16  ;;  %v5753_v41 = vpop.f32.mrb[4].mxu1 }
  0xf8   : > { %478 = vst.msk [vmem:[#allocation2 + $0x28] sm:$0xff] %vm210_vm1, %v462_v32  ;;  %v720_v37 = vadd.f32 %v5747_v21, %v506_v35  ;;  %v505_v38 = vld [vmem:[#allocation2] sm:$0xff]  ;;  %v660_v44 = vpop.f32.mrb[5].mxu1  ;;  %6079 = vmatmul.mubr.msk.f32.gmra.mrb[110].mxu1 %vm210_vm1, %v6790_v2 }
  0xf9   : > { %477 = vst.msk [vmem:[#allocation2 + $0x20] sm:$0xff] %vm210_vm1, %v461_v34  ;;  %v719_v42 = vadd.f32 %v640_v23, %v505_v38  ;;  %v5730_v43 = vpop.f32.mrb[6].mxu0  ;;  %6109 = vmatprep.mubr.msk.f32.mxu1 %vm210_vm1, %v6595_v50  ;;  %v5365_v28 = vld [vmem:[%s6298_s7 + $0x81] sm:$0xff] }
  0xfa   : > { %736 = vst.msk [vmem:[#allocation2 + $0x8] sm:$0xff] %vm210_vm1, %v720_v37  ;;  %v464_v16 = vadd.f32 %v5730_v43, %v250_v36  ;;  %v408_v45 = vpop.f32.mrb[7].mxu0  ;;  %6084 = vmatmul.mubr.msk.f32.vlgmr.msra.gmra.mrb[112].mxu0 %vm210_vm1, %v6369_v18  ;;  %v5368_v43 = vld [vmem:[%s6298_s7 + $0xa9] sm:$0xff] }
  0xfb   : > { %735 = vst.msk [vmem:[#allocation2] sm:$0xff] %vm210_vm1, %v719_v42  ;;  %v463_v46 = vadd.f32 %v408_v45, %v249_v39  ;;  %v508_v47 = vld [vmem:[#allocation2 + $0x18] sm:$0xff]  ;;  %6086 = vmatprep.mubr.msk.f32.mxu0 %vm210_vm1, %v5360_v40  ;;  %v5756_v5 = vpop.f32.mrb[6].mxu1  ;;  %v257_v42 = vld [vmem:[#allocation2 + $0x70] sm:$0xff] }
  0xfc   : > { %480 = vst.msk [vmem:[#allocation2 + $0x38] sm:$0xff] %vm210_vm1, %v464_v16  ;;  %v722_v63 = vadd.f32 %v5750_v29, %v508_v47  ;;  %v507_v0 = vld [vmem:[#allocation2 + $0x10] sm:$0xff]  ;;  %v670_v6 = vpop.f32.mrb[7].mxu1  ;;  %6110 = vmatmul.mubr.msk.f32.vlgmr.msra.gmra.mrb[112].mxu1 %vm210_vm1, %v6606_v51  ;;  %v258_v39 = vld [vmem:[#allocation2 + $0x78] sm:$0xff] }
  0xfd   : > { %479 = vst.msk [vmem:[#allocation2 + $0x30] sm:$0xff] %vm210_vm1, %v463_v46  ;;  %v721_v18 = vadd.f32 %v650_v31, %v507_v0  ;;  %v5733_v50 = vpop.f32.mrb[8].mxu0  ;;  %6112 = vmatprep.mubr.msk.f32.mxu1 %vm210_vm1, %v6611_v52  ;;  %v5366_v31 = vld [vmem:[%s6298_s7 + $0x91] sm:$0xff]  ;;  %v5367_v40 = vld [vmem:[%s6298_s7 + $0x99] sm:$0xff] }
  0xfe   : > { %738 = vst.msk [vmem:[#allocation2 + $0x18] sm:$0xff] %vm210_vm1, %v722_v63  ;;  %v466_v7 = vadd.f32 %v5733_v50, %v252_v48  ;;  %v418_v8 = vpop.f32.mrb[9].mxu0  ;;  %6087 = vmatmul.mubr.msk.f32.gmra.mrb[114].mxu0 %vm210_vm1, %v5361_v49  ;;  %v5369_v63 = vld [vmem:[%s6298_s7 + $0xb1] sm:$0xff] }
  0xff   : > { %737 = vst.msk [vmem:[#allocation2 + $0x10] sm:$0xff] %vm210_vm1, %v721_v18  ;;  %v465_v11 = vadd.f32 %v418_v8, %v251_v3  ;;  %v510_v12 = vld [vmem:[#allocation2 + $0x28] sm:$0xff]  ;;  %6089 = vmatprep.mubr.msk.f32.mxu0 %vm210_vm1, %v5362_v4  ;;  %v5759_v20 = vpop.f32.mrb[8].mxu1 }
 0x100   : > { %482 = vst.msk [vmem:[#allocation2 + $0x48] sm:$0xff] %vm210_vm1, %v466_v7  ;;  %v724_v51 = vadd.f32 %v5753_v41, %v510_v12  ;;  %v509_v15 = vld [vmem:[#allocation2 + $0x20] sm:$0xff]  ;;  %v680_v22 = vpop.f32.mrb[9].mxu1  ;;  %6113 = vmatmul.mubr.msk.f32.gmra.mrb[114].mxu1 %vm210_vm1, %v6620_v53 }
 0x101   : > { %481 = vst.msk [vmem:[#allocation2 + $0x40] sm:$0xff] %vm210_vm1, %v465_v11  ;;  %v723_v21 = vadd.f32 %v660_v44, %v509_v15  ;;  %v5736_v52 = vpop.f32.mrb[10].mxu0  ;;  %6115 = vmatprep.mubr.msk.f32.mxu1 %vm210_vm1, %v6657_v55  ;;  %v5370_v3 = vld [vmem:[%s6298_s7 + $0xc1] sm:$0xff] }
 0x102   : > { %740 = vst.msk [vmem:[#allocation2 + $0x28] sm:$0xff] %vm210_vm1, %v724_v51  ;;  %v468_v23 = vadd.f32 %v5736_v52, %v254_v13  ;;  %v428_v24 = vpop.f32.mrb[11].mxu0  ;;  %6090 = vmatmul.mubr.msk.f32.gmra.mrb[116].mxu0 %vm210_vm1, %v5363_v14  ;;  %v769_v18 = vld [vmem:[#allocation2 + $0x8] sm:$0xff]  ;;  %v768_v7 = vld [vmem:[#allocation2] sm:$0xff] }
 0x103   : > { %739 = vst.msk [vmem:[#allocation2 + $0x20] sm:$0xff] %vm210_vm1, %v723_v21  ;;  %v467_v25 = vadd.f32 %v428_v24, %v253_v17  ;;  %v512_v26 = vld [vmem:[#allocation2 + $0x38] sm:$0xff]  ;;  %6092 = vmatprep.mubr.msk.f32.mxu0 %vm210_vm1, %v5364_v19  ;;  %v5762_v32 = vpop.f32.mrb[10].mxu1  ;;  %v5371_v13 = vld [vmem:[%s6298_s7 + $0xc9] sm:$0xff] }
 0x104   : > { %484 = vst.msk [vmem:[#allocation2 + $0x58] sm:$0xff] %vm210_vm1, %v468_v23  ;;  %v726_v53 = vadd.f32 %v5756_v5, %v512_v26  ;;  %v511_v29 = vld [vmem:[#allocation2 + $0x30] sm:$0xff]  ;;  %v690_v34 = vpop.f32.mrb[11].mxu1  ;;  %6116 = vmatmul.mubr.msk.f32.gmra.mrb[116].mxu1 %vm210_vm1, %v6666_v56 }
 0x105   : > { %483 = vst.msk [vmem:[#allocation2 + $0x50] sm:$0xff] %vm210_vm1, %v467_v25  ;;  %v725_v33 = vadd.f32 %v670_v6, %v511_v29  ;;  %v5739_v55 = vpop.f32.mrb[12].mxu0  ;;  %6118 = vmatprep.mubr.msk.f32.mxu1 %vm210_vm1, %v6671_v57  ;;  %v771_v15 = vld [vmem:[#allocation2 + $0x18] sm:$0xff] }
 0x106   : > { %742 = vst.msk [vmem:[#allocation2 + $0x38] sm:$0xff] %vm210_vm1, %v726_v53  ;;  %v470_v35 = vadd.f32 %v5739_v55, %v256_v27  ;;  %v438_v36 = vpop.f32.mrb[13].mxu0  ;;  %6093 = vmatmul.mubr.msk.f32.gmra.mrb[118].mxu0 %vm210_vm1, %v5365_v28  ;;  %v770_v21 = vld [vmem:[#allocation2 + $0x10] sm:$0xff] }
 0x107   : > { %741 = vst.msk [vmem:[#allocation2 + $0x30] sm:$0xff] %vm210_vm1, %v725_v33  ;;  %v469_v37 = vadd.f32 %v438_v36, %v255_v30  ;;  %v514_v38 = vld [vmem:[#allocation2 + $0x48] sm:$0xff]  ;;  %6095 = vmatprep.mubr.msk.f32.mxu0 %vm210_vm1, %v5366_v31  ;;  %v5765_v44 = vpop.f32.mrb[12].mxu1 }
 0x108   : > { %486 = vst.msk [vmem:[#allocation2 + $0x68] sm:$0xff] %vm210_vm1, %v470_v35  ;;  %v728_v56 = vadd.f32 %v5759_v20, %v514_v38  ;;  %v513_v41 = vld [vmem:[#allocation2 + $0x40] sm:$0xff]  ;;  %v700_v45 = vpop.f32.mrb[13].mxu1  ;;  %6119 = vmatmul.mubr.msk.f32.gmra.mrb[118].mxu1 %vm210_vm1, %v6680_v58 }
 0x109   : > { %485 = vst.msk [vmem:[#allocation2 + $0x60] sm:$0xff] %vm210_vm1, %v469_v37  ;;  %v727_v16 = vadd.f32 %v680_v22, %v513_v41  ;;  %v5742_v57 = vpop.f32.mrb[14].mxu0  ;;  %6121 = vmatprep.mubr.msk.f32.mxu1 %vm210_vm1, %v6685_v59  ;;  %v773_v27 = vld [vmem:[#allocation2 + $0x28] sm:$0xff] }
 0x10a   : > { %744 = vst.msk [vmem:[#allocation2 + $0x48] sm:$0xff] %vm210_vm1, %v728_v56  ;;  %v472_v46 = vadd.f32 %v5742_v57, %v258_v39  ;;  %v448_v47 = vpop.f32.mrb[15].mxu0  ;;  %6096 = vmatmul.mubr.msk.f32.gmra.mrb[120].mxu0 %vm210_vm1, %v5367_v40  ;;  %v772_v29 = vld [vmem:[#allocation2 + $0x20] sm:$0xff] }
 0x10b   : > { %743 = vst.msk [vmem:[#allocation2 + $0x40] sm:$0xff] %vm210_vm1, %v727_v16  ;;  %v471_v48 = vadd.f32 %v448_v47, %v257_v42  ;;  %v516_v49 = vld [vmem:[#allocation2 + $0x58] sm:$0xff]  ;;  %6098 = vmatprep.mubr.msk.f32.mxu0 %vm210_vm1, %v5368_v43  ;;  %v5768_v4 = vpop.f32.mrb[14].mxu1  ;;  %v5407_v31 = vld [vmem:[%s6298_s7 + $0xe2] sm:$0xff] }
 0x10c   : > { %488 = vst.msk [vmem:[#allocation2 + $0x78] sm:$0xff] %vm210_vm1, %v472_v46  ;;  %v730_v58 = vadd.f32 %v5762_v32, %v516_v49  ;;  %v515_v0 = vld [vmem:[#allocation2 + $0x50] sm:$0xff]  ;;  %v710_v50 = vpop.f32.mrb[15].mxu1  ;;  %6122 = vmatmul.mubr.msk.f32.gmra.mrb[120].mxu1 %vm210_vm1, %v6694_v60 }
 0x10d   : > { %487 = vst.msk [vmem:[#allocation2 + $0x70] sm:$0xff] %vm210_vm1, %v471_v48  ;;  %v729_v5 = vadd.f32 %v690_v34, %v515_v0  ;;  %v5773_v59 = vpop.f32.mrb[16].mxu0  ;;  %6124 = vmatprep.mubr.msk.f32.mxu1 %vm210_vm1, %v6699_v61  ;;  %v775_v36 = vld [vmem:[#allocation2 + $0x38] sm:$0xff]  ;;  %v7143_v0 = vld [vmem:[%s7709_s2] ss:$0 sm:$0xff] }
 0x10e   : > { %746 = vst.msk [vmem:[#allocation2 + $0x58] sm:$0xff] %vm210_vm1, %v730_v58  ;;  %v983_v6 = vadd.f32 %v5773_v59, %v769_v18  ;;  %v903_v8 = vpop.f32.mrb[17].mxu0  ;;  %6099 = vmatmul.mubr.msk.f32.gmra.mrb[122].mxu0 %vm210_vm1, %v5369_v63  ;;  %v774_v39 = vld [vmem:[#allocation2 + $0x30] sm:$0xff] }
 0x10f   : > { %745 = vst.msk [vmem:[#allocation2 + $0x50] sm:$0xff] %vm210_vm1, %v729_v5  ;;  %v518_v11 = vld [vmem:[#allocation2 + $0x68] sm:$0xff]  ;;  %v982_v12 = vadd.f32 %v903_v8, %v768_v7  ;;  %6101 = vmatprep.mubr.msk.f32.mxu0 %vm210_vm1, %v5370_v3  ;;  %v5799_v51 = vpop.f32.mrb[16].mxu1 }
 0x110   : > { %999 = vst.msk [vmem:[#allocation2 + $0x8] sm:$0xff] %vm210_vm1, %v983_v6  ;;  %v732_v60 = vadd.f32 %v5765_v44, %v518_v11  ;;  %v517_v14 = vld [vmem:[#allocation2 + $0x60] sm:$0xff]  ;;  %v1165_v19 = vpop.f32.mrb[17].mxu1  ;;  %6125 = vmatmul.mubr.msk.f32.gmra.mrb[122].mxu1 %vm210_vm1, %v6708_v62 }
 0x111   : > { %998 = vst.msk [vmem:[#allocation2] sm:$0xff] %vm210_vm1, %v982_v12  ;;  %v731_v61 = vadd.f32 %v700_v45, %v517_v14  ;;  %v5776_v17 = vpop.f32.mrb[18].mxu0  ;;  %6127 = vmatprep.mubr.msk.f32.mxu1 %vm210_vm1, %v6781_v1  ;;  %v5406_v62 = vld [vmem:[%s6298_s7 + $0xda] sm:$0xff]  ;;  %s7133_s7 = sadd.s32 %s4926_s22, %s4925_s12  ;;  %v777_v57 = vld [vmem:[#allocation2 + $0x48] sm:$0xff] }
 0x112   : > { %748 = vst.msk [vmem:[#allocation2 + $0x68] sm:$0xff] %vm210_vm1, %v732_v60  ;;  %v985_v20 = vadd.f32 %v5776_v17, %v771_v15  ;;  %v913_v52 = vpop.f32.mrb[19].mxu0  ;;  %6102 = vmatmul.mubr.msk.f32.gmra.mrb[124].mxu0 %vm210_vm1, %v5371_v13  ;;  %v776_v48 = vld [vmem:[#allocation2 + $0x40] sm:$0xff]  ;;  %s4927_s13 = sshll.u32 %s7133_s7, 3 }
 0x113   : > { %747 = vst.msk [vmem:[#allocation2 + $0x60] sm:$0xff] %vm210_vm1, %v731_v61  ;;  %v520_v22 = vld [vmem:[#allocation2 + $0x78] sm:$0xff]  ;;  %v984_v23 = vadd.f32 %v913_v52, %v770_v21  ;;  %6104 = vmatprep.mubr.msk.f32.mxu0 %vm210_vm1, %v6936_v9  ;;  %v5802_v26 = vpop.f32.mrb[18].mxu1  ;;  %s7150_s27 = scalar_lea.vmem %s7710_s3, %s4927_s13 }
 0x114   : > { %1001 = vst.msk [vmem:[#allocation2 + $0x18] sm:$0xff] %vm210_vm1, %v985_v20  ;;  %v734_v24 = vadd.f32 %v5768_v4, %v520_v22  ;;  %v519_v25 = vld [vmem:[#allocation2 + $0x70] sm:$0xff]  ;;  %v1175_v53 = vpop.f32.mrb[19].mxu1  ;;  %6128 = vmatmul.mubr.msk.f32.gmra.mrb[124].mxu1 %vm210_vm1, %v6790_v2 }
 0x115   : > { %1000 = vst.msk [vmem:[#allocation2 + $0x10] sm:$0xff] %vm210_vm1, %v984_v23  ;;  %v733_v1 = vadd.f32 %v710_v50, %v519_v25  ;;  %v5779_v28 = vpop.f32.mrb[20].mxu0  ;;  %6130 = vmatprep.mubr.msk.f32.mxu1 %vm210_vm1, %v5406_v62  ;;  %v779_v59 = vld [vmem:[#allocation2 + $0x58] sm:$0xff] }
 0x116   : > { %750 = vst.msk [vmem:[#allocation2 + $0x78] sm:$0xff] %vm210_vm1, %v734_v24  ;;  %v987_v9 = vadd.f32 %v5779_v28, %v773_v27  ;;  %v923_v30 = vpop.f32.mrb[21].mxu0  ;;  %6105 = vmatmul.mubr.msk.f32.gmra.mrb[126].mxu0 %vm210_vm1, %v6944_v10  ;;  %v778_v11 = vld [vmem:[#allocation2 + $0x50] sm:$0xff] }
 0x117   : > { %749 = vst.msk [vmem:[#allocation2 + $0x70] sm:$0xff] %vm210_vm1, %v733_v1  ;;  %v986_v32 = vadd.f32 %v923_v30, %v772_v29  ;;  %v1031_v33 = vld [vmem:[#allocation2 + $0x8] sm:$0xff]  ;;  %v5805_v34 = vpop.f32.mrb[20].mxu1 }
 0x118   : > { %1003 = vst.msk [vmem:[#allocation2 + $0x28] sm:$0xff] %vm210_vm1, %v987_v9  ;;  %v1245_v55 = vadd.f32 %v5799_v51, %v1031_v33  ;;  %v1030_v2 = vld [vmem:[#allocation2] sm:$0xff]  ;;  %v1185_v10 = vpop.f32.mrb[21].mxu1  ;;  %6131 = vmatmul.mubr.msk.f32.gmra.mrb[126].mxu1 %vm210_vm1, %v5407_v31 }
 0x119   : > { %1002 = vst.msk [vmem:[#allocation2 + $0x20] sm:$0xff] %vm210_vm1, %v986_v32  ;;  %v1244_v35 = vadd.f32 %v1165_v19, %v1030_v2  ;;  %v5782_v37 = vpop.f32.mrb[22].mxu0  ;;  %v781_v21 = vld [vmem:[#allocation2 + $0x68] sm:$0xff] }
 0x11a   : > { %1261 = vst.msk [vmem:[#allocation2 + $0x8] sm:$0xff] %vm210_vm1, %v1245_v55  ;;  %v989_v38 = vadd.f32 %v5782_v37, %v775_v36  ;;  %v933_v40 = vpop.f32.mrb[23].mxu0  ;;  %v780_v24 = vld [vmem:[#allocation2 + $0x60] sm:$0xff] }
 0x11b   : > { %1260 = vst.msk [vmem:[#allocation2] sm:$0xff] %vm210_vm1, %v1244_v35  ;;  %v988_v56 = vadd.f32 %v933_v40, %v774_v39  ;;  %v1033_v41 = vld [vmem:[#allocation2 + $0x18] sm:$0xff]  ;;  %v5808_v44 = vpop.f32.mrb[22].mxu1 }
 0x11c   : > { %1005 = vst.msk [vmem:[#allocation2 + $0x38] sm:$0xff] %vm210_vm1, %v989_v38  ;;  %v1247_v42 = vadd.f32 %v5802_v26, %v1033_v41  ;;  %v1032_v43 = vld [vmem:[#allocation2 + $0x10] sm:$0xff]  ;;  %v1195_v46 = vpop.f32.mrb[23].mxu1 }
 0x11d   : > { %1004 = vst.msk [vmem:[#allocation2 + $0x30] sm:$0xff] %vm210_vm1, %v988_v56  ;;  %v1246_v16 = vadd.f32 %v1175_v53, %v1032_v43  ;;  %v5785_v45 = vpop.f32.mrb[24].mxu0  ;;  %v783_v32 = vld [vmem:[#allocation2 + $0x78] sm:$0xff] }
 0x11e   : > { %1263 = vst.msk [vmem:[#allocation2 + $0x18] sm:$0xff] %vm210_vm1, %v1247_v42  ;;  %v991_v47 = vadd.f32 %v5785_v45, %v777_v57  ;;  %v943_v49 = vpop.f32.mrb[25].mxu0  ;;  %v782_v35 = vld [vmem:[#allocation2 + $0x70] sm:$0xff] }
 0x11f   : > { %1262 = vst.msk [vmem:[#allocation2 + $0x10] sm:$0xff] %vm210_vm1, %v1246_v16  ;;  %v990_v63 = vadd.f32 %v943_v49, %v776_v48  ;;  %v1035_v58 = vld [vmem:[#allocation2 + $0x28] sm:$0xff]  ;;  %v5811_v5 = vpop.f32.mrb[24].mxu1 }
 0x120   : > { %1007 = vst.msk [vmem:[#allocation2 + $0x48] sm:$0xff] %vm210_vm1, %v991_v47  ;;  %v1249_v3 = vadd.f32 %v5805_v34, %v1035_v58  ;;  %v1034_v4 = vld [vmem:[#allocation2 + $0x20] sm:$0xff]  ;;  %v1205_v6 = vpop.f32.mrb[25].mxu1 }
 0x121   : > { %1006 = vst.msk [vmem:[#allocation2 + $0x40] sm:$0xff] %vm210_vm1, %v990_v63  ;;  %v1248_v18 = vadd.f32 %v1185_v10, %v1034_v4  ;;  %v5788_v50 = vpop.f32.mrb[26].mxu0  ;;  %v1277_v7 = vld [vmem:[#allocation2 + $0x8] sm:$0xff] }
 0x122   : > { %1265 = vst.msk [vmem:[#allocation2 + $0x28] sm:$0xff] %vm210_vm1, %v1249_v3  ;;  %v993_v8 = vadd.f32 %v5788_v50, %v779_v59  ;;  %v953_v12 = vpop.f32.mrb[27].mxu0  ;;  %1332 = vst.msk [vmem:[#allocation2 + $0x8] sm:$0xff] %vm210_vm1, %v6218_v54  ;;  %v1276_v13 = vld [vmem:[#allocation2] sm:$0xff]  ;;  %v1300_v60 = vadd.f32 %v7143_v0, %v1277_v7 }
 0x123   : > { %1264 = vst.msk [vmem:[#allocation2 + $0x20] sm:$0xff] %vm210_vm1, %v1248_v18  ;;  %v992_v14 = vadd.f32 %v953_v12, %v778_v11  ;;  %v1037_v51 = vld [vmem:[#allocation2 + $0x38] sm:$0xff]  ;;  %1331 = vst.msk [vmem:[#allocation2] sm:$0xff] %vm210_vm1, %v6218_v54  ;;  %v1299_v61 = vadd.f32 %v7143_v0, %v1276_v13  ;;  %v5814_v19 = vpop.f32.mrb[26].mxu1 }
 0x124   : > { %1009 = vst.msk [vmem:[#allocation2 + $0x58] sm:$0xff] %vm210_vm1, %v993_v8  ;;  %v1251_v15 = vadd.f32 %v5808_v44, %v1037_v51  ;;  %v1036_v17 = vld [vmem:[#allocation2 + $0x30] sm:$0xff]  ;;  %1316 = vst.msk [vmem:[%s7150_s27 + $0x8] sm:$0xff] %vm210_vm1, %v1300_v60  ;;  %v1215_v22 = vpop.f32.mrb[27].mxu1 }
 0x125   : > { %1008 = vst.msk [vmem:[#allocation2 + $0x50] sm:$0xff] %vm210_vm1, %v992_v14  ;;  %v1250_v20 = vadd.f32 %v1195_v46, %v1036_v17  ;;  %v5791_v52 = vpop.f32.mrb[28].mxu0  ;;  %v1279_v23 = vld [vmem:[#allocation2 + $0x18] sm:$0xff]  ;;  %1315 = vst.msk [vmem:[%s7150_s27] sm:$0xff] %vm210_vm1, %v1299_v61 }
 0x126   : > { %1267 = vst.msk [vmem:[#allocation2 + $0x38] sm:$0xff] %vm210_vm1, %v1251_v15  ;;  %v995_v62 = vadd.f32 %v5791_v52, %v781_v21  ;;  %v963_v25 = vpop.f32.mrb[29].mxu0  ;;  %1334 = vst.msk [vmem:[#allocation2 + $0x18] sm:$0xff] %vm210_vm1, %v6218_v54  ;;  %v1278_v26 = vld [vmem:[#allocation2 + $0x10] sm:$0xff]  ;;  %v1302_v1 = vadd.f32 %v7143_v0, %v1279_v23 }
 0x127   : > { %1266 = vst.msk [vmem:[#allocation2 + $0x30] sm:$0xff] %vm210_vm1, %v1250_v20  ;;  %v994_v27 = vadd.f32 %v963_v25, %v780_v24  ;;  %v1039_v28 = vld [vmem:[#allocation2 + $0x48] sm:$0xff]  ;;  %1333 = vst.msk [vmem:[#allocation2 + $0x10] sm:$0xff] %vm210_vm1, %v6218_v54  ;;  %v1301_v53 = vadd.f32 %v7143_v0, %v1278_v26  ;;  %v5817_v30 = vpop.f32.mrb[28].mxu1 }
 0x128   : > { %1011 = vst.msk [vmem:[#allocation2 + $0x68] sm:$0xff] %vm210_vm1, %v995_v62  ;;  %v1253_v9 = vadd.f32 %v5811_v5, %v1039_v28  ;;  %v1038_v29 = vld [vmem:[#allocation2 + $0x40] sm:$0xff]  ;;  %1318 = vst.msk [vmem:[%s7150_s27 + $0x28] sm:$0xff] %vm210_vm1, %v1302_v1  ;;  %v1225_v55 = vpop.f32.mrb[29].mxu1 }
 0x129   : > { %1010 = vst.msk [vmem:[#allocation2 + $0x60] sm:$0xff] %vm210_vm1, %v994_v27  ;;  %v1252_v31 = vadd.f32 %v1205_v6, %v1038_v29  ;;  %v5794_v33 = vpop.f32.mrb[30].mxu0  ;;  %v1281_v2 = vld [vmem:[#allocation2 + $0x28] sm:$0xff]  ;;  %1317 = vst.msk [vmem:[%s7150_s27 + $0x20] sm:$0xff] %vm210_vm1, %v1301_v53 }
 0x12a   : > { %1269 = vst.msk [vmem:[#allocation2 + $0x48] sm:$0xff] %vm210_vm1, %v1253_v9  ;;  %v997_v34 = vadd.f32 %v5794_v33, %v783_v32  ;;  %v973_v36 = vpop.f32.mrb[31].mxu0  ;;  %1336 = vst.msk [vmem:[#allocation2 + $0x28] sm:$0xff] %vm210_vm1, %v6218_v54  ;;  %v1280_v37 = vld [vmem:[#allocation2 + $0x20] sm:$0xff]  ;;  %v1304_v10 = vadd.f32 %v7143_v0, %v1281_v2  ;;  %v1364_v40 = vld [vmem:[#allocation2 + $0x8] sm:$0xff] }
 0x12b   : > { %1268 = vst.msk [vmem:[#allocation2 + $0x40] sm:$0xff] %vm210_vm1, %v1252_v31  ;;  %v996_v38 = vadd.f32 %v973_v36, %v782_v35  ;;  %v1041_v39 = vld [vmem:[#allocation2 + $0x58] sm:$0xff]  ;;  %1335 = vst.msk [vmem:[#allocation2 + $0x20] sm:$0xff] %vm210_vm1, %v6218_v54  ;;  %v1303_v56 = vadd.f32 %v7143_v0, %v1280_v37  ;;  %v1363_v43 = vld [vmem:[#allocation2] sm:$0xff]  ;;  %v5820_v44 = vpop.f32.mrb[30].mxu1 }
 0x12c   : > { %1013 = vst.msk [vmem:[#allocation2 + $0x78] sm:$0xff] %vm210_vm1, %v997_v34  ;;  %v1255_v41 = vadd.f32 %v5814_v19, %v1041_v39  ;;  %v1040_v42 = vld [vmem:[#allocation2 + $0x50] sm:$0xff]  ;;  %1320 = vst.msk [vmem:[%s7150_s27 + $0x48] sm:$0xff] %vm210_vm1, %v1304_v10  ;;  %v1235_v45 = vpop.f32.mrb[31].mxu1 }
 0x12d   : > { %1012 = vst.msk [vmem:[#allocation2 + $0x70] sm:$0xff] %vm210_vm1, %v996_v38  ;;  %v1254_v16 = vadd.f32 %v1215_v22, %v1040_v42  ;;  %v5825_v57 = vpop.f32.mrb[32].mxu0  ;;  %v1283_v46 = vld [vmem:[#allocation2 + $0x38] sm:$0xff]  ;;  %1319 = vst.msk [vmem:[%s7150_s27 + $0x40] sm:$0xff] %vm210_vm1, %v1303_v56 }
 0x12e   : > { %1271 = vst.msk [vmem:[#allocation2 + $0x58] sm:$0xff] %vm210_vm1, %v1255_v41  ;;  %v1578_v47 = vadd.f32 %v5825_v57, %v1364_v40  ;;  %v1498_v48 = vpop.f32.mrb[33].mxu0  ;;  %1338 = vst.msk [vmem:[#allocation2 + $0x38] sm:$0xff] %vm210_vm1, %v6218_v54  ;;  %v1282_v49 = vld [vmem:[#allocation2 + $0x30] sm:$0xff]  ;;  %v1306_v63 = vadd.f32 %v7143_v0, %v1283_v46  ;;  %v1366_v4 = vld [vmem:[#allocation2 + $0x18] sm:$0xff] }
 0x12f   : > { %1270 = vst.msk [vmem:[#allocation2 + $0x50] sm:$0xff] %vm210_vm1, %v1254_v16  ;;  %v1043_v58 = vld [vmem:[#allocation2 + $0x68] sm:$0xff]  ;;  %v1577_v3 = vadd.f32 %v1498_v48, %v1363_v43  ;;  %1337 = vst.msk [vmem:[#allocation2 + $0x30] sm:$0xff] %vm210_vm1, %v6218_v54  ;;  %v1305_v5 = vadd.f32 %v7143_v0, %v1282_v49  ;;  %v1365_v50 = vld [vmem:[#allocation2 + $0x10] sm:$0xff]  ;;  %v5851_v6 = vpop.f32.mrb[32].mxu1 }
 0x130   : > { %1594 = vst.msk [vmem:[#allocation2 + $0x8] sm:$0xff] %vm210_vm1, %v1578_v47  ;;  %v1257_v18 = vadd.f32 %v5817_v30, %v1043_v58  ;;  %v1042_v59 = vld [vmem:[#allocation2 + $0x60] sm:$0xff]  ;;  %1322 = vst.msk [vmem:[%s7150_s27 + $0x68] sm:$0xff] %vm210_vm1, %v1306_v63  ;;  %v1760_v11 = vpop.f32.mrb[33].mxu1 }
 0x131   : > { %1593 = vst.msk [vmem:[#allocation2] sm:$0xff] %vm210_vm1, %v1577_v3  ;;  %v1256_v7 = vadd.f32 %v1225_v55, %v1042_v59  ;;  %v5828_v8 = vpop.f32.mrb[34].mxu0  ;;  %v1285_v12 = vld [vmem:[#allocation2 + $0x48] sm:$0xff]  ;;  %1321 = vst.msk [vmem:[%s7150_s27 + $0x60] sm:$0xff] %vm210_vm1, %v1305_v5 }
 0x132   : > { %1273 = vst.msk [vmem:[#allocation2 + $0x68] sm:$0xff] %vm210_vm1, %v1257_v18  ;;  %v1580_v13 = vadd.f32 %v5828_v8, %v1366_v4  ;;  %v1508_v60 = vpop.f32.mrb[35].mxu0  ;;  %1340 = vst.msk [vmem:[#allocation2 + $0x48] sm:$0xff] %vm210_vm1, %v6218_v54  ;;  %v1284_v14 = vld [vmem:[#allocation2 + $0x40] sm:$0xff]  ;;  %v1308_v51 = vadd.f32 %v7143_v0, %v1285_v12  ;;  %v1368_v17 = vld [vmem:[#allocation2 + $0x28] sm:$0xff] }
 0x133   : > { %1272 = vst.msk [vmem:[#allocation2 + $0x60] sm:$0xff] %vm210_vm1, %v1256_v7  ;;  %v1045_v61 = vld [vmem:[#allocation2 + $0x78] sm:$0xff]  ;;  %v1579_v15 = vadd.f32 %v1508_v60, %v1365_v50  ;;  %1339 = vst.msk [vmem:[#allocation2 + $0x40] sm:$0xff] %vm210_vm1, %v6218_v54  ;;  %v1307_v19 = vadd.f32 %v7143_v0, %v1284_v14  ;;  %v1367_v52 = vld [vmem:[#allocation2 + $0x20] sm:$0xff]  ;;  %v5854_v22 = vpop.f32.mrb[34].mxu1 }
 0x134   : > { %1596 = vst.msk [vmem:[#allocation2 + $0x18] sm:$0xff] %vm210_vm1, %v1580_v13  ;;  %v1259_v20 = vadd.f32 %v5820_v44, %v1045_v61  ;;  %v1044_v21 = vld [vmem:[#allocation2 + $0x70] sm:$0xff]  ;;  %1324 = vst.msk [vmem:[%s7150_s27 + $0x88] sm:$0xff] %vm210_vm1, %v1308_v51  ;;  %v1770_v24 = vpop.f32.mrb[35].mxu1 }
 0x135   : > { %1595 = vst.msk [vmem:[#allocation2 + $0x10] sm:$0xff] %vm210_vm1, %v1579_v15  ;;  %v1258_v23 = vadd.f32 %v1235_v45, %v1044_v21  ;;  %v5831_v62 = vpop.f32.mrb[36].mxu0  ;;  %v1287_v25 = vld [vmem:[#allocation2 + $0x58] sm:$0xff]  ;;  %1323 = vst.msk [vmem:[%s7150_s27 + $0x80] sm:$0xff] %vm210_vm1, %v1307_v19 }
 0x136   : > { %1275 = vst.msk [vmem:[#allocation2 + $0x78] sm:$0xff] %vm210_vm1, %v1259_v20  ;;  %v1582_v26 = vadd.f32 %v5831_v62, %v1368_v17  ;;  %v1518_v1 = vpop.f32.mrb[37].mxu0  ;;  %1342 = vst.msk [vmem:[#allocation2 + $0x58] sm:$0xff] %vm210_vm1, %v6218_v54  ;;  %v1286_v27 = vld [vmem:[#allocation2 + $0x50] sm:$0xff]  ;;  %v1310_v28 = vadd.f32 %v7143_v0, %v1287_v25  ;;  %v1370_v29 = vld [vmem:[#allocation2 + $0x38] sm:$0xff] }
 0x137   : > { %1274 = vst.msk [vmem:[#allocation2 + $0x70] sm:$0xff] %vm210_vm1, %v1258_v23  ;;  %v1581_v53 = vadd.f32 %v1518_v1, %v1367_v52  ;;  %v1626_v9 = vld [vmem:[#allocation2 + $0x8] sm:$0xff]  ;;  %1341 = vst.msk [vmem:[#allocation2 + $0x50] sm:$0xff] %vm210_vm1, %v6218_v54  ;;  %v1309_v30 = vadd.f32 %v7143_v0, %v1286_v27  ;;  %v1369_v33 = vld [vmem:[#allocation2 + $0x30] sm:$0xff]  ;;  %v5857_v55 = vpop.f32.mrb[36].mxu1 }
 0x138   : > { %1598 = vst.msk [vmem:[#allocation2 + $0x28] sm:$0xff] %vm210_vm1, %v1582_v26  ;;  %v1840_v31 = vadd.f32 %v5851_v6, %v1626_v9  ;;  %v1625_v32 = vld [vmem:[#allocation2] sm:$0xff]  ;;  %1326 = vst.msk [vmem:[%s7150_s27 + $0xa8] sm:$0xff] %vm210_vm1, %v1310_v28  ;;  %v1780_v35 = vpop.f32.mrb[37].mxu1 }
 0x139   : > { %1597 = vst.msk [vmem:[#allocation2 + $0x20] sm:$0xff] %vm210_vm1, %v1581_v53  ;;  %v1839_v2 = vadd.f32 %v1760_v11, %v1625_v32  ;;  %v5834_v34 = vpop.f32.mrb[38].mxu0  ;;  %v1289_v36 = vld [vmem:[#allocation2 + $0x68] sm:$0xff]  ;;  %1325 = vst.msk [vmem:[%s7150_s27 + $0xa0] sm:$0xff] %vm210_vm1, %v1309_v30 }
 0x13a   : > { %1856 = vst.msk [vmem:[#allocation2 + $0x8] sm:$0xff] %vm210_vm1, %v1840_v31  ;;  %v1584_v37 = vadd.f32 %v5834_v34, %v1370_v29  ;;  %v1528_v10 = vpop.f32.mrb[39].mxu0  ;;  %1344 = vst.msk [vmem:[#allocation2 + $0x68] sm:$0xff] %vm210_vm1, %v6218_v54  ;;  %v1288_v38 = vld [vmem:[#allocation2 + $0x60] sm:$0xff]  ;;  %v1312_v39 = vadd.f32 %v7143_v0, %v1289_v36  ;;  %v1372_v41 = vld [vmem:[#allocation2 + $0x48] sm:$0xff] }
 0x13b   : > { %1855 = vst.msk [vmem:[#allocation2] sm:$0xff] %vm210_vm1, %v1839_v2  ;;  %v1583_v40 = vadd.f32 %v1528_v10, %v1369_v33  ;;  %v1628_v56 = vld [vmem:[#allocation2 + $0x18] sm:$0xff]  ;;  %1343 = vst.msk [vmem:[#allocation2 + $0x60] sm:$0xff] %vm210_vm1, %v6218_v54  ;;  %v1311_v42 = vadd.f32 %v7143_v0, %v1288_v38  ;;  %v1371_v16 = vld [vmem:[#allocation2 + $0x40] sm:$0xff]  ;;  %v5860_v57 = vpop.f32.mrb[38].mxu1 }
 0x13c   : > { %1600 = vst.msk [vmem:[#allocation2 + $0x38] sm:$0xff] %vm210_vm1, %v1584_v37  ;;  %v1842_v43 = vadd.f32 %v5854_v22, %v1628_v56  ;;  %v1627_v44 = vld [vmem:[#allocation2 + $0x10] sm:$0xff]  ;;  %1328 = vst.msk [vmem:[%s7150_s27 + $0xc8] sm:$0xff] %vm210_vm1, %v1312_v39  ;;  %v1790_v47 = vpop.f32.mrb[39].mxu1 }
 0x13d   : > { %1599 = vst.msk [vmem:[#allocation2 + $0x30] sm:$0xff] %vm210_vm1, %v1583_v40  ;;  %v1841_v45 = vadd.f32 %v1770_v24, %v1627_v44  ;;  %v5837_v46 = vpop.f32.mrb[40].mxu0  ;;  %v1291_v48 = vld [vmem:[#allocation2 + $0x78] sm:$0xff]  ;;  %1327 = vst.msk [vmem:[%s7150_s27 + $0xc0] sm:$0xff] %vm210_vm1, %v1311_v42 }
 0x13e   : > { %1858 = vst.msk [vmem:[#allocation2 + $0x18] sm:$0xff] %vm210_vm1, %v1842_v43  ;;  %v1586_v49 = vadd.f32 %v5837_v46, %v1372_v41  ;;  %v1538_v63 = vpop.f32.mrb[41].mxu0  ;;  %1346 = vst.msk [vmem:[#allocation2 + $0x78] sm:$0xff] %vm210_vm1, %v6218_v54  ;;  %v1290_v58 = vld [vmem:[#allocation2 + $0x70] sm:$0xff]  ;;  %v1314_v3 = vadd.f32 %v7143_v0, %v1291_v48  ;;  %v1374_v18 = vld [vmem:[#allocation2 + $0x58] sm:$0xff] }
 0x13f   : > { %1857 = vst.msk [vmem:[#allocation2 + $0x10] sm:$0xff] %vm210_vm1, %v1841_v45  ;;  %v1585_v4 = vadd.f32 %v1538_v63, %v1371_v16  ;;  %v1630_v5 = vld [vmem:[#allocation2 + $0x28] sm:$0xff]  ;;  %1345 = vst.msk [vmem:[#allocation2 + $0x70] sm:$0xff] %vm210_vm1, %v6218_v54  ;;  %v1313_v59 = vadd.f32 %v7143_v0, %v1290_v58  ;;  %v1373_v7 = vld [vmem:[#allocation2 + $0x50] sm:$0xff]  ;;  %v5863_v8 = vpop.f32.mrb[40].mxu1 }
 0x140   : > { %1602 = vst.msk [vmem:[#allocation2 + $0x48] sm:$0xff] %vm210_vm1, %v1586_v49  ;;  %v1844_v50 = vadd.f32 %v5857_v55, %v1630_v5  ;;  %v1629_v6 = vld [vmem:[#allocation2 + $0x20] sm:$0xff]  ;;  %1330 = vst.msk [vmem:[%s7150_s27 + $0xe8] sm:$0xff] %vm210_vm1, %v1314_v3  ;;  %v1800_v13 = vpop.f32.mrb[41].mxu1 }
 0x141   : > { %1601 = vst.msk [vmem:[#allocation2 + $0x40] sm:$0xff] %vm210_vm1, %v1585_v4  ;;  %v1843_v11 = vadd.f32 %v1780_v35, %v1629_v6  ;;  %v5840_v12 = vpop.f32.mrb[42].mxu0  ;;  %1329 = vst.msk [vmem:[%s7150_s27 + $0xe0] sm:$0xff] %vm210_vm1, %v1313_v59  ;;  %v1376_v61 = vld [vmem:[#allocation2 + $0x68] sm:$0xff] }
 0x142   : > { %1860 = vst.msk [vmem:[#allocation2 + $0x28] sm:$0xff] %vm210_vm1, %v1844_v50  ;;  %v1588_v60 = vadd.f32 %v5840_v12, %v1374_v18  ;;  %v1548_v14 = vpop.f32.mrb[43].mxu0  ;;  %v1375_v19 = vld [vmem:[#allocation2 + $0x60] sm:$0xff]  ;;  %v1888_v37 = vld [vmem:[#allocation2 + $0x8] sm:$0xff] }
 0x143   : > { %1859 = vst.msk [vmem:[#allocation2 + $0x20] sm:$0xff] %vm210_vm1, %v1843_v11  ;;  %v1587_v0 = vadd.f32 %v1548_v14, %v1373_v7  ;;  %v1632_v51 = vld [vmem:[#allocation2 + $0x38] sm:$0xff]  ;;  %v5866_v20 = vpop.f32.mrb[42].mxu1  ;;  %v1887_v40 = vld [vmem:[#allocation2] sm:$0xff] }
 0x144   : > { %1604 = vst.msk [vmem:[#allocation2 + $0x58] sm:$0xff] %vm210_vm1, %v1588_v60  ;;  %v1846_v15 = vadd.f32 %v5860_v57, %v1632_v51  ;;  %v1631_v17 = vld [vmem:[#allocation2 + $0x30] sm:$0xff]  ;;  %v1810_v22 = vpop.f32.mrb[43].mxu1 }
 0x145   : > { %1603 = vst.msk [vmem:[#allocation2 + $0x50] sm:$0xff] %vm210_vm1, %v1587_v0  ;;  %v1845_v21 = vadd.f32 %v1790_v47, %v1631_v17  ;;  %v5843_v52 = vpop.f32.mrb[44].mxu0  ;;  %v1378_v26 = vld [vmem:[#allocation2 + $0x78] sm:$0xff] }
 0x146   : > { %1862 = vst.msk [vmem:[#allocation2 + $0x38] sm:$0xff] %vm210_vm1, %v1846_v15  ;;  %v1590_v23 = vadd.f32 %v5843_v52, %v1376_v61  ;;  %v1558_v62 = vpop.f32.mrb[45].mxu0  ;;  %v1377_v28 = vld [vmem:[#allocation2 + $0x70] sm:$0xff]  ;;  %v1890_v45 = vld [vmem:[#allocation2 + $0x18] sm:$0xff] }
 0x147   : > { %1861 = vst.msk [vmem:[#allocation2 + $0x30] sm:$0xff] %vm210_vm1, %v1845_v21  ;;  %v1589_v24 = vadd.f32 %v1558_v62, %v1375_v19  ;;  %v1634_v25 = vld [vmem:[#allocation2 + $0x48] sm:$0xff]  ;;  %v5869_v53 = vpop.f32.mrb[44].mxu1  ;;  %v1889_v49 = vld [vmem:[#allocation2 + $0x10] sm:$0xff] }
 0x148   : > { %1606 = vst.msk [vmem:[#allocation2 + $0x68] sm:$0xff] %vm210_vm1, %v1590_v23  ;;  %v1848_v1 = vadd.f32 %v5863_v8, %v1634_v25  ;;  %v1633_v27 = vld [vmem:[#allocation2 + $0x40] sm:$0xff]  ;;  %v1820_v30 = vpop.f32.mrb[45].mxu1 }
 0x149   : > { %1605 = vst.msk [vmem:[#allocation2 + $0x60] sm:$0xff] %vm210_vm1, %v1589_v24  ;;  %v1847_v9 = vadd.f32 %v1800_v13, %v1633_v27  ;;  %v5846_v29 = vpop.f32.mrb[46].mxu0  ;;  %v1892_v50 = vld [vmem:[#allocation2 + $0x28] sm:$0xff] }
 0x14a   : > { %1864 = vst.msk [vmem:[#allocation2 + $0x48] sm:$0xff] %vm210_vm1, %v1848_v1  ;;  %v1592_v31 = vadd.f32 %v5846_v29, %v1378_v26  ;;  %v1568_v32 = vpop.f32.mrb[47].mxu0  ;;  %v1891_v11 = vld [vmem:[#allocation2 + $0x20] sm:$0xff] }
 0x14b   : > { %1863 = vst.msk [vmem:[#allocation2 + $0x40] sm:$0xff] %vm210_vm1, %v1847_v9  ;;  %v1591_v33 = vadd.f32 %v1568_v32, %v1377_v28  ;;  %v1636_v55 = vld [vmem:[#allocation2 + $0x58] sm:$0xff]  ;;  %v5872_v35 = vpop.f32.mrb[46].mxu1  ;;  %v7297_v32 = vld [vmem:[%s7709_s2] ss:$0 sm:$0xff] }
 0x14c   : > { %1608 = vst.msk [vmem:[#allocation2 + $0x78] sm:$0xff] %vm210_vm1, %v1592_v31  ;;  %v1850_v2 = vadd.f32 %v5866_v20, %v1636_v55  ;;  %v1635_v34 = vld [vmem:[#allocation2 + $0x50] sm:$0xff]  ;;  %v1830_v38 = vpop.f32.mrb[47].mxu1 }
 0x14d   : > { %1607 = vst.msk [vmem:[#allocation2 + $0x70] sm:$0xff] %vm210_vm1, %v1591_v33  ;;  %v1849_v36 = vadd.f32 %v1810_v22, %v1635_v34  ;;  %v5877_v10 = vpop.f32.mrb[48].mxu0  ;;  %v1894_v15 = vld [vmem:[#allocation2 + $0x38] sm:$0xff] }
 0x14e   : > { %1866 = vst.msk [vmem:[#allocation2 + $0x58] sm:$0xff] %vm210_vm1, %v1850_v2  ;;  %v2102_v39 = vadd.f32 %v5877_v10, %v1888_v37  ;;  %v2022_v56 = vpop.f32.mrb[49].mxu0  ;;  %v1893_v21 = vld [vmem:[#allocation2 + $0x30] sm:$0xff] }
 0x14f   : > { %1865 = vst.msk [vmem:[#allocation2 + $0x50] sm:$0xff] %vm210_vm1, %v1849_v36  ;;  %v1638_v41 = vld [vmem:[#allocation2 + $0x68] sm:$0xff]  ;;  %v2101_v42 = vadd.f32 %v2022_v56, %v1887_v40  ;;  %v5903_v16 = vpop.f32.mrb[48].mxu1 }
 0x150   : > { %2118 = vst.msk [vmem:[#allocation2 + $0x8] sm:$0xff] %vm210_vm1, %v2102_v39  ;;  %v1852_v43 = vadd.f32 %v5869_v53, %v1638_v41  ;;  %v1637_v44 = vld [vmem:[#allocation2 + $0x60] sm:$0xff]  ;;  %v2284_v47 = vpop.f32.mrb[49].mxu1 }
 0x151   : > { %2117 = vst.msk [vmem:[#allocation2] sm:$0xff] %vm210_vm1, %v2101_v42  ;;  %v1851_v57 = vadd.f32 %v1820_v30, %v1637_v44  ;;  %v5880_v46 = vpop.f32.mrb[50].mxu0  ;;  %v1896_v1 = vld [vmem:[#allocation2 + $0x48] sm:$0xff] }
 0x152   : > { %1868 = vst.msk [vmem:[#allocation2 + $0x68] sm:$0xff] %vm210_vm1, %v1852_v43  ;;  %v2104_v48 = vadd.f32 %v5880_v46, %v1890_v45  ;;  %v2032_v63 = vpop.f32.mrb[51].mxu0  ;;  %v1895_v9 = vld [vmem:[#allocation2 + $0x40] sm:$0xff] }
 0x153   : > { %1867 = vst.msk [vmem:[#allocation2 + $0x60] sm:$0xff] %vm210_vm1, %v1851_v57  ;;  %v1640_v58 = vld [vmem:[#allocation2 + $0x78] sm:$0xff]  ;;  %v2103_v3 = vadd.f32 %v2032_v63, %v1889_v49  ;;  %v5906_v18 = vpop.f32.mrb[50].mxu1 }
 0x154   : > { %2120 = vst.msk [vmem:[#allocation2 + $0x18] sm:$0xff] %vm210_vm1, %v2104_v48  ;;  %v1854_v4 = vadd.f32 %v5872_v35, %v1640_v58  ;;  %v1639_v5 = vld [vmem:[#allocation2 + $0x70] sm:$0xff]  ;;  %v2294_v7 = vpop.f32.mrb[51].mxu1 }
 0x155   : > { %2119 = vst.msk [vmem:[#allocation2 + $0x10] sm:$0xff] %vm210_vm1, %v2103_v3  ;;  %v1853_v59 = vadd.f32 %v1830_v38, %v1639_v5  ;;  %v5883_v6 = vpop.f32.mrb[52].mxu0  ;;  %v1898_v35 = vld [vmem:[#allocation2 + $0x58] sm:$0xff] }
 0x156   : > { %1870 = vst.msk [vmem:[#allocation2 + $0x78] sm:$0xff] %vm210_vm1, %v1854_v4  ;;  %v2106_v8 = vadd.f32 %v5883_v6, %v1892_v50  ;;  %v2042_v12 = vpop.f32.mrb[53].mxu0  ;;  %v1897_v39 = vld [vmem:[#allocation2 + $0x50] sm:$0xff] }
 0x157   : > { %1869 = vst.msk [vmem:[#allocation2 + $0x70] sm:$0xff] %vm210_vm1, %v1853_v59  ;;  %v2105_v13 = vadd.f32 %v2042_v12, %v1891_v11  ;;  %v2150_v60 = vld [vmem:[#allocation2 + $0x8] sm:$0xff]  ;;  %v5909_v51 = vpop.f32.mrb[52].mxu1 }
 0x158   : > { %2122 = vst.msk [vmem:[#allocation2 + $0x28] sm:$0xff] %vm210_vm1, %v2106_v8  ;;  %v2364_v14 = vadd.f32 %v5903_v16, %v2150_v60  ;;  %v2149_v0 = vld [vmem:[#allocation2] sm:$0xff]  ;;  %v2304_v19 = vpop.f32.mrb[53].mxu1 }
 0x159   : > { %2121 = vst.msk [vmem:[#allocation2 + $0x20] sm:$0xff] %vm210_vm1, %v2105_v13  ;;  %v2363_v61 = vadd.f32 %v2284_v47, %v2149_v0  ;;  %v5886_v17 = vpop.f32.mrb[54].mxu0  ;;  %v1900_v46 = vld [vmem:[#allocation2 + $0x68] sm:$0xff] }
 0x15a   : > { %2380 = vst.msk [vmem:[#allocation2 + $0x8] sm:$0xff] %vm210_vm1, %v2364_v14  ;;  %v2108_v20 = vadd.f32 %v5886_v17, %v1894_v15  ;;  %v2052_v52 = vpop.f32.mrb[55].mxu0  ;;  %v1899_v58 = vld [vmem:[#allocation2 + $0x60] sm:$0xff] }
 0x15b   : > { %2379 = vst.msk [vmem:[#allocation2] sm:$0xff] %vm210_vm1, %v2363_v61  ;;  %v2107_v22 = vadd.f32 %v2052_v52, %v1893_v21  ;;  %v2152_v23 = vld [vmem:[#allocation2 + $0x18] sm:$0xff]  ;;  %v5912_v25 = vpop.f32.mrb[54].mxu1 }
 0x15c   : > { %2124 = vst.msk [vmem:[#allocation2 + $0x38] sm:$0xff] %vm210_vm1, %v2108_v20  ;;  %v2366_v62 = vadd.f32 %v5906_v18, %v2152_v23  ;;  %v2151_v24 = vld [vmem:[#allocation2 + $0x10] sm:$0xff]  ;;  %v2314_v28 = vpop.f32.mrb[55].mxu1 }
 0x15d   : > { %2123 = vst.msk [vmem:[#allocation2 + $0x30] sm:$0xff] %vm210_vm1, %v2107_v22  ;;  %v2365_v26 = vadd.f32 %v2294_v7, %v2151_v24  ;;  %v5889_v27 = vpop.f32.mrb[56].mxu0  ;;  %v1902_v12 = vld [vmem:[#allocation2 + $0x78] sm:$0xff] }
 0x15e   : > { %2382 = vst.msk [vmem:[#allocation2 + $0x18] sm:$0xff] %vm210_vm1, %v2366_v62  ;;  %v2110_v53 = vadd.f32 %v5889_v27, %v1896_v1  ;;  %v2062_v29 = vpop.f32.mrb[57].mxu0 }
 0x15f   : > { %2381 = vst.msk [vmem:[#allocation2 + $0x10] sm:$0xff] %vm210_vm1, %v2365_v26  ;;  %v2109_v30 = vadd.f32 %v2062_v29, %v1895_v9  ;;  %v2154_v31 = vld [vmem:[#allocation2 + $0x28] sm:$0xff]  ;;  %v5915_v2 = vpop.f32.mrb[56].mxu1 }
 0x160   : > { %2126 = vst.msk [vmem:[#allocation2 + $0x48] sm:$0xff] %vm210_vm1, %v2110_v53  ;;  %v2368_v33 = vadd.f32 %v5909_v51, %v2154_v31  ;;  %v2153_v55 = vld [vmem:[#allocation2 + $0x20] sm:$0xff]  ;;  %v2324_v10 = vpop.f32.mrb[57].mxu1  ;;  %v1901_v51 = vld [vmem:[#allocation2 + $0x70] sm:$0xff] }
 0x161   : > { %2125 = vst.msk [vmem:[#allocation2 + $0x40] sm:$0xff] %vm210_vm1, %v2109_v30  ;;  %v2367_v34 = vadd.f32 %v2304_v19, %v2153_v55  ;;  %v5892_v36 = vpop.f32.mrb[58].mxu0  ;;  %v2396_v37 = vld [vmem:[#allocation2 + $0x8] sm:$0xff] }
 0x162   : > { %2384 = vst.msk [vmem:[#allocation2 + $0x28] sm:$0xff] %vm210_vm1, %v2368_v33  ;;  %v2112_v38 = vadd.f32 %v5892_v36, %v1898_v35  ;;  %v2072_v40 = vpop.f32.mrb[59].mxu0  ;;  %v2419_v56 = vadd.f32 %v7297_v32, %v2396_v37  ;;  %2516 = vst.msk [vmem:[#allocation2 + $0x8] sm:$0xff] %vm210_vm1, %v6218_v54  ;;  %v2395_v41 = vld [vmem:[#allocation2] sm:$0xff] }
 0x163   : > { %2383 = vst.msk [vmem:[#allocation2 + $0x20] sm:$0xff] %vm210_vm1, %v2367_v34  ;;  %v2111_v42 = vadd.f32 %v2072_v40, %v1897_v39  ;;  %v2156_v43 = vld [vmem:[#allocation2 + $0x38] sm:$0xff]  ;;  %2515 = vst.msk [vmem:[#allocation2] sm:$0xff] %vm210_vm1, %v6218_v54  ;;  %v5918_v57 = vpop.f32.mrb[58].mxu1  ;;  %v2418_v4 = vadd.f32 %v7297_v32, %v2395_v41 }
 0x164   : > { %2128 = vst.msk [vmem:[#allocation2 + $0x58] sm:$0xff] %vm210_vm1, %v2112_v38  ;;  %v2370_v44 = vadd.f32 %v5912_v25, %v2156_v43  ;;  %v2155_v16 = vld [vmem:[#allocation2 + $0x30] sm:$0xff]  ;;  %2452 = vrot.lane.b32.xlu0 %v2419_v56, %s6219_s30  ;;  %v2334_v49 = vpop.f32.mrb[59].mxu1 }
 0x165   : > { %2127 = vst.msk [vmem:[#allocation2 + $0x50] sm:$0xff] %vm210_vm1, %v2111_v42  ;;  %v2369_v45 = vadd.f32 %v2314_v28, %v2155_v16  ;;  %v5895_v47 = vpop.f32.mrb[60].mxu0  ;;  %v2398_v48 = vld [vmem:[#allocation2 + $0x18] sm:$0xff] }
 0x166   : > { %2386 = vst.msk [vmem:[#allocation2 + $0x38] sm:$0xff] %vm210_vm1, %v2370_v44  ;;  %v2114_v63 = vadd.f32 %v5895_v47, %v1900_v46  ;;  %v2082_v3 = vpop.f32.mrb[61].mxu0  ;;  %v2421_v5 = vadd.f32 %v7297_v32, %v2398_v48  ;;  %2518 = vst.msk [vmem:[#allocation2 + $0x18] sm:$0xff] %vm210_vm1, %v6218_v54  ;;  %v2397_v18 = vld [vmem:[#allocation2 + $0x10] sm:$0xff] }
 0x167   : > { %2385 = vst.msk [vmem:[#allocation2 + $0x30] sm:$0xff] %vm210_vm1, %v2369_v45  ;;  %v2113_v59 = vadd.f32 %v2082_v3, %v1899_v58  ;;  %v2158_v50 = vld [vmem:[#allocation2 + $0x48] sm:$0xff]  ;;  %2517 = vst.msk [vmem:[#allocation2 + $0x10] sm:$0xff] %vm210_vm1, %v6218_v54  ;;  %v5921_v8 = vpop.f32.mrb[60].mxu1  ;;  %v2420_v15 = vadd.f32 %v7297_v32, %v2397_v18 }
 0x168   : > { %2130 = vst.msk [vmem:[#allocation2 + $0x68] sm:$0xff] %vm210_vm1, %v2114_v63  ;;  %v2372_v6 = vadd.f32 %v5915_v2, %v2158_v50  ;;  %v2157_v7 = vld [vmem:[#allocation2 + $0x40] sm:$0xff]  ;;  %2450 = vrot.lane.b32.xlu0 %v2418_v4, %s6219_s30  ;;  %2456 = vrot.lane.b32.xlu1 %v2421_v5, %s6219_s30  ;;  %v2344_v60 = vpop.f32.mrb[61].mxu1 }
 0x169   : > { %2129 = vst.msk [vmem:[#allocation2 + $0x60] sm:$0xff] %vm210_vm1, %v2113_v59  ;;  %v2371_v11 = vadd.f32 %v2324_v10, %v2157_v7  ;;  %v5898_v13 = vpop.f32.mrb[62].mxu0  ;;  %v2400_v14 = vld [vmem:[#allocation2 + $0x28] sm:$0xff] }
 0x16a   : > { %2388 = vst.msk [vmem:[#allocation2 + $0x48] sm:$0xff] %vm210_vm1, %v2372_v6  ;;  %v2116_v0 = vadd.f32 %v5898_v13, %v1902_v12  ;;  %v2092_v61 = vpop.f32.mrb[63].mxu0  ;;  %v2399_v17 = vld [vmem:[#allocation2 + $0x20] sm:$0xff]  ;;  %2520 = vst.msk [vmem:[#allocation2 + $0x28] sm:$0xff] %vm210_vm1, %v6218_v54  ;;  %v2548_v52 = vld [vmem:[#allocation2 + $0x8] sm:$0xff]  ;;  %v2423_v9 = vadd.f32 %v7297_v32, %v2400_v14 }
 0x16b   : > { %2387 = vst.msk [vmem:[#allocation2 + $0x40] sm:$0xff] %vm210_vm1, %v2371_v11  ;;  %v2115_v19 = vadd.f32 %v2092_v61, %v1901_v51  ;;  %v2160_v20 = vld [vmem:[#allocation2 + $0x58] sm:$0xff]  ;;  %v2422_v21 = vadd.f32 %v7297_v32, %v2399_v17  ;;  %2519 = vst.msk [vmem:[#allocation2 + $0x20] sm:$0xff] %vm210_vm1, %v6218_v54  ;;  %v2547_v62 = vld [vmem:[#allocation2] sm:$0xff]  ;;  %v5924_v24 = vpop.f32.mrb[62].mxu1 }
 0x16c   : > { %2132 = vst.msk [vmem:[#allocation2 + $0x78] sm:$0xff] %vm210_vm1, %v2116_v0  ;;  %v2374_v22 = vadd.f32 %v5918_v57, %v2160_v20  ;;  %v2159_v23 = vld [vmem:[#allocation2 + $0x50] sm:$0xff]  ;;  %2454 = vrot.lane.b32.xlu1 %v2420_v15, %s6219_s30  ;;  %v2354_v1 = vpop.f32.mrb[63].mxu1 }
 0x16d   : > { %2131 = vst.msk [vmem:[#allocation2 + $0x70] sm:$0xff] %vm210_vm1, %v2115_v19  ;;  %v2373_v25 = vadd.f32 %v2334_v49, %v2159_v23  ;;  %2458 = vrot.lane.b32.xlu0 %v2422_v21, %s6219_s30  ;;  %v5929_v26 = vpop.f32.mrb[64].mxu0  ;;  %v2402_v27 = vld [vmem:[#allocation2 + $0x38] sm:$0xff] }
 0x16e   : > { %2390 = vst.msk [vmem:[#allocation2 + $0x58] sm:$0xff] %vm210_vm1, %v2374_v22  ;;  %v2762_v28 = vadd.f32 %v5929_v26, %v2548_v52  ;;  %v2682_v53 = vpop.f32.mrb[65].mxu0  ;;  %v2401_v29 = vld [vmem:[#allocation2 + $0x30] sm:$0xff]  ;;  %2522 = vst.msk [vmem:[#allocation2 + $0x38] sm:$0xff] %vm210_vm1, %v6218_v54  ;;  %v2550_v55 = vld [vmem:[#allocation2 + $0x18] sm:$0xff]  ;;  %v2425_v41 = vadd.f32 %v7297_v32, %v2402_v27 }
 0x16f   : > { %2389 = vst.msk [vmem:[#allocation2 + $0x50] sm:$0xff] %vm210_vm1, %v2373_v25  ;;  %v2162_v30 = vld [vmem:[#allocation2 + $0x68] sm:$0xff]  ;;  %v2761_v31 = vadd.f32 %v2682_v53, %v2547_v62  ;;  %v2424_v33 = vadd.f32 %v7297_v32, %v2401_v29  ;;  %2521 = vst.msk [vmem:[#allocation2 + $0x30] sm:$0xff] %vm210_vm1, %v6218_v54  ;;  %v2549_v35 = vld [vmem:[#allocation2 + $0x10] sm:$0xff]  ;;  %v5955_v36 = vpop.f32.mrb[64].mxu1 }
 0x170   : > { %2778 = vst.msk [vmem:[#allocation2 + $0x8] sm:$0xff] %vm210_vm1, %v2762_v28  ;;  %v2376_v2 = vadd.f32 %v5921_v8, %v2162_v30  ;;  %v2161_v34 = vld [vmem:[#allocation2 + $0x60] sm:$0xff]  ;;  %2460 = vrot.lane.b32.xlu1 %v2423_v9, %s6219_s30  ;;  %v2944_v38 = vpop.f32.mrb[65].mxu1 }
 0x171   : > { %2777 = vst.msk [vmem:[#allocation2] sm:$0xff] %vm210_vm1, %v2761_v31  ;;  %v2375_v37 = vadd.f32 %v2344_v60, %v2161_v34  ;;  %2462 = vrot.lane.b32.xlu0 %v2424_v33, %s6219_s30  ;;  %v5932_v10 = vpop.f32.mrb[66].mxu0  ;;  %v2404_v39 = vld [vmem:[#allocation2 + $0x48] sm:$0xff] }
 0x172   : > { %2392 = vst.msk [vmem:[#allocation2 + $0x68] sm:$0xff] %vm210_vm1, %v2376_v2  ;;  %v2764_v40 = vadd.f32 %v5932_v10, %v2550_v55  ;;  %v2692_v56 = vpop.f32.mrb[67].mxu0  ;;  %v2403_v42 = vld [vmem:[#allocation2 + $0x40] sm:$0xff]  ;;  %2524 = vst.msk [vmem:[#allocation2 + $0x48] sm:$0xff] %vm210_vm1, %v6218_v54  ;;  %v2552_v57 = vld [vmem:[#allocation2 + $0x28] sm:$0xff]  ;;  %v2427_v18 = vadd.f32 %v7297_v32, %v2404_v39 }
 0x173   : > { %2391 = vst.msk [vmem:[#allocation2 + $0x60] sm:$0xff] %vm210_vm1, %v2375_v37  ;;  %v2164_v43 = vld [vmem:[#allocation2 + $0x78] sm:$0xff]  ;;  %v2763_v44 = vadd.f32 %v2692_v56, %v2549_v35  ;;  %v2426_v16 = vadd.f32 %v7297_v32, %v2403_v42  ;;  %2523 = vst.msk [vmem:[#allocation2 + $0x40] sm:$0xff] %vm210_vm1, %v6218_v54  ;;  %v2551_v47 = vld [vmem:[#allocation2 + $0x20] sm:$0xff]  ;;  %v5958_v48 = vpop.f32.mrb[66].mxu1 }
 0x174   : > { %2780 = vst.msk [vmem:[#allocation2 + $0x18] sm:$0xff] %vm210_vm1, %v2764_v40  ;;  %v2378_v45 = vadd.f32 %v5924_v24, %v2164_v43  ;;  %v2163_v46 = vld [vmem:[#allocation2 + $0x70] sm:$0xff]  ;;  %2464 = vrot.lane.b32.xlu1 %v2425_v41, %s6219_s30  ;;  %v2954_v58 = vpop.f32.mrb[67].mxu1 }
 0x175   : > { %2779 = vst.msk [vmem:[#allocation2 + $0x10] sm:$0xff] %vm210_vm1, %v2763_v44  ;;  %v2377_v49 = vadd.f32 %v2354_v1, %v2163_v46  ;;  %2466 = vrot.lane.b32.xlu0 %v2426_v16, %s6219_s30  ;;  %v5935_v63 = vpop.f32.mrb[68].mxu0  ;;  %v2406_v3 = vld [vmem:[#allocation2 + $0x58] sm:$0xff] }
 0x176   : > { %2394 = vst.msk [vmem:[#allocation2 + $0x78] sm:$0xff] %vm210_vm1, %v2378_v45  ;;  %v2766_v4 = vadd.f32 %v5935_v63, %v2552_v57  ;;  %v2702_v5 = vpop.f32.mrb[69].mxu0  ;;  %v2405_v59 = vld [vmem:[#allocation2 + $0x50] sm:$0xff]  ;;  %2526 = vst.msk [vmem:[#allocation2 + $0x58] sm:$0xff] %vm210_vm1, %v6218_v54  ;;  %v2554_v8 = vld [vmem:[#allocation2 + $0x38] sm:$0xff]  ;;  %v2429_v19 = vadd.f32 %v7297_v32, %v2406_v3 }
 0x177   : > { %2393 = vst.msk [vmem:[#allocation2 + $0x70] sm:$0xff] %vm210_vm1, %v2377_v49  ;;  %v2765_v50 = vadd.f32 %v2702_v5, %v2551_v47  ;;  %v2810_v6 = vld [vmem:[#allocation2 + $0x8] sm:$0xff]  ;;  %v2428_v7 = vadd.f32 %v7297_v32, %v2405_v59  ;;  %2525 = vst.msk [vmem:[#allocation2 + $0x50] sm:$0xff] %vm210_vm1, %v6218_v54  ;;  %v2553_v13 = vld [vmem:[#allocation2 + $0x30] sm:$0xff]  ;;  %v5961_v60 = vpop.f32.mrb[68].mxu1 }
 0x178   : > { %2782 = vst.msk [vmem:[#allocation2 + $0x28] sm:$0xff] %vm210_vm1, %v2766_v4  ;;  %v3024_v11 = vadd.f32 %v5955_v36, %v2810_v6  ;;  %v2809_v12 = vld [vmem:[#allocation2] sm:$0xff]  ;;  %2468 = vrot.lane.b32.xlu1 %v2427_v18, %s6219_s30  ;;  %v2964_v51 = vpop.f32.mrb[69].mxu1 }
 0x179   : > { %2781 = vst.msk [vmem:[#allocation2 + $0x20] sm:$0xff] %vm210_vm1, %v2765_v50  ;;  %v3023_v14 = vadd.f32 %v2944_v38, %v2809_v12  ;;  %2470 = vrot.lane.b32.xlu0 %v2428_v7, %s6219_s30  ;;  %v5938_v0 = vpop.f32.mrb[70].mxu0  ;;  %v2408_v61 = vld [vmem:[#allocation2 + $0x68] sm:$0xff] }
 0x17a   : > { %3040 = vst.msk [vmem:[#allocation2 + $0x8] sm:$0xff] %vm210_vm1, %v3024_v11  ;;  %v2768_v15 = vadd.f32 %v5938_v0, %v2554_v8  ;;  %v2712_v17 = vpop.f32.mrb[71].mxu0  ;;  %v2407_v20 = vld [vmem:[#allocation2 + $0x60] sm:$0xff]  ;;  %2528 = vst.msk [vmem:[#allocation2 + $0x68] sm:$0xff] %vm210_vm1, %v6218_v54  ;;  %v2556_v23 = vld [vmem:[#allocation2 + $0x48] sm:$0xff]  ;;  %v2431_v30 = vadd.f32 %v7297_v32, %v2408_v61 }
 0x17b   : > { %3039 = vst.msk [vmem:[#allocation2] sm:$0xff] %vm210_vm1, %v3023_v14  ;;  %v2767_v21 = vadd.f32 %v2712_v17, %v2553_v13  ;;  %v2812_v52 = vld [vmem:[#allocation2 + $0x18] sm:$0xff]  ;;  %v2430_v22 = vadd.f32 %v7297_v32, %v2407_v20  ;;  %2527 = vst.msk [vmem:[#allocation2 + $0x60] sm:$0xff] %vm210_vm1, %v6218_v54  ;;  %v2555_v25 = vld [vmem:[#allocation2 + $0x40] sm:$0xff]  ;;  %v5964_v26 = vpop.f32.mrb[70].mxu1 }
 0x17c   : > { %2784 = vst.msk [vmem:[#allocation2 + $0x38] sm:$0xff] %vm210_vm1, %v2768_v15  ;;  %v3026_v62 = vadd.f32 %v5958_v48, %v2812_v52  ;;  %v2811_v24 = vld [vmem:[#allocation2 + $0x10] sm:$0xff]  ;;  %2472 = vrot.lane.b32.xlu1 %v2429_v19, %s6219_s30  ;;  %v2974_v28 = vpop.f32.mrb[71].mxu1 }
 0x17d   : > { %2783 = vst.msk [vmem:[#allocation2 + $0x30] sm:$0xff] %vm210_vm1, %v2767_v21  ;;  %v3025_v1 = vadd.f32 %v2954_v58, %v2811_v24  ;;  %2474 = vrot.lane.b32.xlu0 %v2430_v22, %s6219_s30  ;;  %v5941_v27 = vpop.f32.mrb[72].mxu0  ;;  %v2410_v53 = vld [vmem:[#allocation2 + $0x78] sm:$0xff] }
 0x17e   : > { %3042 = vst.msk [vmem:[#allocation2 + $0x18] sm:$0xff] %vm210_vm1, %v3026_v62  ;;  %v2770_v9 = vadd.f32 %v5941_v27, %v2556_v23  ;;  %v2722_v29 = vpop.f32.mrb[73].mxu0  ;;  %v2409_v31 = vld [vmem:[#allocation2 + $0x70] sm:$0xff]  ;;  %2530 = vst.msk [vmem:[#allocation2 + $0x78] sm:$0xff] %vm210_vm1, %v6218_v54  ;;  %v2558_v2 = vld [vmem:[#allocation2 + $0x58] sm:$0xff]  ;;  %v2433_v42 = vadd.f32 %v7297_v32, %v2410_v53 }
 0x17f   : > { %3041 = vst.msk [vmem:[#allocation2 + $0x10] sm:$0xff] %vm210_vm1, %v3025_v1  ;;  %v2769_v33 = vadd.f32 %v2722_v29, %v2555_v25  ;;  %v2814_v55 = vld [vmem:[#allocation2 + $0x28] sm:$0xff]  ;;  %v2432_v34 = vadd.f32 %v7297_v32, %v2409_v31  ;;  %2529 = vst.msk [vmem:[#allocation2 + $0x70] sm:$0xff] %vm210_vm1, %v6218_v54  ;;  %v2557_v37 = vld [vmem:[#allocation2 + $0x50] sm:$0xff]  ;;  %v5967_v10 = vpop.f32.mrb[72].mxu1 }
 0x180   : > { %2786 = vst.msk [vmem:[#allocation2 + $0x48] sm:$0xff] %vm210_vm1, %v2770_v9  ;;  %v3028_v35 = vadd.f32 %v5961_v60, %v2814_v55  ;;  %v2813_v36 = vld [vmem:[#allocation2 + $0x20] sm:$0xff]  ;;  %2476 = vrot.lane.b32.xlu1 %v2431_v30, %s6219_s30  ;;  %v2984_v40 = vpop.f32.mrb[73].mxu1 }
 0x181   : > { %2785 = vst.msk [vmem:[#allocation2 + $0x40] sm:$0xff] %vm210_vm1, %v2769_v33  ;;  %v3027_v38 = vadd.f32 %v2964_v51, %v2813_v36  ;;  %v5944_v39 = vpop.f32.mrb[74].mxu0  ;;  %2478 = vrot.lane.b32.xlu0 %v2432_v34, %s6219_s30  ;;  %v2560_v16 = vld [vmem:[#allocation2 + $0x68] sm:$0xff] }
 0x182   : > { %3044 = vst.msk [vmem:[#allocation2 + $0x28] sm:$0xff] %vm210_vm1, %v3028_v35  ;;  %v2772_v56 = vadd.f32 %v5944_v39, %v2558_v2  ;;  %v2732_v41 = vpop.f32.mrb[75].mxu0  ;;  %v2559_v46 = vld [vmem:[#allocation2 + $0x60] sm:$0xff]  ;;  %v3073_v17 = vld [vmem:[#allocation2 + $0x8] sm:$0xff] }
 0x183   : > { %3043 = vst.msk [vmem:[#allocation2 + $0x20] sm:$0xff] %vm210_vm1, %v3027_v38  ;;  %v2771_v43 = vadd.f32 %v2732_v41, %v2557_v37  ;;  %v2816_v44 = vld [vmem:[#allocation2 + $0x38] sm:$0xff]  ;;  %v5970_v47 = vpop.f32.mrb[74].mxu1  ;;  %v3072_v52 = vld [vmem:[#allocation2] sm:$0xff] }
 0x184   : > { %2788 = vst.msk [vmem:[#allocation2 + $0x58] sm:$0xff] %vm210_vm1, %v2772_v56  ;;  %v3030_v57 = vadd.f32 %v5964_v26, %v2816_v44  ;;  %v2815_v45 = vld [vmem:[#allocation2 + $0x30] sm:$0xff]  ;;  %2480 = vrot.lane.b32.xlu1 %v2433_v42, %s6219_s30  ;;  %v2994_v63 = vpop.f32.mrb[75].mxu1 }
 0x185   : > { %2787 = vst.msk [vmem:[#allocation2 + $0x50] sm:$0xff] %vm210_vm1, %v2771_v43  ;;  %v3029_v48 = vadd.f32 %v2974_v28, %v2815_v45  ;;  %v5947_v49 = vpop.f32.mrb[76].mxu0  ;;  %v2562_v5 = vld [vmem:[#allocation2 + $0x78] sm:$0xff] }
 0x186   : > { %3046 = vst.msk [vmem:[#allocation2 + $0x38] sm:$0xff] %vm210_vm1, %v3030_v57  ;;  %v2774_v32 = vadd.f32 %v5947_v49, %v2560_v16  ;;  %v2742_v58 = vpop.f32.mrb[77].mxu0  ;;  %v2561_v50 = vld [vmem:[#allocation2 + $0x70] sm:$0xff]  ;;  %v3075_v27 = vld [vmem:[#allocation2 + $0x18] sm:$0xff] }
 0x187   : > { %3045 = vst.msk [vmem:[#allocation2 + $0x30] sm:$0xff] %vm210_vm1, %v3029_v48  ;;  %v2773_v3 = vadd.f32 %v2742_v58, %v2559_v46  ;;  %v2818_v4 = vld [vmem:[#allocation2 + $0x48] sm:$0xff]  ;;  %v5973_v6 = vpop.f32.mrb[76].mxu1  ;;  %v3074_v29 = vld [vmem:[#allocation2 + $0x10] sm:$0xff] }
 0x188   : > { %2790 = vst.msk [vmem:[#allocation2 + $0x68] sm:$0xff] %vm210_vm1, %v2774_v32  ;;  %v3032_v18 = vadd.f32 %v5967_v10, %v2818_v4  ;;  %v2817_v59 = vld [vmem:[#allocation2 + $0x40] sm:$0xff]  ;;  %v3004_v11 = vpop.f32.mrb[77].mxu1 }
 0x189   : > { %2789 = vst.msk [vmem:[#allocation2 + $0x60] sm:$0xff] %vm210_vm1, %v2773_v3  ;;  %v3031_v7 = vadd.f32 %v2984_v40, %v2817_v59  ;;  %v5950_v8 = vpop.f32.mrb[78].mxu0  ;;  %v3077_v36 = vld [vmem:[#allocation2 + $0x28] sm:$0xff] }
 0x18a   : > { %3048 = vst.msk [vmem:[#allocation2 + $0x48] sm:$0xff] %vm210_vm1, %v3032_v18  ;;  %v2776_v12 = vadd.f32 %v5950_v8, %v2562_v5  ;;  %v2752_v13 = vpop.f32.mrb[79].mxu0  ;;  %v3076_v39 = vld [vmem:[#allocation2 + $0x20] sm:$0xff] }
 0x18b   : > { %3047 = vst.msk [vmem:[#allocation2 + $0x40] sm:$0xff] %vm210_vm1, %v3031_v7  ;;  %v2775_v60 = vadd.f32 %v2752_v13, %v2561_v50  ;;  %v2820_v14 = vld [vmem:[#allocation2 + $0x58] sm:$0xff]  ;;  %v5976_v61 = vpop.f32.mrb[78].mxu1 }
 0x18c   : > { %2792 = vst.msk [vmem:[#allocation2 + $0x78] sm:$0xff] %vm210_vm1, %v2776_v12  ;;  %v3034_v0 = vadd.f32 %v5970_v47, %v2820_v14  ;;  %v2819_v51 = vld [vmem:[#allocation2 + $0x50] sm:$0xff]  ;;  %v3014_v20 = vpop.f32.mrb[79].mxu1 }
 0x18d   : > { %2791 = vst.msk [vmem:[#allocation2 + $0x70] sm:$0xff] %vm210_vm1, %v2775_v60  ;;  %v3033_v15 = vadd.f32 %v2994_v63, %v2819_v51  ;;  %v5981_v19 = vpop.f32.mrb[80].mxu0  ;;  %v3079_v57 = vld [vmem:[#allocation2 + $0x38] sm:$0xff] }
 0x18e   : > { %3050 = vst.msk [vmem:[#allocation2 + $0x58] sm:$0xff] %vm210_vm1, %v3034_v0  ;;  %v3287_v21 = vadd.f32 %v5981_v19, %v3073_v17  ;;  %v3207_v22 = vpop.f32.mrb[81].mxu0  ;;  %v3078_v48 = vld [vmem:[#allocation2 + $0x30] sm:$0xff] }
 0x18f   : > { %3049 = vst.msk [vmem:[#allocation2 + $0x50] sm:$0xff] %vm210_vm1, %v3033_v15  ;;  %v2822_v23 = vld [vmem:[#allocation2 + $0x68] sm:$0xff]  ;;  %v3286_v62 = vadd.f32 %v3207_v22, %v3072_v52  ;;  %v6007_v26 = vpop.f32.mrb[80].mxu1  ;;  %v7435_v22 = vld [vmem:[%s7709_s2] ss:$0 sm:$0xff] }
 0x190   : > { %3303 = vst.msk [vmem:[#allocation2 + $0x8] sm:$0xff] %vm210_vm1, %v3287_v21  ;;  %v3036_v24 = vadd.f32 %v5973_v6, %v2822_v23  ;;  %v2821_v25 = vld [vmem:[#allocation2 + $0x60] sm:$0xff]  ;;  %v3469_v53 = vpop.f32.mrb[81].mxu1 }
 0x191   : > { %3302 = vst.msk [vmem:[#allocation2] sm:$0xff] %vm210_vm1, %v3286_v62  ;;  %v3035_v1 = vadd.f32 %v3004_v11, %v2821_v25  ;;  %v5984_v28 = vpop.f32.mrb[82].mxu0  ;;  %v3081_v18 = vld [vmem:[#allocation2 + $0x48] sm:$0xff] }
 0x192   : > { %3052 = vst.msk [vmem:[#allocation2 + $0x68] sm:$0xff] %vm210_vm1, %v3036_v24  ;;  %v3289_v9 = vadd.f32 %v5984_v28, %v3075_v27  ;;  %v3217_v30 = vpop.f32.mrb[83].mxu0  ;;  %v3080_v7 = vld [vmem:[#allocation2 + $0x40] sm:$0xff] }
 0x193   : > { %3051 = vst.msk [vmem:[#allocation2 + $0x60] sm:$0xff] %vm210_vm1, %v3035_v1  ;;  %v2824_v31 = vld [vmem:[#allocation2 + $0x78] sm:$0xff]  ;;  %v3288_v33 = vadd.f32 %v3217_v30, %v3074_v29  ;;  %v6010_v34 = vpop.f32.mrb[82].mxu1 }
 0x194   : > { %3305 = vst.msk [vmem:[#allocation2 + $0x18] sm:$0xff] %vm210_vm1, %v3289_v9  ;;  %v3038_v55 = vadd.f32 %v5976_v61, %v2824_v31  ;;  %v2823_v2 = vld [vmem:[#allocation2 + $0x70] sm:$0xff]  ;;  %v3479_v10 = vpop.f32.mrb[83].mxu1 }
 0x195   : > { %3304 = vst.msk [vmem:[#allocation2 + $0x10] sm:$0xff] %vm210_vm1, %v3288_v33  ;;  %v3037_v35 = vadd.f32 %v3014_v20, %v2823_v2  ;;  %v5987_v37 = vpop.f32.mrb[84].mxu0  ;;  %v3083_v51 = vld [vmem:[#allocation2 + $0x58] sm:$0xff] }
 0x196   : > { %3054 = vst.msk [vmem:[#allocation2 + $0x78] sm:$0xff] %vm210_vm1, %v3038_v55  ;;  %v3291_v38 = vadd.f32 %v5987_v37, %v3077_v36  ;;  %v3227_v40 = vpop.f32.mrb[85].mxu0  ;;  %v3082_v20 = vld [vmem:[#allocation2 + $0x50] sm:$0xff] }
 0x197   : > { %3053 = vst.msk [vmem:[#allocation2 + $0x70] sm:$0xff] %vm210_vm1, %v3037_v35  ;;  %v3290_v56 = vadd.f32 %v3227_v40, %v3076_v39  ;;  %v3335_v41 = vld [vmem:[#allocation2 + $0x8] sm:$0xff]  ;;  %v6013_v44 = vpop.f32.mrb[84].mxu1 }
 0x198   : > { %3307 = vst.msk [vmem:[#allocation2 + $0x28] sm:$0xff] %vm210_vm1, %v3291_v38  ;;  %v3549_v42 = vadd.f32 %v6007_v26, %v3335_v41  ;;  %v3334_v43 = vld [vmem:[#allocation2] sm:$0xff]  ;;  %v3489_v46 = vpop.f32.mrb[85].mxu1 }
 0x199   : > { %3306 = vst.msk [vmem:[#allocation2 + $0x20] sm:$0xff] %vm210_vm1, %v3290_v56  ;;  %v3548_v16 = vadd.f32 %v3469_v53, %v3334_v43  ;;  %v5990_v45 = vpop.f32.mrb[86].mxu0  ;;  %v3085_v53 = vld [vmem:[#allocation2 + $0x68] sm:$0xff] }
 0x19a   : > { %3565 = vst.msk [vmem:[#allocation2 + $0x8] sm:$0xff] %vm210_vm1, %v3549_v42  ;;  %v3293_v47 = vadd.f32 %v5990_v45, %v3079_v57  ;;  %v3237_v49 = vpop.f32.mrb[87].mxu0  ;;  %v3084_v33 = vld [vmem:[#allocation2 + $0x60] sm:$0xff] }
 0x19b   : > { %3564 = vst.msk [vmem:[#allocation2] sm:$0xff] %vm210_vm1, %v3548_v16  ;;  %v3292_v63 = vadd.f32 %v3237_v49, %v3078_v48  ;;  %v3337_v32 = vld [vmem:[#allocation2 + $0x18] sm:$0xff]  ;;  %v6016_v4 = vpop.f32.mrb[86].mxu1 }
 0x19c   : > { %3309 = vst.msk [vmem:[#allocation2 + $0x38] sm:$0xff] %vm210_vm1, %v3293_v47  ;;  %v3551_v58 = vadd.f32 %v6010_v34, %v3337_v32  ;;  %v3336_v3 = vld [vmem:[#allocation2 + $0x10] sm:$0xff]  ;;  %v3499_v50 = vpop.f32.mrb[87].mxu1 }
 0x19d   : > { %3308 = vst.msk [vmem:[#allocation2 + $0x30] sm:$0xff] %vm210_vm1, %v3292_v63  ;;  %v3550_v5 = vadd.f32 %v3479_v10, %v3336_v3  ;;  %v5993_v59 = vpop.f32.mrb[88].mxu0  ;;  %v3087_v56 = vld [vmem:[#allocation2 + $0x78] sm:$0xff] }
 0x19e   : > { %3567 = vst.msk [vmem:[#allocation2 + $0x18] sm:$0xff] %vm210_vm1, %v3551_v58  ;;  %v3295_v6 = vadd.f32 %v5993_v59, %v3081_v18  ;;  %v3247_v8 = vpop.f32.mrb[89].mxu0  ;;  %v3086_v16 = vld [vmem:[#allocation2 + $0x70] sm:$0xff] }
 0x19f   : > { %3566 = vst.msk [vmem:[#allocation2 + $0x10] sm:$0xff] %vm210_vm1, %v3550_v5  ;;  %v3294_v11 = vadd.f32 %v3247_v8, %v3080_v7  ;;  %v3339_v12 = vld [vmem:[#allocation2 + $0x28] sm:$0xff]  ;;  %v6019_v14 = vpop.f32.mrb[88].mxu1 }
 0x1a0   : > { %3311 = vst.msk [vmem:[#allocation2 + $0x48] sm:$0xff] %vm210_vm1, %v3295_v6  ;;  %v3553_v13 = vadd.f32 %v6013_v44, %v3339_v12  ;;  %v3338_v60 = vld [vmem:[#allocation2 + $0x20] sm:$0xff]  ;;  %v3509_v15 = vpop.f32.mrb[89].mxu1 }
 0x1a1   : > { %3310 = vst.msk [vmem:[#allocation2 + $0x40] sm:$0xff] %vm210_vm1, %v3294_v11  ;;  %v3552_v0 = vadd.f32 %v3489_v46, %v3338_v60  ;;  %v5996_v61 = vpop.f32.mrb[90].mxu0  ;;  %v3581_v17 = vld [vmem:[#allocation2 + $0x8] sm:$0xff] }
 0x1a2   : > { %3569 = vst.msk [vmem:[#allocation2 + $0x28] sm:$0xff] %vm210_vm1, %v3553_v13  ;;  %v3297_v19 = vadd.f32 %v5996_v61, %v3083_v51  ;;  %v3257_v21 = vpop.f32.mrb[91].mxu0  ;;  %3637 = vst.msk [vmem:[#allocation2 + $0x8] sm:$0xff] %vm210_vm1, %v6218_v54  ;;  %v3580_v52 = vld [vmem:[#allocation2] sm:$0xff]  ;;  %v3604_v23 = vadd.f32 %v7435_v22, %v3581_v17 }
 0x1a3   : > { %3568 = vst.msk [vmem:[#allocation2 + $0x20] sm:$0xff] %vm210_vm1, %v3552_v0  ;;  %v3296_v62 = vadd.f32 %v3257_v21, %v3082_v20  ;;  %v3341_v24 = vld [vmem:[#allocation2 + $0x38] sm:$0xff]  ;;  %3636 = vst.msk [vmem:[#allocation2] sm:$0xff] %vm210_vm1, %v6218_v54  ;;  %v3603_v25 = vadd.f32 %v7435_v22, %v3580_v52  ;;  %v6022_v27 = vpop.f32.mrb[90].mxu1 }
 0x1a4   : > { %3313 = vst.msk [vmem:[#allocation2 + $0x58] sm:$0xff] %vm210_vm1, %v3297_v19  ;;  %v3555_v26 = vadd.f32 %v6016_v4, %v3341_v24  ;;  %v3340_v1 = vld [vmem:[#allocation2 + $0x30] sm:$0xff]  ;;  %5275 = vst.msk [vmem:[%s7150_s27 + $0x18] sm:$0xff] %vm210_vm1, %v3604_v23  ;;  %v3519_v29 = vpop.f32.mrb[91].mxu1 }
 0x1a5   : > { %3312 = vst.msk [vmem:[#allocation2 + $0x50] sm:$0xff] %vm210_vm1, %v3296_v62  ;;  %v3554_v28 = vadd.f32 %v3499_v50, %v3340_v1  ;;  %v5999_v9 = vpop.f32.mrb[92].mxu0  ;;  %v3583_v30 = vld [vmem:[#allocation2 + $0x18] sm:$0xff]  ;;  %5274 = vst.msk [vmem:[%s7150_s27 + $0x10] sm:$0xff] %vm210_vm1, %v3603_v25 }
 0x1a6   : > { %3571 = vst.msk [vmem:[#allocation2 + $0x38] sm:$0xff] %vm210_vm1, %v3555_v26  ;;  %v3299_v31 = vadd.f32 %v5999_v9, %v3085_v53  ;;  %v3267_v55 = vpop.f32.mrb[93].mxu0  ;;  %3639 = vst.msk [vmem:[#allocation2 + $0x18] sm:$0xff] %vm210_vm1, %v6218_v54  ;;  %v3582_v2 = vld [vmem:[#allocation2 + $0x10] sm:$0xff]  ;;  %v3606_v34 = vadd.f32 %v7435_v22, %v3583_v30 }
 0x1a7   : > { %3570 = vst.msk [vmem:[#allocation2 + $0x30] sm:$0xff] %vm210_vm1, %v3554_v28  ;;  %v3298_v35 = vadd.f32 %v3267_v55, %v3084_v33  ;;  %v3343_v36 = vld [vmem:[#allocation2 + $0x48] sm:$0xff]  ;;  %3638 = vst.msk [vmem:[#allocation2 + $0x10] sm:$0xff] %vm210_vm1, %v6218_v54  ;;  %v3605_v37 = vadd.f32 %v7435_v22, %v3582_v2  ;;  %v6025_v39 = vpop.f32.mrb[92].mxu1 }
 0x1a8   : > { %3315 = vst.msk [vmem:[#allocation2 + $0x68] sm:$0xff] %vm210_vm1, %v3299_v31  ;;  %v3557_v10 = vadd.f32 %v6019_v14, %v3343_v36  ;;  %v3342_v38 = vld [vmem:[#allocation2 + $0x40] sm:$0xff]  ;;  %5277 = vst.msk [vmem:[%s7150_s27 + $0x38] sm:$0xff] %vm210_vm1, %v3606_v34  ;;  %v3529_v42 = vpop.f32.mrb[93].mxu1 }
 0x1a9   : > { %3314 = vst.msk [vmem:[#allocation2 + $0x60] sm:$0xff] %vm210_vm1, %v3298_v35  ;;  %v3556_v40 = vadd.f32 %v3509_v15, %v3342_v38  ;;  %v6002_v41 = vpop.f32.mrb[94].mxu0  ;;  %v3585_v43 = vld [vmem:[#allocation2 + $0x28] sm:$0xff]  ;;  %5276 = vst.msk [vmem:[%s7150_s27 + $0x30] sm:$0xff] %vm210_vm1, %v3605_v37 }
 0x1aa   : > { %3573 = vst.msk [vmem:[#allocation2 + $0x48] sm:$0xff] %vm210_vm1, %v3557_v10  ;;  %v3301_v44 = vadd.f32 %v6002_v41, %v3087_v56  ;;  %v3277_v57 = vpop.f32.mrb[95].mxu0  ;;  %3641 = vst.msk [vmem:[#allocation2 + $0x28] sm:$0xff] %vm210_vm1, %v6218_v54  ;;  %v3584_v45 = vld [vmem:[#allocation2 + $0x20] sm:$0xff]  ;;  %v3608_v46 = vadd.f32 %v7435_v22, %v3585_v43  ;;  %v3669_v49 = vld [vmem:[#allocation2 + $0x8] sm:$0xff] }
 0x1ab   : > { %3572 = vst.msk [vmem:[#allocation2 + $0x40] sm:$0xff] %vm210_vm1, %v3556_v40  ;;  %v3300_v47 = vadd.f32 %v3277_v57, %v3086_v16  ;;  %v3345_v48 = vld [vmem:[#allocation2 + $0x58] sm:$0xff]  ;;  %3640 = vst.msk [vmem:[#allocation2 + $0x20] sm:$0xff] %vm210_vm1, %v6218_v54  ;;  %v3607_v63 = vadd.f32 %v7435_v22, %v3584_v45  ;;  %v3668_v3 = vld [vmem:[#allocation2] sm:$0xff]  ;;  %v6028_v4 = vpop.f32.mrb[94].mxu1 }
 0x1ac   : > { %3317 = vst.msk [vmem:[#allocation2 + $0x78] sm:$0xff] %vm210_vm1, %v3301_v44  ;;  %v3559_v32 = vadd.f32 %v6022_v27, %v3345_v48  ;;  %v3344_v58 = vld [vmem:[#allocation2 + $0x50] sm:$0xff]  ;;  %5279 = vst.msk [vmem:[%s7150_s27 + $0x58] sm:$0xff] %vm210_vm1, %v3608_v46  ;;  %v3539_v59 = vpop.f32.mrb[95].mxu1 }
 0x1ad   : > { %3316 = vst.msk [vmem:[#allocation2 + $0x70] sm:$0xff] %vm210_vm1, %v3300_v47  ;;  %v3558_v5 = vadd.f32 %v3519_v29, %v3344_v58  ;;  %v6033_v18 = vpop.f32.mrb[96].mxu0  ;;  %v3587_v50 = vld [vmem:[#allocation2 + $0x38] sm:$0xff]  ;;  %5278 = vst.msk [vmem:[%s7150_s27 + $0x50] sm:$0xff] %vm210_vm1, %v3607_v63 }
 0x1ae   : > { %3575 = vst.msk [vmem:[#allocation2 + $0x58] sm:$0xff] %vm210_vm1, %v3559_v32  ;;  %v3883_v6 = vadd.f32 %v6033_v18, %v3669_v49  ;;  %v3803_v7 = vpop.f32.mrb[97].mxu0  ;;  %3643 = vst.msk [vmem:[#allocation2 + $0x38] sm:$0xff] %vm210_vm1, %v6218_v54  ;;  %v3586_v8 = vld [vmem:[#allocation2 + $0x30] sm:$0xff]  ;;  %v3610_v11 = vadd.f32 %v7435_v22, %v3587_v50  ;;  %v3671_v60 = vld [vmem:[#allocation2 + $0x18] sm:$0xff] }
 0x1af   : > { %3574 = vst.msk [vmem:[#allocation2 + $0x50] sm:$0xff] %vm210_vm1, %v3558_v5  ;;  %v3347_v12 = vld [vmem:[#allocation2 + $0x68] sm:$0xff]  ;;  %v3882_v13 = vadd.f32 %v3803_v7, %v3668_v3  ;;  %3642 = vst.msk [vmem:[#allocation2 + $0x30] sm:$0xff] %vm210_vm1, %v6218_v54  ;;  %v3609_v14 = vadd.f32 %v7435_v22, %v3586_v8  ;;  %v3670_v61 = vld [vmem:[#allocation2 + $0x10] sm:$0xff]  ;;  %v6059_v15 = vpop.f32.mrb[96].mxu1 }
 0x1b0   : > { %3899 = vst.msk [vmem:[#allocation2 + $0x8] sm:$0xff] %vm210_vm1, %v3883_v6  ;;  %v3561_v0 = vadd.f32 %v6025_v39, %v3347_v12  ;;  %v3346_v51 = vld [vmem:[#allocation2 + $0x60] sm:$0xff]  ;;  %5281 = vst.msk [vmem:[%s7150_s27 + $0x78] sm:$0xff] %vm210_vm1, %v3610_v11  ;;  %v4065_v20 = vpop.f32.mrb[97].mxu1 }
 0x1b1   : > { %3898 = vst.msk [vmem:[#allocation2] sm:$0xff] %vm210_vm1, %v3882_v13  ;;  %v3560_v17 = vadd.f32 %v3529_v42, %v3346_v51  ;;  %v6036_v19 = vpop.f32.mrb[98].mxu0  ;;  %v3589_v21 = vld [vmem:[#allocation2 + $0x48] sm:$0xff]  ;;  %5280 = vst.msk [vmem:[%s7150_s27 + $0x70] sm:$0xff] %vm210_vm1, %v3609_v14 }
 0x1b2   : > { %3577 = vst.msk [vmem:[#allocation2 + $0x68] sm:$0xff] %vm210_vm1, %v3561_v0  ;;  %v3885_v52 = vadd.f32 %v6036_v19, %v3671_v60  ;;  %v3813_v23 = vpop.f32.mrb[99].mxu0  ;;  %3645 = vst.msk [vmem:[#allocation2 + $0x48] sm:$0xff] %vm210_vm1, %v6218_v54  ;;  %v3588_v62 = vld [vmem:[#allocation2 + $0x40] sm:$0xff]  ;;  %v3612_v24 = vadd.f32 %v7435_v22, %v3589_v21  ;;  %v3673_v1 = vld [vmem:[#allocation2 + $0x28] sm:$0xff] }
 0x1b3   : > { %3576 = vst.msk [vmem:[#allocation2 + $0x60] sm:$0xff] %vm210_vm1, %v3560_v17  ;;  %v3349_v25 = vld [vmem:[#allocation2 + $0x78] sm:$0xff]  ;;  %v3884_v26 = vadd.f32 %v3813_v23, %v3670_v61  ;;  %3644 = vst.msk [vmem:[#allocation2 + $0x40] sm:$0xff] %vm210_vm1, %v6218_v54  ;;  %v3611_v27 = vadd.f32 %v7435_v22, %v3588_v62  ;;  %v3672_v9 = vld [vmem:[#allocation2 + $0x20] sm:$0xff]  ;;  %v6062_v29 = vpop.f32.mrb[98].mxu1 }
 0x1b4   : > { %3901 = vst.msk [vmem:[#allocation2 + $0x18] sm:$0xff] %vm210_vm1, %v3885_v52  ;;  %v3563_v28 = vadd.f32 %v6028_v4, %v3349_v25  ;;  %v3348_v53 = vld [vmem:[#allocation2 + $0x70] sm:$0xff]  ;;  %5283 = vst.msk [vmem:[%s7150_s27 + $0x98] sm:$0xff] %vm210_vm1, %v3612_v24  ;;  %v4075_v33 = vpop.f32.mrb[99].mxu1 }
 0x1b5   : > { %3900 = vst.msk [vmem:[#allocation2 + $0x10] sm:$0xff] %vm210_vm1, %v3884_v26  ;;  %v3562_v30 = vadd.f32 %v3539_v59, %v3348_v53  ;;  %v6039_v31 = vpop.f32.mrb[100].mxu0  ;;  %v3591_v55 = vld [vmem:[#allocation2 + $0x58] sm:$0xff]  ;;  %5282 = vst.msk [vmem:[%s7150_s27 + $0x90] sm:$0xff] %vm210_vm1, %v3611_v27 }
 0x1b6   : > { %3579 = vst.msk [vmem:[#allocation2 + $0x78] sm:$0xff] %vm210_vm1, %v3563_v28  ;;  %v3887_v2 = vadd.f32 %v6039_v31, %v3673_v1  ;;  %v3823_v34 = vpop.f32.mrb[101].mxu0  ;;  %3647 = vst.msk [vmem:[#allocation2 + $0x58] sm:$0xff] %vm210_vm1, %v6218_v54  ;;  %v3590_v35 = vld [vmem:[#allocation2 + $0x50] sm:$0xff]  ;;  %v3614_v36 = vadd.f32 %v7435_v22, %v3591_v55  ;;  %v3675_v38 = vld [vmem:[#allocation2 + $0x38] sm:$0xff] }
 0x1b7   : > { %3578 = vst.msk [vmem:[#allocation2 + $0x70] sm:$0xff] %vm210_vm1, %v3562_v30  ;;  %v3886_v37 = vadd.f32 %v3823_v34, %v3672_v9  ;;  %v3931_v10 = vld [vmem:[#allocation2 + $0x8] sm:$0xff]  ;;  %3646 = vst.msk [vmem:[#allocation2 + $0x50] sm:$0xff] %vm210_vm1, %v6218_v54  ;;  %v3613_v39 = vadd.f32 %v7435_v22, %v3590_v35  ;;  %v3674_v41 = vld [vmem:[#allocation2 + $0x30] sm:$0xff]  ;;  %v6065_v42 = vpop.f32.mrb[100].mxu1 }
 0x1b8   : > { %3903 = vst.msk [vmem:[#allocation2 + $0x28] sm:$0xff] %vm210_vm1, %v3887_v2  ;;  %v4145_v40 = vadd.f32 %v6059_v15, %v3931_v10  ;;  %v3930_v56 = vld [vmem:[#allocation2] sm:$0xff]  ;;  %5285 = vst.msk [vmem:[%s7150_s27 + $0xb8] sm:$0xff] %vm210_vm1, %v3614_v36  ;;  %v4085_v16 = vpop.f32.mrb[101].mxu1 }
 0x1b9   : > { %3902 = vst.msk [vmem:[#allocation2 + $0x20] sm:$0xff] %vm210_vm1, %v3886_v37  ;;  %v4144_v43 = vadd.f32 %v4065_v20, %v3930_v56  ;;  %v6042_v44 = vpop.f32.mrb[102].mxu0  ;;  %v3593_v57 = vld [vmem:[#allocation2 + $0x68] sm:$0xff]  ;;  %5284 = vst.msk [vmem:[%s7150_s27 + $0xb0] sm:$0xff] %vm210_vm1, %v3613_v39 }
 0x1ba   : > { %4161 = vst.msk [vmem:[#allocation2 + $0x8] sm:$0xff] %vm210_vm1, %v4145_v40  ;;  %v3889_v45 = vadd.f32 %v6042_v44, %v3675_v38  ;;  %v3833_v46 = vpop.f32.mrb[103].mxu0  ;;  %3649 = vst.msk [vmem:[#allocation2 + $0x68] sm:$0xff] %vm210_vm1, %v6218_v54  ;;  %v3592_v47 = vld [vmem:[#allocation2 + $0x60] sm:$0xff]  ;;  %v3616_v48 = vadd.f32 %v7435_v22, %v3593_v57  ;;  %v3677_v32 = vld [vmem:[#allocation2 + $0x48] sm:$0xff] }
 0x1bb   : > { %4160 = vst.msk [vmem:[#allocation2] sm:$0xff] %vm210_vm1, %v4144_v43  ;;  %v3888_v49 = vadd.f32 %v3833_v46, %v3674_v41  ;;  %v3933_v63 = vld [vmem:[#allocation2 + $0x18] sm:$0xff]  ;;  %3648 = vst.msk [vmem:[#allocation2 + $0x60] sm:$0xff] %vm210_vm1, %v6218_v54  ;;  %v3615_v58 = vadd.f32 %v7435_v22, %v3592_v47  ;;  %v3676_v5 = vld [vmem:[#allocation2 + $0x40] sm:$0xff]  ;;  %v6068_v18 = vpop.f32.mrb[102].mxu1 }
 0x1bc   : > { %3905 = vst.msk [vmem:[#allocation2 + $0x38] sm:$0xff] %vm210_vm1, %v3889_v45  ;;  %v4147_v3 = vadd.f32 %v6062_v29, %v3933_v63  ;;  %v3932_v4 = vld [vmem:[#allocation2 + $0x10] sm:$0xff]  ;;  %5287 = vst.msk [vmem:[%s7150_s27 + $0xd8] sm:$0xff] %vm210_vm1, %v3616_v48  ;;  %v4095_v6 = vpop.f32.mrb[103].mxu1 }
 0x1bd   : > { %3904 = vst.msk [vmem:[#allocation2 + $0x30] sm:$0xff] %vm210_vm1, %v3888_v49  ;;  %v4146_v59 = vadd.f32 %v4075_v33, %v3932_v4  ;;  %v6045_v50 = vpop.f32.mrb[104].mxu0  ;;  %v3595_v7 = vld [vmem:[#allocation2 + $0x78] sm:$0xff]  ;;  %5286 = vst.msk [vmem:[%s7150_s27 + $0xd0] sm:$0xff] %vm210_vm1, %v3615_v58 }
 0x1be   : > { %4163 = vst.msk [vmem:[#allocation2 + $0x18] sm:$0xff] %vm210_vm1, %v4147_v3  ;;  %v3891_v8 = vadd.f32 %v6045_v50, %v3677_v32  ;;  %v3843_v11 = vpop.f32.mrb[105].mxu0  ;;  %3651 = vst.msk [vmem:[#allocation2 + $0x78] sm:$0xff] %vm210_vm1, %v6218_v54  ;;  %v3594_v12 = vld [vmem:[#allocation2 + $0x70] sm:$0xff]  ;;  %v3618_v13 = vadd.f32 %v7435_v22, %v3595_v7  ;;  %v3679_v0 = vld [vmem:[#allocation2 + $0x58] sm:$0xff] }
 0x1bf   : > { %4162 = vst.msk [vmem:[#allocation2 + $0x10] sm:$0xff] %vm210_vm1, %v4146_v59  ;;  %v3890_v60 = vadd.f32 %v3843_v11, %v3676_v5  ;;  %v3935_v14 = vld [vmem:[#allocation2 + $0x28] sm:$0xff]  ;;  %3650 = vst.msk [vmem:[#allocation2 + $0x70] sm:$0xff] %vm210_vm1, %v6218_v54  ;;  %v3617_v51 = vadd.f32 %v7435_v22, %v3594_v12  ;;  %v3678_v17 = vld [vmem:[#allocation2 + $0x50] sm:$0xff]  ;;  %v6071_v19 = vpop.f32.mrb[104].mxu1 }
 0x1c0   : > { %3907 = vst.msk [vmem:[#allocation2 + $0x48] sm:$0xff] %vm210_vm1, %v3891_v8  ;;  %v4149_v61 = vadd.f32 %v6065_v42, %v3935_v14  ;;  %v3934_v15 = vld [vmem:[#allocation2 + $0x20] sm:$0xff]  ;;  %5289 = vst.msk [vmem:[%s7150_s27 + $0xf8] sm:$0xff] %vm210_vm1, %v3618_v13  ;;  %v4105_v52 = vpop.f32.mrb[105].mxu1 }
 0x1c1   : > { %3906 = vst.msk [vmem:[#allocation2 + $0x40] sm:$0xff] %vm210_vm1, %v3890_v60  ;;  %v4148_v20 = vadd.f32 %v4085_v16, %v3934_v15  ;;  %v6048_v21 = vpop.f32.mrb[106].mxu0  ;;  %5288 = vst.msk [vmem:[%s7150_s27 + $0xf0] sm:$0xff] %vm210_vm1, %v3617_v51  ;;  %v3681_v25 = vld [vmem:[#allocation2 + $0x68] sm:$0xff] }
 0x1c2   : > { %4165 = vst.msk [vmem:[#allocation2 + $0x28] sm:$0xff] %vm210_vm1, %v4149_v61  ;;  %v3893_v54 = vadd.f32 %v6048_v21, %v3679_v0  ;;  %v3853_v23 = vpop.f32.mrb[107].mxu0  ;;  %v3680_v27 = vld [vmem:[#allocation2 + $0x60] sm:$0xff]  ;;  %v4193_v45 = vld [vmem:[#allocation2 + $0x8] sm:$0xff] }
 0x1c3   : > { %4164 = vst.msk [vmem:[#allocation2 + $0x20] sm:$0xff] %vm210_vm1, %v4148_v20  ;;  %v3892_v62 = vadd.f32 %v3853_v23, %v3678_v17  ;;  %v3937_v24 = vld [vmem:[#allocation2 + $0x38] sm:$0xff]  ;;  %v6074_v28 = vpop.f32.mrb[106].mxu1  ;;  %v4192_v49 = vld [vmem:[#allocation2] sm:$0xff] }
 0x1c4   : > { %3909 = vst.msk [vmem:[#allocation2 + $0x58] sm:$0xff] %vm210_vm1, %v3893_v54  ;;  %v4151_v26 = vadd.f32 %v6068_v18, %v3937_v24  ;;  %v3936_v1 = vld [vmem:[#allocation2 + $0x30] sm:$0xff]  ;;  %v4115_v29 = vpop.f32.mrb[107].mxu1 }
 0x1c5   : > { %3908 = vst.msk [vmem:[#allocation2 + $0x50] sm:$0xff] %vm210_vm1, %v3892_v62  ;;  %v4150_v53 = vadd.f32 %v4095_v6, %v3936_v1  ;;  %v6051_v9 = vpop.f32.mrb[108].mxu0  ;;  %v3683_v2 = vld [vmem:[#allocation2 + $0x78] sm:$0xff] }
 0x1c6   : > { %4167 = vst.msk [vmem:[#allocation2 + $0x38] sm:$0xff] %vm210_vm1, %v4151_v26  ;;  %v3895_v30 = vadd.f32 %v6051_v9, %v3681_v25  ;;  %v3863_v31 = vpop.f32.mrb[109].mxu0  ;;  %v3682_v36 = vld [vmem:[#allocation2 + $0x70] sm:$0xff]  ;;  %v4195_v59 = vld [vmem:[#allocation2 + $0x18] sm:$0xff] }
 0x1c7   : > { %4166 = vst.msk [vmem:[#allocation2 + $0x30] sm:$0xff] %vm210_vm1, %v4150_v53  ;;  %v3894_v33 = vadd.f32 %v3863_v31, %v3680_v27  ;;  %v3939_v55 = vld [vmem:[#allocation2 + $0x48] sm:$0xff]  ;;  %v6077_v37 = vpop.f32.mrb[108].mxu1  ;;  %v4194_v8 = vld [vmem:[#allocation2 + $0x10] sm:$0xff] }
 0x1c8   : > { %3911 = vst.msk [vmem:[#allocation2 + $0x68] sm:$0xff] %vm210_vm1, %v3895_v30  ;;  %v4153_v34 = vadd.f32 %v6071_v19, %v3939_v55  ;;  %v3938_v35 = vld [vmem:[#allocation2 + $0x40] sm:$0xff]  ;;  %v4125_v39 = vpop.f32.mrb[109].mxu1 }
 0x1c9   : > { %3910 = vst.msk [vmem:[#allocation2 + $0x60] sm:$0xff] %vm210_vm1, %v3894_v33  ;;  %v4152_v10 = vadd.f32 %v4105_v52, %v3938_v35  ;;  %v6054_v38 = vpop.f32.mrb[110].mxu0  ;;  %v4197_v61 = vld [vmem:[#allocation2 + $0x28] sm:$0xff] }
 0x1ca   : > { %4169 = vst.msk [vmem:[#allocation2 + $0x48] sm:$0xff] %vm210_vm1, %v4153_v34  ;;  %v3897_v40 = vadd.f32 %v6054_v38, %v3683_v2  ;;  %v3873_v56 = vpop.f32.mrb[111].mxu0  ;;  %v4196_v21 = vld [vmem:[#allocation2 + $0x20] sm:$0xff] }
 0x1cb   : > { %4168 = vst.msk [vmem:[#allocation2 + $0x40] sm:$0xff] %vm210_vm1, %v4152_v10  ;;  %v3896_v41 = vadd.f32 %v3873_v56, %v3682_v36  ;;  %v3941_v42 = vld [vmem:[#allocation2 + $0x58] sm:$0xff]  ;;  %v6080_v16 = vpop.f32.mrb[110].mxu1 }
 0x1cc   : > { %3913 = vst.msk [vmem:[#allocation2 + $0x78] sm:$0xff] %vm210_vm1, %v3897_v40  ;;  %v4155_v43 = vadd.f32 %v6074_v28, %v3941_v42  ;;  %v3940_v44 = vld [vmem:[#allocation2 + $0x50] sm:$0xff]  ;;  %v4135_v47 = vpop.f32.mrb[111].mxu1 }
 0x1cd   : > { %3912 = vst.msk [vmem:[#allocation2 + $0x70] sm:$0xff] %vm210_vm1, %v3896_v41  ;;  %v4154_v57 = vadd.f32 %v4115_v29, %v3940_v44  ;;  %v6085_v46 = vpop.f32.mrb[112].mxu0  ;;  %v4199_v1 = vld [vmem:[#allocation2 + $0x38] sm:$0xff] }
 0x1ce   : > { %4171 = vst.msk [vmem:[#allocation2 + $0x58] sm:$0xff] %vm210_vm1, %v4155_v43  ;;  %v4407_v48 = vadd.f32 %v6085_v46, %v4193_v45  ;;  %v4327_v63 = vpop.f32.mrb[113].mxu0  ;;  %v4198_v31 = vld [vmem:[#allocation2 + $0x30] sm:$0xff] }
 0x1cf   : > { %4170 = vst.msk [vmem:[#allocation2 + $0x50] sm:$0xff] %vm210_vm1, %v4154_v57  ;;  %v3943_v32 = vld [vmem:[#allocation2 + $0x68] sm:$0xff]  ;;  %v4406_v58 = vadd.f32 %v4327_v63, %v4192_v49  ;;  %v6111_v5 = vpop.f32.mrb[112].mxu1 }
 0x1d0   : > { %4423 = vst.msk [vmem:[#allocation2 + $0x8] sm:$0xff] %vm210_vm1, %v4407_v48  ;;  %v4157_v3 = vadd.f32 %v6077_v37, %v3943_v32  ;;  %v3942_v4 = vld [vmem:[#allocation2 + $0x60] sm:$0xff]  ;;  %v4589_v6 = vpop.f32.mrb[113].mxu1 }
 0x1d1   : > { %4422 = vst.msk [vmem:[#allocation2] sm:$0xff] %vm210_vm1, %v4406_v58  ;;  %v4156_v18 = vadd.f32 %v4125_v39, %v3942_v4  ;;  %v6088_v50 = vpop.f32.mrb[114].mxu0  ;;  %v4201_v37 = vld [vmem:[#allocation2 + $0x48] sm:$0xff] }
 0x1d2   : > { %4173 = vst.msk [vmem:[#allocation2 + $0x68] sm:$0xff] %vm210_vm1, %v4157_v3  ;;  %v4409_v7 = vadd.f32 %v6088_v50, %v4195_v59  ;;  %v4337_v11 = vpop.f32.mrb[115].mxu0  ;;  %v4200_v56 = vld [vmem:[#allocation2 + $0x40] sm:$0xff] }
 0x1d3   : > { %4172 = vst.msk [vmem:[#allocation2 + $0x60] sm:$0xff] %vm210_vm1, %v4156_v18  ;;  %v3945_v12 = vld [vmem:[#allocation2 + $0x78] sm:$0xff]  ;;  %v4408_v13 = vadd.f32 %v4337_v11, %v4194_v8  ;;  %v6114_v0 = vpop.f32.mrb[114].mxu1 }
 0x1d4   : > { %4425 = vst.msk [vmem:[#allocation2 + $0x18] sm:$0xff] %vm210_vm1, %v4409_v7  ;;  %v4159_v60 = vadd.f32 %v6080_v16, %v3945_v12  ;;  %v3944_v14 = vld [vmem:[#allocation2 + $0x70] sm:$0xff]  ;;  %v4599_v17 = vpop.f32.mrb[115].mxu1 }
 0x1d5   : > { %4424 = vst.msk [vmem:[#allocation2 + $0x10] sm:$0xff] %vm210_vm1, %v4408_v13  ;;  %v4158_v51 = vadd.f32 %v4135_v47, %v3944_v14  ;;  %v6091_v15 = vpop.f32.mrb[116].mxu0  ;;  %v4203_v47 = vld [vmem:[#allocation2 + $0x58] sm:$0xff] }
 0x1d6   : > { %4175 = vst.msk [vmem:[#allocation2 + $0x78] sm:$0xff] %vm210_vm1, %v4159_v60  ;;  %v4411_v19 = vadd.f32 %v6091_v15, %v4197_v61  ;;  %v2453_v20 = vpop.permute.xlu0 %2452  ;;  %v4347_v52 = vpop.f32.mrb[117].mxu0  ;;  %v4202_v3 = vld [vmem:[#allocation2 + $0x50] sm:$0xff] }
 0x1d7   : > { %4174 = vst.msk [vmem:[#allocation2 + $0x70] sm:$0xff] %vm210_vm1, %v4158_v51  ;;  %v4455_v54 = vld [vmem:[#allocation2 + $0x8] sm:$0xff]  ;;  %v4410_v23 = vadd.f32 %v4347_v52, %v4196_v21  ;;  %v6117_v25 = vpop.f32.mrb[116].mxu1 }
 0x1d8   : > { %2500 = vst.msk [vmem:[%s7150_s27 + $0x8] sm:$0xff] %vm2498_vm2, %v2453_v20  ;;  %v4669_v62 = vadd.f32 %v6111_v5, %v4455_v54  ;;  %v4454_v24 = vld [vmem:[#allocation2] sm:$0xff]  ;;  %v4609_v28 = vpop.f32.mrb[117].mxu1 }
 0x1d9   : > { %4427 = vst.msk [vmem:[#allocation2 + $0x28] sm:$0xff] %vm210_vm1, %v4411_v19  ;;  %4426 = vst.msk [vmem:[#allocation2 + $0x20] sm:$0xff] %vm210_vm1, %v4410_v23  ;;  %v4668_v26 = vadd.f32 %v4589_v6, %v4454_v24  ;;  %v6094_v27 = vpop.f32.mrb[118].mxu0  ;;  %v4205_v13 = vld [vmem:[#allocation2 + $0x68] sm:$0xff] }
 0x1da   : > { %4685 = vst.msk [vmem:[#allocation2 + $0x8] sm:$0xff] %vm210_vm1, %v4669_v62  ;;  %v4413_v53 = vadd.f32 %v6094_v27, %v4199_v1  ;;  %v2451_v9 = vpop.permute.xlu0 %2450  ;;  %v2457_v29 = vpop.permute.xlu1 %2456 }
 0x1db   : > { %4684 = vst.msk [vmem:[#allocation2] sm:$0xff] %vm210_vm1, %v4668_v26  ;;  %v4457_v30 = vld [vmem:[#allocation2 + $0x18] sm:$0xff]  ;;  %v4357_v33 = vpop.f32.mrb[119].mxu0  ;;  %v6120_v35 = vpop.f32.mrb[118].mxu1 }
 0x1dc   : > { %2499 = vst.msk [vmem:[%s7150_s27] sm:$0xff] %vm2498_vm2, %v2451_v9  ;;  %2502 = vst.msk [vmem:[%s7150_s27 + $0x28] sm:$0xff] %vm2498_vm2, %v2457_v29  ;;  %v4671_v55 = vadd.f32 %v6114_v0, %v4457_v30  ;;  %v4412_v2 = vadd.f32 %v4357_v33, %v4198_v31  ;;  %v4456_v34 = vld [vmem:[#allocation2 + $0x10] sm:$0xff]  ;;  %v4619_v38 = vpop.f32.mrb[119].mxu1 }
 0x1dd   : > { %4429 = vst.msk [vmem:[#allocation2 + $0x38] sm:$0xff] %vm210_vm1, %v4413_v53  ;;  %v4670_v36 = vadd.f32 %v4599_v17, %v4456_v34  ;;  %v6097_v10 = vpop.f32.mrb[120].mxu0  ;;  %v4204_v17 = vld [vmem:[#allocation2 + $0x60] sm:$0xff]  ;;  %v4207_v27 = vld [vmem:[#allocation2 + $0x78] sm:$0xff] }
 0x1de   : > { %4687 = vst.msk [vmem:[#allocation2 + $0x18] sm:$0xff] %vm210_vm1, %v4671_v55  ;;  %4428 = vst.msk [vmem:[#allocation2 + $0x30] sm:$0xff] %vm210_vm1, %v4412_v2  ;;  %v4415_v39 = vadd.f32 %v6097_v10, %v4201_v37  ;;  %v2455_v40 = vpop.permute.xlu1 %2454  ;;  %v4367_v41 = vpop.f32.mrb[121].mxu0  ;;  %v4206_v31 = vld [vmem:[#allocation2 + $0x70] sm:$0xff] }
 0x1df   : > { %4686 = vst.msk [vmem:[#allocation2 + $0x10] sm:$0xff] %vm210_vm1, %v4670_v36  ;;  %v4414_v43 = vadd.f32 %v4367_v41, %v4200_v56  ;;  %v2459_v44 = vpop.permute.xlu0 %2458  ;;  %v6123_v45 = vpop.f32.mrb[120].mxu1 }
 0x1e0   : > { %v4459_v42 = vld [vmem:[#allocation2 + $0x28] sm:$0xff]  ;;  %2501 = vst.msk [vmem:[%s7150_s27 + $0x20] sm:$0xff] %vm2498_vm2, %v2455_v40  ;;  %v4458_v57 = vld [vmem:[#allocation2 + $0x20] sm:$0xff]  ;;  %2503 = vst.msk [vmem:[%s7150_s27 + $0x40] sm:$0xff] %vm2498_vm2, %v2459_v44  ;;  %v4629_v63 = vpop.f32.mrb[121].mxu1 }
 0x1e1   : > { %4431 = vst.msk [vmem:[#allocation2 + $0x48] sm:$0xff] %vm210_vm1, %v4415_v39  ;;  %v4673_v16 = vadd.f32 %v6117_v25, %v4459_v42  ;;  %4430 = vst.msk [vmem:[#allocation2 + $0x40] sm:$0xff] %vm210_vm1, %v4414_v43  ;;  %v4672_v46 = vadd.f32 %v4609_v28, %v4458_v57  ;;  %v6100_v48 = vpop.f32.mrb[122].mxu0  ;;  %v4701_v49 = vld [vmem:[#allocation2 + $0x8] sm:$0xff] }
 0x1e2   : > { %v4417_v32 = vadd.f32 %v6100_v48, %v4203_v47  ;;  %v2461_v58 = vpop.permute.xlu1 %2460  ;;  %v4377_v4 = vpop.f32.mrb[123].mxu0  ;;  %v4724_v5 = vadd.f32 %v7435_v22, %v4701_v49  ;;  %v4700_v18 = vld [vmem:[#allocation2] sm:$0xff] }
 0x1e3   : > { %4689 = vst.msk [vmem:[#allocation2 + $0x28] sm:$0xff] %vm210_vm1, %v4673_v16  ;;  %4688 = vst.msk [vmem:[#allocation2 + $0x20] sm:$0xff] %vm210_vm1, %v4672_v46  ;;  %v4416_v50 = vadd.f32 %v4377_v4, %v4202_v3  ;;  %v2463_v6 = vpop.permute.xlu0 %2462  ;;  %v4723_v7 = vadd.f32 %v7435_v22, %v4700_v18  ;;  %v6126_v11 = vpop.f32.mrb[122].mxu1 }
 0x1e4   : > { %v4461_v59 = vld [vmem:[#allocation2 + $0x38] sm:$0xff]  ;;  %2504 = vst.msk [vmem:[%s7150_s27 + $0x48] sm:$0xff] %vm2498_vm2, %v2461_v58  ;;  %2505 = vst.msk [vmem:[%s7150_s27 + $0x60] sm:$0xff] %vm2498_vm2, %v2463_v6  ;;  %4757 = vrot.lane.b32.xlu1 %v4724_v5, %s6219_s30  ;;  %v4639_v0 = vpop.f32.mrb[123].mxu1 }
 0x1e5   : > { %4433 = vst.msk [vmem:[#allocation2 + $0x58] sm:$0xff] %vm210_vm1, %v4417_v32  ;;  %v4675_v8 = vadd.f32 %v6120_v35, %v4461_v59  ;;  %4432 = vst.msk [vmem:[#allocation2 + $0x50] sm:$0xff] %vm210_vm1, %v4416_v50  ;;  %v4460_v12 = vld [vmem:[#allocation2 + $0x30] sm:$0xff]  ;;  %v6103_v60 = vpop.f32.mrb[124].mxu0  ;;  %4755 = vrot.lane.b32.xlu0 %v4723_v7, %s6219_s30  ;;  %v4703_v14 = vld [vmem:[#allocation2 + $0x18] sm:$0xff] }
 0x1e6   : > { %v4674_v51 = vadd.f32 %v4619_v38, %v4460_v12  ;;  %v4419_v61 = vadd.f32 %v6103_v60, %v4205_v13  ;;  %v2465_v15 = vpop.permute.xlu1 %2464  ;;  %v4387_v19 = vpop.f32.mrb[125].mxu0  ;;  %v4726_v20 = vadd.f32 %v7435_v22, %v4703_v14  ;;  %v4702_v21 = vld [vmem:[#allocation2 + $0x10] sm:$0xff] }
 0x1e7   : > { %4691 = vst.msk [vmem:[#allocation2 + $0x38] sm:$0xff] %vm210_vm1, %v4675_v8  ;;  %v4418_v54 = vadd.f32 %v4387_v19, %v4204_v17  ;;  %v2467_v23 = vpop.permute.xlu0 %2466  ;;  %v4725_v62 = vadd.f32 %v7435_v22, %v4702_v21  ;;  %v6129_v26 = vpop.f32.mrb[124].mxu1 }
 0x1e8   : > { %v4463_v52 = vld [vmem:[#allocation2 + $0x48] sm:$0xff]  ;;  %2506 = vst.msk [vmem:[%s7150_s27 + $0x68] sm:$0xff] %vm2498_vm2, %v2465_v15  ;;  %v4462_v25 = vld [vmem:[#allocation2 + $0x40] sm:$0xff]  ;;  %2507 = vst.msk [vmem:[%s7150_s27 + $0x80] sm:$0xff] %vm2498_vm2, %v2467_v23  ;;  %4761 = vrot.lane.b32.xlu1 %v4726_v20, %s6219_s30  ;;  %v4649_v9 = vpop.f32.mrb[125].mxu1 }
 0x1e9   : > { %4690 = vst.msk [vmem:[#allocation2 + $0x30] sm:$0xff] %vm210_vm1, %v4674_v51  ;;  %4435 = vst.msk [vmem:[#allocation2 + $0x68] sm:$0xff] %vm210_vm1, %v4419_v61  ;;  %v4677_v24 = vadd.f32 %v6123_v45, %v4463_v52  ;;  %v4676_v1 = vadd.f32 %v4629_v63, %v4462_v25  ;;  %v6106_v28 = vpop.f32.mrb[126].mxu0  ;;  %4759 = vrot.lane.b32.xlu0 %v4725_v62, %s6219_s30 }
 0x1ea   : > { %4434 = vst.msk [vmem:[#allocation2 + $0x60] sm:$0xff] %vm210_vm1, %v4418_v54  ;;  %v4705_v53 = vld [vmem:[#allocation2 + $0x28] sm:$0xff]  ;;  %v4421_v29 = vadd.f32 %v6106_v28, %v4207_v27  ;;  %v2469_v30 = vpop.permute.xlu1 %2468  ;;  %v4397_v33 = vpop.f32.mrb[127].mxu0  ;;  %v4704_v2 = vld [vmem:[#allocation2 + $0x20] sm:$0xff] }
 0x1eb   : > { %4693 = vst.msk [vmem:[#allocation2 + $0x48] sm:$0xff] %vm210_vm1, %v4677_v24  ;;  %v4728_v55 = vadd.f32 %v7435_v22, %v4705_v53  ;;  %4692 = vst.msk [vmem:[#allocation2 + $0x40] sm:$0xff] %vm210_vm1, %v4676_v1  ;;  %v4420_v35 = vadd.f32 %v4397_v33, %v4206_v31  ;;  %v2471_v36 = vpop.permute.xlu0 %2470  ;;  %v4727_v37 = vadd.f32 %v7435_v22, %v4704_v2  ;;  %v6132_v39 = vpop.f32.mrb[126].mxu1 }
 0x1ec   : > { %v4465_v34 = vld [vmem:[#allocation2 + $0x58] sm:$0xff]  ;;  %2508 = vst.msk [vmem:[%s7150_s27 + $0x88] sm:$0xff] %vm2498_vm2, %v2469_v30  ;;  %v4464_v38 = vld [vmem:[#allocation2 + $0x50] sm:$0xff]  ;;  %2509 = vst.msk [vmem:[%s7150_s27 + $0xa0] sm:$0xff] %vm2498_vm2, %v2471_v36  ;;  %v4659_v41 = vpop.f32.mrb[127].mxu1 }
 0x1ed   : > { %4437 = vst.msk [vmem:[#allocation2 + $0x78] sm:$0xff] %vm210_vm1, %v4421_v29  ;;  %v4679_v10 = vadd.f32 %v6126_v11, %v4465_v34  ;;  %4765 = vrot.lane.b32.xlu1 %v4728_v55, %s6219_s30  ;;  %4436 = vst.msk [vmem:[#allocation2 + $0x70] sm:$0xff] %vm210_vm1, %v4420_v35  ;;  %v4678_v40 = vadd.f32 %v4639_v0, %v4464_v38  ;;  %4763 = vrot.lane.b32.xlu0 %v4727_v37, %s6219_s30 }
 0x1ee   : > { %v4707_v56 = vld [vmem:[#allocation2 + $0x38] sm:$0xff]  ;;  %v2473_v42 = vpop.permute.xlu1 %2472 }
 0x1ef   : > { %4695 = vst.msk [vmem:[#allocation2 + $0x58] sm:$0xff] %vm210_vm1, %v4679_v10  ;;  %v4730_v43 = vadd.f32 %v7435_v22, %v4707_v56  ;;  %4694 = vst.msk [vmem:[#allocation2 + $0x50] sm:$0xff] %vm210_vm1, %v4678_v40  ;;  %v2475_v16 = vpop.permute.xlu0 %2474 }
 0x1f0   : > { %v4467_v44 = vld [vmem:[#allocation2 + $0x68] sm:$0xff]  ;;  %2510 = vst.msk [vmem:[%s7150_s27 + $0xa8] sm:$0xff] %vm2498_vm2, %v2473_v42  ;;  %v4706_v57 = vld [vmem:[#allocation2 + $0x30] sm:$0xff]  ;;  %2511 = vst.msk [vmem:[%s7150_s27 + $0xc0] sm:$0xff] %vm2498_vm2, %v2475_v16 }
 0x1f1   : > { %v4681_v45 = vadd.f32 %v6129_v26, %v4467_v44  ;;  %v4466_v46 = vld [vmem:[#allocation2 + $0x60] sm:$0xff]  ;;  %4769 = vrot.lane.b32.xlu1 %v4730_v43, %s6219_s30  ;;  %v4729_v47 = vadd.f32 %v7435_v22, %v4706_v57 }
 0x1f2   : > { %v4680_v48 = vadd.f32 %v4649_v9, %v4466_v46  ;;  %v4709_v49 = vld [vmem:[#allocation2 + $0x48] sm:$0xff]  ;;  %v2477_v63 = vpop.permute.xlu1 %2476  ;;  %v4708_v58 = vld [vmem:[#allocation2 + $0x40] sm:$0xff] }
 0x1f3   : > { %4697 = vst.msk [vmem:[#allocation2 + $0x68] sm:$0xff] %vm210_vm1, %v4681_v45  ;;  %4767 = vrot.lane.b32.xlu0 %v4729_v47, %s6219_s30  ;;  %v4732_v32 = vadd.f32 %v7435_v22, %v4709_v49  ;;  %v2479_v4 = vpop.permute.xlu0 %2478  ;;  %v4731_v5 = vadd.f32 %v7435_v22, %v4708_v58 }
 0x1f4   : > { %4696 = vst.msk [vmem:[#allocation2 + $0x60] sm:$0xff] %vm210_vm1, %v4680_v48  ;;  %v4469_v3 = vld [vmem:[#allocation2 + $0x78] sm:$0xff]  ;;  %v4468_v59 = vld [vmem:[#allocation2 + $0x70] sm:$0xff] }
 0x1f5   : > { %2512 = vst.msk [vmem:[%s7150_s27 + $0xc8] sm:$0xff] %vm2498_vm2, %v2477_v63  ;;  %v4683_v18 = vadd.f32 %v6132_v39, %v4469_v3  ;;  %2513 = vst.msk [vmem:[%s7150_s27 + $0xe0] sm:$0xff] %vm2498_vm2, %v2479_v4  ;;  %4773 = vrot.lane.b32.xlu1 %v4732_v32, %s6219_s30  ;;  %v4682_v50 = vadd.f32 %v4659_v41, %v4468_v59 }
 0x1f6   : > { %v4711_v6 = vld [vmem:[#allocation2 + $0x58] sm:$0xff]  ;;  %v2481_v7 = vpop.permute.xlu1 %2480  ;;  %v4710_v11 = vld [vmem:[#allocation2 + $0x50] sm:$0xff] }
 0x1f7   : > { %4699 = vst.msk [vmem:[#allocation2 + $0x78] sm:$0xff] %vm210_vm1, %v4683_v18  ;;  %4771 = vrot.lane.b32.xlu0 %v4731_v5, %s6219_s30  ;;  %v4734_v8 = vadd.f32 %v7435_v22, %v4711_v6  ;;  %4698 = vst.msk [vmem:[#allocation2 + $0x70] sm:$0xff] %vm210_vm1, %v4682_v50  ;;  %v4733_v12 = vadd.f32 %v7435_v22, %v4710_v11 }
 0x1f8   : > { %2514 = vst.msk [vmem:[%s7150_s27 + $0xe8] sm:$0xff] %vm2498_vm2, %v2481_v7 }
 0x1f9   : > { %4777 = vrot.lane.b32.xlu1 %v4734_v8, %s6219_s30 }
 0x1fa   : > { %v4713_v13 = vld [vmem:[#allocation2 + $0x68] sm:$0xff] }
 0x1fb   : > { %4775 = vrot.lane.b32.xlu0 %v4733_v12, %s6219_s30  ;;  %v4736_v60 = vadd.f32 %v7435_v22, %v4713_v13  ;;  %v4712_v14 = vld [vmem:[#allocation2 + $0x60] sm:$0xff] }
 0x1fc   : > { %v4735_v0 = vadd.f32 %v7435_v22, %v4712_v14 }
 0x1fd   : > { %4781 = vrot.lane.b32.xlu1 %v4736_v60, %s6219_s30 }
 0x1fe   : > { %v4715_v51 = vld [vmem:[#allocation2 + $0x78] sm:$0xff]  ;;  %v4714_v15 = vld [vmem:[#allocation2 + $0x70] sm:$0xff] }
 0x1ff   : > { %4779 = vrot.lane.b32.xlu0 %v4735_v0, %s6219_s30  ;;  %v4738_v61 = vadd.f32 %v7435_v22, %v4715_v51  ;;  %v4737_v17 = vadd.f32 %v7435_v22, %v4714_v15 }
 0x201   : > { %4785 = vrot.lane.b32.xlu1 %v4738_v61, %s6219_s30 }
 0x203   : > { %4783 = vrot.lane.b32.xlu0 %v4737_v17, %s6219_s30 }
 0x256   : > { %v4758_v19 = vpop.permute.xlu1 %4757 }
 0x257   : > { %5428 = vst.msk [vmem:[%s7150_s27 + $0x18] sm:$0xff] %vm2498_vm2, %v4758_v19  ;;  %v4756_v20 = vpop.permute.xlu0 %4755 }
 0x258   : > { %5427 = vst.msk [vmem:[%s7150_s27 + $0x10] sm:$0xff] %vm2498_vm2, %v4756_v20 }
 0x25a   : > { %v4762_v21 = vpop.permute.xlu1 %4761 }
 0x25b   : > { %5430 = vst.msk [vmem:[%s7150_s27 + $0x38] sm:$0xff] %vm2498_vm2, %v4762_v21  ;;  %v4760_v52 = vpop.permute.xlu0 %4759 }
 0x25c   : > { %5429 = vst.msk [vmem:[%s7150_s27 + $0x30] sm:$0xff] %vm2498_vm2, %v4760_v52 }
 0x25f   : > { %v4766_v22 = vpop.permute.xlu1 %4765  ;;  %v4764_v54 = vpop.permute.xlu0 %4763 }
 0x260   : > { %5432 = vst.msk [vmem:[%s7150_s27 + $0x58] sm:$0xff] %vm2498_vm2, %v4766_v22  ;;  %5431 = vst.msk [vmem:[%s7150_s27 + $0x50] sm:$0xff] %vm2498_vm2, %v4764_v54 }
 0x263   : > { %v4770_v23 = vpop.permute.xlu1 %4769 }
 0x264   : > { %5434 = vst.msk [vmem:[%s7150_s27 + $0x78] sm:$0xff] %vm2498_vm2, %v4770_v23 }
 0x265   : > { %v4768_v62 = vpop.permute.xlu0 %4767 }
 0x266   : > { %5433 = vst.msk [vmem:[%s7150_s27 + $0x70] sm:$0xff] %vm2498_vm2, %v4768_v62 }
 0x267   : > { %v4774_v24 = vpop.permute.xlu1 %4773 }
 0x268   : > { %5436 = vst.msk [vmem:[%s7150_s27 + $0x98] sm:$0xff] %vm2498_vm2, %v4774_v24 }
 0x269   : > { %v4772_v25 = vpop.permute.xlu0 %4771 }
 0x26a   : > { %5435 = vst.msk [vmem:[%s7150_s27 + $0x90] sm:$0xff] %vm2498_vm2, %v4772_v25 }
 0x26b   : > { %v4778_v26 = vpop.permute.xlu1 %4777 }
 0x26c   : > { %5438 = vst.msk [vmem:[%s7150_s27 + $0xb8] sm:$0xff] %vm2498_vm2, %v4778_v26 }
 0x26d   : > { %v4776_v1 = vpop.permute.xlu0 %4775 }
 0x26e   : > { %5437 = vst.msk [vmem:[%s7150_s27 + $0xb0] sm:$0xff] %vm2498_vm2, %v4776_v1 }
 0x26f   : > { %v4782_v27 = vpop.permute.xlu1 %4781 }
 0x270   : > { %5440 = vst.msk [vmem:[%s7150_s27 + $0xd8] sm:$0xff] %vm2498_vm2, %v4782_v27 }
 0x271   : > { %v4780_v28 = vpop.permute.xlu0 %4779 }
 0x272   : > { %5439 = vst.msk [vmem:[%s7150_s27 + $0xd0] sm:$0xff] %vm2498_vm2, %v4780_v28 }
 0x273   : > { %v4786_v53 = vpop.permute.xlu1 %4785 }
 0x274   : > { %5442 = vst.msk [vmem:[%s7150_s27 + $0xf8] sm:$0xff] %vm2498_vm2, %v4786_v53 }
 0x275   : > { %v4784_v9 = vpop.permute.xlu0 %4783 }
 0x276   : > { %5441 = vst.msk [vmem:[%s7150_s27 + $0xf0] sm:$0xff] %vm2498_vm2, %v4784_v9 }
 0x277 PF: > { %s13_s16 = sadd.s32 1, %s6216_s16   ;;  %s7712_s12 = smov %s6208_s14 }
 0x278   : > { %p10_p8 = scmp.ge.s32.totalorder %s13_s16, 6   ;;  %s7713_s13 = smov %s6212_s15 }
 0x279   : > { %s7714_s14 = smov %s7717_s17  ;;  %s7715_s15 = smov %s7721_s18 }
 0x27a   :  { %12 = sbr.rel (!%p10_p8) target bundleno = 3 (0x3), region = 80 }

</bundles_post_ra>
